<compile_context>
chip_gen: v7x
topology: tpu7x:2x2x1
jax: 0.10.0
libtpu: 0.0.40
codegen_flags: <defaults>
</compile_context>

<pallas_src>
import functools

import jax
import jax.numpy as jnp
from jax.experimental import pallas as pl
from jax.experimental.pallas import tpu as pltpu

NEG_SLOPE = 0.01                # PyTorch nn.LeakyReLU default negative_slope
MATMUL_DTYPE = jnp.bfloat16     # MXU operand dtype (accumulation stays float32)
T_TILE_MAX = 1024               # max output-time lanes per grid step


# ------------------------------- helpers -------------------------------------
def _round_up(x, m):
    return ((x + m - 1) // m) * m


def _pick_time_tile(t_out, unit):
    """Output-time tile: multiple of `unit` (>=128), capped at T_TILE_MAX."""
    cap = max(unit, (T_TILE_MAX // unit) * unit)
    return int(min(cap, _round_up(max(int(t_out), 1), unit)))


def _frame_time(x, step, n_frames, width, pad_left, total_len):
    """x: (B, C, T) -> overlapping frames (B, n_frames, C, width).

    Frame t covers columns [t*step, t*step + width) of x zero-padded with `pad_left`
    columns on the left and zero-extended on the right to `total_len` columns.
    """
    B, C, T = x.shape
    pad_right = max(total_len - pad_left - T, 0)
    xp = jnp.pad(x, ((0, 0), (0, 0), (pad_left, pad_right)))
    idx = (jnp.arange(n_frames) * step)[:, None] + jnp.arange(width)[None, :]
    frames = xp[:, :, idx]                       # (B, C, n_frames, width)
    return jnp.transpose(frames, (0, 2, 1, 3))   # (B, n_frames, C, width)


def _pad_time(x, length):
    return jnp.pad(x, ((0, 0), (0, 0), (0, length - x.shape[-1])))


def _compiler_params(block_bytes):
    # Budget: ~2x double-buffered blocks + internal scratch, clamped to stay safe on
    # v7x's 64 MiB VMEM while raising the default scoped limit when needed.
    vmem = int(min(48 * 1024 * 1024, max(16 * 1024 * 1024, 4 * block_bytes)))
    return pltpu.CompilerParams(
        dimension_semantics=("parallel", "parallel"),
        vmem_limit_bytes=vmem)


# ----------------------------- Pallas kernels ---------------------------------
def _conv1d_kernel(*refs, taps, t_tile, pre_leaky, post_tanh,
                   fuse_residual, res_off, out_scale, has_add):
    """One (batch, time-tile) step of a dilated Conv1d with fused epilogue."""
    if has_add:
        x_ref, w_ref, b_ref, add_ref, o_ref = refs
    else:
        x_ref, w_ref, b_ref, o_ref = refs
        add_ref = None
    x = x_ref[0, 0]                                            # (Cin, Wf) f32
    xa = jnp.where(x >= 0, x, NEG_SLOPE * x) if pre_leaky else x
    # im2col the K dilated taps into one (K*Cin, Tt) slab -> single MXU contraction.
    cols = [xa[:, off:off + t_tile] for off in taps]
    xcat = cols[0] if len(cols) == 1 else jnp.concatenate(cols, axis=0)
    y = jnp.dot(w_ref[...], xcat.astype(w_ref.dtype),
                preferred_element_type=jnp.float32)            # (Cout, Tt)
    y = y + b_ref[...]                                         # (Cout, 1) broadcast
    if fuse_residual:                                          # ResBlock skip (raw x)
        y = y + x[:, res_off:res_off + t_tile]
    if has_add:                                                # MRF cross-branch sum
        y = y + add_ref[0]
    if out_scale != 1.0:                                       # MRF average
        y = y * out_scale
    if post_tanh:
        y = jnp.tanh(y)
    o_ref[0] = y.astype(o_ref.dtype)


def _conv_transpose_kernel(x_ref, w_ref, b_ref, o_ref, *, phase_taps, t_in, pre_leaky):
    """Polyphase ConvTranspose1d: each phase is a tiny stride-1 conv over the input
    frame; phase outputs are written phase-major (interleaved later in the wrapper)."""
    x = x_ref[0, 0]                                            # (Cin, Wf_in) f32
    xa = jnp.where(x >= 0, x, NEG_SLOPE * x) if pre_leaky else x
    xa = xa.astype(w_ref.dtype)
    cout = o_ref.shape[2]
    for r, taps in enumerate(phase_taps):                      # static loop over phases
        acc = None
        for off, k in taps:                                    # <= ceil(K/stride) taps
            d = jnp.dot(w_ref[k], xa[:, off:off + t_in],
                        preferred_element_type=jnp.float32)
            acc = d if acc is None else acc + d
        if acc is None:
            acc = jnp.zeros((cout, t_in), jnp.float32)
        acc = acc + b_ref[...]
        o_ref[0, r] = acc.astype(o_ref.dtype)


# ------------------------------ conv wrappers ---------------------------------
def conv1d_pallas(x, w, b, *, dilation=1, pad_left=0, pad_right=0,
                  pre_leaky=False, post_tanh=False, fuse_residual=False,
                  add=None, out_scale=1.0):
    """x: (B, Cin, T), w: (Cout, Cin, K), b: (Cout,) -> (B, Cout, T_out)."""
    B, Cin, T = x.shape
    Cout, _, K = w.shape
    assert (not fuse_residual) or Cin == Cout
    halo = dilation * (K - 1)
    T_out = pad_left + T + pad_right - halo
    Tt = _pick_time_tile(T_out, 128)
    nt = pl.cdiv(T_out, Tt)
    Wf = Tt + halo
    frames = _frame_time(x, Tt, nt, Wf, pad_left, (nt - 1) * Tt + Wf)
    taps = tuple(k * dilation for k in range(K))
    wf = jnp.transpose(w, (0, 2, 1)).reshape(Cout, K * Cin).astype(MATMUL_DTYPE)
    b2 = b.reshape(Cout, 1).astype(jnp.float32)

    inputs = [frames, wf, b2]
    in_specs = [
        pl.BlockSpec((1, 1, Cin, Wf), lambda bb, tt: (bb, tt, 0, 0)),
        pl.BlockSpec((Cout, K * Cin), lambda bb, tt: (0, 0)),
        pl.BlockSpec((Cout, 1), lambda bb, tt: (0, 0)),
    ]
    has_add = add is not None
    if has_add:
        inputs.append(_pad_time(add, nt * Tt))
        in_specs.append(pl.BlockSpec((1, Cout, Tt), lambda bb, tt: (bb, 0, tt)))

    kernel = functools.partial(
        _conv1d_kernel, taps=taps, t_tile=Tt, pre_leaky=pre_leaky,
        post_tanh=post_tanh, fuse_residual=fuse_residual, res_off=pad_left,
        out_scale=float(out_scale), has_add=has_add)

    block_bytes = (Cin * Wf * 4 + Cout * K * Cin * 2 + Cout * 4
                   + Cout * Tt * 4 * (2 if has_add else 1) + K * Cin * Tt * 4)
    y = pl.pallas_call(
        kernel,
        out_shape=jax.ShapeDtypeStruct((B, Cout, nt * Tt), x.dtype),
        grid=(B, nt),
        in_specs=in_specs,
        out_specs=pl.BlockSpec((1, Cout, Tt), lambda bb, tt: (bb, 0, tt)),
        compiler_params=_compiler_params(block_bytes),
    )(*inputs)
    return y[:, :, :T_out]


def conv_transpose1d_pallas(x, w, b, *, stride, padding, pre_leaky=True):
    """Polyphase ConvTranspose1d.  w: (Cout, Cin, K) with w[:, :, k] the transposed-conv
    tap k (synthetic init, so the storage convention is ours to choose)."""
    B, Cin, T = x.shape
    Cout, _, K = w.shape
    T_out = (T - 1) * stride - 2 * padding + K
    lh = (K - 1 - padding) // stride              # left input halo
    rh = (stride - 1 + padding) // stride         # right input halo
    Tt_out = _pick_time_tile(T_out, 128 * stride)
    Tt_in = Tt_out // stride                      # input positions per tile (mult of 128)
    nt = pl.cdiv(T_out, Tt_out)
    Wf = Tt_in + lh + rh
    frames = _frame_time(x, Tt_in, nt, Wf, lh, (nt - 1) * Tt_in + Wf)

    # y[q*stride + r] = sum_j x[q - j] @ W[:, :, stride*j + r + padding]
    phase_taps = []
    for r in range(stride):
        taps = []
        for j in range(-rh, lh + 1):
            k = stride * j + r + padding
            if 0 <= k < K:
                taps.append((lh - j, k))          # (frame offset, tap index)
        phase_taps.append(tuple(taps))
    phase_taps = tuple(phase_taps)

    w_k = jnp.transpose(w, (2, 0, 1)).astype(MATMUL_DTYPE)    # (K, Cout, Cin)
    b2 = b.reshape(Cout, 1).astype(jnp.float32)
    kernel = functools.partial(_conv_transpose_kernel, phase_taps=phase_taps,
                               t_in=Tt_in, pre_leaky=pre_leaky)
    block_bytes = (Cin * Wf * 4 + K * Cout * Cin * 2 + Cout * 4
                   + stride * Cout * Tt_in * 4)
    z = pl.pallas_call(
        kernel,
        out_shape=jax.ShapeDtypeStruct((B, stride, Cout, nt * Tt_in), x.dtype),
        grid=(B, nt),
        in_specs=[
            pl.BlockSpec((1, 1, Cin, Wf), lambda bb, tt: (bb, tt, 0, 0)),
            pl.BlockSpec((K, Cout, Cin), lambda bb, tt: (0, 0, 0)),
            pl.BlockSpec((Cout, 1), lambda bb, tt: (0, 0)),
        ],
        out_specs=pl.BlockSpec((1, stride, Cout, Tt_in), lambda bb, tt: (bb, 0, 0, tt)),
        compiler_params=_compiler_params(block_bytes),
    )(frames, w_k, b2)
    # phase-major (B, stride, Cout, Q) -> interleaved (B, Cout, Q*stride).
    # TODO(synk): move this interleave in-kernel (lane shuffle) to drop the XLA pass.
    y = jnp.transpose(z, (0, 2, 3, 1)).reshape(B, Cout, nt * Tt_out)
    return y[:, :, :T_out]


# --------------------------- parameter init -----------------------------------
def _init_conv(key, cout, cin, k):
    kw, kb = jax.random.split(key)
    bound = 1.0 / float((cin * k) ** 0.5)
    w = jax.random.uniform(kw, (cout, cin, k), jnp.float32, -bound, bound)
    b = jax.random.uniform(kb, (cout,), jnp.float32, -bound, bound)
    return w, b


def init_hifi_params(key, channels, scales, kernels, dilations):
    params = {}
    key, k1 = jax.random.split(key)
    params["conv1"] = _init_conv(k1, channels, 80, 7)         # Conv1d(80 -> channels, K=7)
    layers = []
    c_in = channels
    for i, s in enumerate(scales):
        c_out = channels // (2 ** (i + 1))
        key, kt = jax.random.split(key)
        # Note: PyTorch ConvTranspose1d fan-in is cout*K; synthetic init, so harmless.
        up_w, up_b = _init_conv(kt, c_out, c_in, s)
        mrf = []
        for ks in kernels:
            blocks = []
            for _d in dilations:
                key, kc = jax.random.split(key)
                blocks.append(_init_conv(kc, c_out, c_out, ks))
            mrf.append(blocks)
        layers.append({"up": (up_w, up_b), "mrf": mrf})
        c_in = c_out
    params["layers"] = layers
    key, k2 = jax.random.split(key)
    params["conv2"] = _init_conv(k2, 1, c_in, 7)              # Conv1d(c -> 1, K=7)
    return params


# ------------------------------ forward pass ----------------------------------
def hifi_forward(params, spectrogram, *, scales, kernels, dilations):
    # conv1, padding='same' (K=7 -> pad 3/3)
    out = conv1d_pallas(spectrogram, *params["conv1"], pad_left=3, pad_right=3)

    n_ks = len(kernels)
    for i, layer in enumerate(params["layers"]):
        s = scales[i]
        stride = s // 2
        p = (s - stride) // 2
        # LeakyReLU + ConvTranspose1d (polyphase, leaky fused into the kernel).
        out = conv_transpose1d_pallas(out, *layer["up"], stride=stride, padding=p,
                                      pre_leaky=True)
        # MRF: average of per-kernel-size ResBlocks; residual add, cross-branch sum and
        # the 1/len(kernels) average are fused into the conv kernels.
        acc = None
        for ki, (ks, blocks) in enumerate(zip(kernels, layer["mrf"])):
            xr = out
            last_chain = ki == n_ks - 1
            for di, (d, (w, b)) in enumerate(zip(dilations, blocks)):
                total = d * (ks - 1)                          # 'same' padding, stride 1
                fuse_tail = last_chain and (di == len(dilations) - 1)
                xr = conv1d_pallas(
                    xr, w, b, dilation=d,
                    pad_left=total // 2, pad_right=total - total // 2,
                    pre_leaky=True, fuse_residual=True,
                    add=acc if (fuse_tail and acc is not None) else None,
                    out_scale=(1.0 / n_ks) if fuse_tail else 1.0)
            if last_chain:
                out = xr
            else:
                acc = xr if acc is None else acc + xr
        # TODO(synk): fuse a full per-stage MRF chain into one pallas_call (tile resident
        # in VMEM); requires boundary masking to keep exact 'same'-padding semantics.

    # LeakyReLU -> conv2 ('same') -> tanh, fused into one kernel call.
    out = conv1d_pallas(out, *params["conv2"], pad_left=3, pad_right=3,
                        pre_leaky=True, post_tanh=True)
    return {"prediction_audio": out.reshape(out.shape[0], -1)}


# ---------------------------------- main --------------------------------------
if __name__ == "__main__":
    channels = 32
    scales = (4, 4)          # each upsamples time by stride = scale // 2 = 2
    kernels = (3, 5)
    dilations = (1, 3)

    key = jax.random.PRNGKey(0)
    kp, kx = jax.random.split(key)
    params = init_hifi_params(kp, channels, scales, kernels, dilations)

    B, F, T = 2, 80, 8       # spectrogram: (B, 80 mel channels, T frames), channels-first
    spectrogram = jax.random.normal(kx, (B, F, T), jnp.float32)

    fwd = jax.jit(functools.partial(hifi_forward, scales=scales,
                                    kernels=kernels, dilations=dilations))
    out = fwd(params, spectrogram)
    audio = jax.block_until_ready(out["prediction_audio"])

    expected_T = T
    for s in scales:
        expected_T *= s // 2
    assert audio.shape == (B, expected_T), audio.shape
    assert bool(jnp.all(jnp.isfinite(audio)))
    print("KERNEL_OK")
</pallas_src>

<mosaic_0001>
module attributes {stable_mosaic.version = 11 : i64} {
  func.func @_conv1d_kernel(%arg0: i32, %arg1: i32, %arg2: memref<1x1x80x134xf32, #tpu.memory_space<vmem>>, %arg3: memref<32x560xbf16, #tpu.memory_space<vmem>>, %arg4: memref<32x1xf32, #tpu.memory_space<vmem>>, %arg5: memref<1x32x128xf32, #tpu.memory_space<vmem>>) attributes {dimension_semantics = [#tpu.dimension_semantics<parallel>, #tpu.dimension_semantics<parallel>], iteration_bounds = array<i64: 2, 1>, scalar_prefetch = 0 : i64, scratch_operands = 0 : i64, tpu.core_type = #tpu.core_type<tc>, window_params = [{transform_indices = @transform_0, window_bounds = array<i64: 1, 1, 80, 134>}, {pipeline_mode = #tpu.pipeline_mode<synchronous>, transform_indices = @transform_1, window_bounds = array<i64: 32, 560>}, {pipeline_mode = #tpu.pipeline_mode<synchronous>, transform_indices = @transform_2, window_bounds = array<i64: 32, 1>}, {transform_indices = @transform_3, window_bounds = array<i64: 1, 32, 128>}]} {
    %c0 = arith.constant 0 : index
    %c0_0 = arith.constant 0 : index
    %c0_1 = arith.constant 0 : index
    %c0_2 = arith.constant 0 : index
    %0 = vector.load %arg2[%c0, %c0_0, %c0_1, %c0_2] : memref<1x1x80x134xf32, #tpu.memory_space<vmem>>, vector<1x1x80x134xf32>
    %1 = vector.shape_cast %0 : vector<1x1x80x134xf32> to vector<80x134xf32>
    %2 = vector.extract_strided_slice %1 {offsets = [0, 0], sizes = [80, 128], strides = [1, 1]} : vector<80x134xf32> to vector<80x128xf32>
    %3 = vector.extract_strided_slice %1 {offsets = [0, 1], sizes = [80, 128], strides = [1, 1]} : vector<80x134xf32> to vector<80x128xf32>
    %4 = vector.extract_strided_slice %1 {offsets = [0, 2], sizes = [80, 128], strides = [1, 1]} : vector<80x134xf32> to vector<80x128xf32>
    %5 = vector.extract_strided_slice %1 {offsets = [0, 3], sizes = [80, 128], strides = [1, 1]} : vector<80x134xf32> to vector<80x128xf32>
    %6 = vector.extract_strided_slice %1 {offsets = [0, 4], sizes = [80, 128], strides = [1, 1]} : vector<80x134xf32> to vector<80x128xf32>
    %7 = vector.extract_strided_slice %1 {offsets = [0, 5], sizes = [80, 128], strides = [1, 1]} : vector<80x134xf32> to vector<80x128xf32>
    %8 = vector.extract_strided_slice %1 {offsets = [0, 6], sizes = [80, 128], strides = [1, 1]} : vector<80x134xf32> to vector<80x128xf32>
    %9 = tpu.concatenate %2, %3, %4, %5, %6, %7, %8 in 0 : vector<80x128xf32>, vector<80x128xf32>, vector<80x128xf32>, vector<80x128xf32>, vector<80x128xf32>, vector<80x128xf32>, vector<80x128xf32> -> vector<560x128xf32>
    %c0_3 = arith.constant 0 : index
    %c0_4 = arith.constant 0 : index
    %10 = vector.load %arg3[%c0_3, %c0_4] : memref<32x560xbf16, #tpu.memory_space<vmem>>, vector<32x560xbf16>
    %11 = arith.truncf %9 : vector<560x128xf32> to vector<560x128xbf16>
    %cst = arith.constant dense<0.000000e+00> : vector<32x128xf32>
    %12 = tpu.matmul %10, %11, %cst {dimension_numbers = #tpu.dot_dimension_numbers<[1], [0], [0], [1], [0, 0, 1, 1], [], []>} : vector<32x560xbf16>, vector<560x128xbf16>, vector<32x128xf32> -> vector<32x128xf32>
    %c0_5 = arith.constant 0 : index
    %c0_6 = arith.constant 0 : index
    %13 = vector.load %arg4[%c0_5, %c0_6] : memref<32x1xf32, #tpu.memory_space<vmem>>, vector<32x1xf32>
    %14 = vector.broadcast %13 : vector<32x1xf32> to vector<32x128xf32>
    %15 = arith.addf %12, %14 : vector<32x128xf32>
    %c0_7 = arith.constant 0 : index
    %c0_8 = arith.constant 0 : index
    %c0_9 = arith.constant 0 : index
    %16 = vector.load %arg5[%c0_7, %c0_8, %c0_9] : memref<1x32x128xf32, #tpu.memory_space<vmem>>, vector<1x32x128xf32>
    %17 = vector.shape_cast %16 : vector<1x32x128xf32> to vector<32x128xf32>
    %18 = vector.shape_cast %15 : vector<32x128xf32> to vector<1x32x128xf32>
    tpu.vector_store %arg5[%c0_7, %c0_8, %c0_9], %18 {strides = array<i32>} : memref<1x32x128xf32, #tpu.memory_space<vmem>>, vector<1x32x128xf32>,
    return
  }
  func.func @transform_0(%arg0: i32, %arg1: i32) -> (i32, i32, i32, i32) {
    %c0_i32 = arith.constant 0 : i32
    %c0_i32_0 = arith.constant 0 : i32
    %c0_i32_1 = arith.constant 0 : i32
    return %arg0, %arg1, %c0_i32, %c0_i32_0 : i32, i32, i32, i32
  }
  func.func @transform_1(%arg0: i32, %arg1: i32) -> (i32, i32) {
    %c0_i32 = arith.constant 0 : i32
    %c0_i32_0 = arith.constant 0 : i32
    %c0_i32_1 = arith.constant 0 : i32
    return %c0_i32, %c0_i32_0 : i32, i32
  }
  func.func @transform_2(%arg0: i32, %arg1: i32) -> (i32, i32) {
    %c0_i32 = arith.constant 0 : i32
    %c0_i32_0 = arith.constant 0 : i32
    %c0_i32_1 = arith.constant 0 : i32
    return %c0_i32, %c0_i32_0 : i32, i32
  }
  func.func @transform_3(%arg0: i32, %arg1: i32) -> (i32, i32, i32) {
    %c0_i32 = arith.constant 0 : i32
    %c0_i32_0 = arith.constant 0 : i32
    return %arg0, %c0_i32, %arg1 : i32, i32, i32
  }
}

module attributes {stable_mosaic.version = 11 : i64} {
  func.func @_conv_transpose_kernel(%arg0: i32, %arg1: i32, %arg2: memref<1x1x32x130xf32, #tpu.memory_space<vmem>>, %arg3: memref<4x16x32xbf16, #tpu.memory_space<vmem>>, %arg4: memref<16x1xf32, #tpu.memory_space<vmem>>, %arg5: memref<1x2x16x128xf32, #tpu.memory_space<vmem>>) attributes {dimension_semantics = [#tpu.dimension_semantics<parallel>, #tpu.dimension_semantics<parallel>], iteration_bounds = array<i64: 2, 1>, scalar_prefetch = 0 : i64, scratch_operands = 0 : i64, tpu.core_type = #tpu.core_type<tc>, window_params = [{transform_indices = @transform_0, window_bounds = array<i64: 1, 1, 32, 130>}, {pipeline_mode = #tpu.pipeline_mode<synchronous>, transform_indices = @transform_1, window_bounds = array<i64: 4, 16, 32>}, {pipeline_mode = #tpu.pipeline_mode<synchronous>, transform_indices = @transform_2, window_bounds = array<i64: 16, 1>}, {transform_indices = @transform_3, window_bounds = array<i64: 1, 2, 16, 128>}]} {
    %c0 = arith.constant 0 : index
    %c0_0 = arith.constant 0 : index
    %c0_1 = arith.constant 0 : index
    %c0_2 = arith.constant 0 : index
    %0 = vector.load %arg2[%c0, %c0_0, %c0_1, %c0_2] : memref<1x1x32x130xf32, #tpu.memory_space<vmem>>, vector<1x1x32x130xf32>
    %1 = vector.shape_cast %0 : vector<1x1x32x130xf32> to vector<32x130xf32>
    %cst = arith.constant 0.000000e+00 : f32
    %2 = vector.broadcast %cst : f32 to vector<32x130xf32>
    %3 = arith.cmpf oge, %1, %2 : vector<32x130xf32>
    %cst_3 = arith.constant 0.00999999977 : f32
    %4 = vector.broadcast %cst_3 : f32 to vector<32x130xf32>
    %5 = arith.mulf %4, %1 : vector<32x130xf32>
    %6 = arith.select %3, %1, %5 : vector<32x130xi1>, vector<32x130xf32>
    %7 = arith.truncf %6 : vector<32x130xf32> to vector<32x130xbf16>
    %c1 = arith.constant 1 : index
    %c0_4 = arith.constant 0 : index
    %c0_5 = arith.constant 0 : index
    %8 = vector.load %arg3[%c1, %c0_4, %c0_5] : memref<4x16x32xbf16, #tpu.memory_space<vmem>>, vector<1x16x32xbf16>
    %9 = vector.shape_cast %8 : vector<1x16x32xbf16> to vector<16x32xbf16>
    %10 = vector.extract_strided_slice %7 {offsets = [0, 1], sizes = [32, 128], strides = [1, 1]} : vector<32x130xbf16> to vector<32x128xbf16>
    %cst_6 = arith.constant dense<0.000000e+00> : vector<16x128xf32>
    %11 = tpu.matmul %9, %10, %cst_6 {dimension_numbers = #tpu.dot_dimension_numbers<[1], [0], [0], [1], [0, 0, 1, 1], [], []>} : vector<16x32xbf16>, vector<32x128xbf16>, vector<16x128xf32> -> vector<16x128xf32>
    %c3 = arith.constant 3 : index
    %c0_7 = arith.constant 0 : index
    %c0_8 = arith.constant 0 : index
    %12 = vector.load %arg3[%c3, %c0_7, %c0_8] : memref<4x16x32xbf16, #tpu.memory_space<vmem>>, vector<1x16x32xbf16>
    %13 = vector.shape_cast %12 : vector<1x16x32xbf16> to vector<16x32xbf16>
    %14 = vector.extract_strided_slice %7 {offsets = [0, 0], sizes = [32, 128], strides = [1, 1]} : vector<32x130xbf16> to vector<32x128xbf16>
    %cst_9 = arith.constant dense<0.000000e+00> : vector<16x128xf32>
    %15 = tpu.matmul %13, %14, %cst_9 {dimension_numbers = #tpu.dot_dimension_numbers<[1], [0], [0], [1], [0, 0, 1, 1], [], []>} : vector<16x32xbf16>, vector<32x128xbf16>, vector<16x128xf32> -> vector<16x128xf32>
    %16 = arith.addf %11, %15 : vector<16x128xf32>
    %c0_10 = arith.constant 0 : index
    %c0_11 = arith.constant 0 : index
    %17 = vector.load %arg4[%c0_10, %c0_11] : memref<16x1xf32, #tpu.memory_space<vmem>>, vector<16x1xf32>
    %18 = vector.broadcast %17 : vector<16x1xf32> to vector<16x128xf32>
    %19 = arith.addf %16, %18 : vector<16x128xf32>
    %c0_12 = arith.constant 0 : index
    %c0_13 = arith.constant 0 : index
    %c0_14 = arith.constant 0 : index
    %c0_15 = arith.constant 0 : index
    %20 = vector.load %arg5[%c0_12, %c0_13, %c0_14, %c0_15] : memref<1x2x16x128xf32, #tpu.memory_space<vmem>>, vector<1x1x16x128xf32>
    %21 = vector.shape_cast %20 : vector<1x1x16x128xf32> to vector<16x128xf32>
    %22 = vector.shape_cast %19 : vector<16x128xf32> to vector<1x1x16x128xf32>
    tpu.vector_store %arg5[%c0_12, %c0_13, %c0_14, %c0_15], %22 {strides = array<i32>} : memref<1x2x16x128xf32, #tpu.memory_space<vmem>>, vector<1x1x16x128xf32>,
    %c0_16 = arith.constant 0 : index
    %c0_17 = arith.constant 0 : index
    %c0_18 = arith.constant 0 : index
    %23 = vector.load %arg3[%c0_16, %c0_17, %c0_18] : memref<4x16x32xbf16, #tpu.memory_space<vmem>>, vector<1x16x32xbf16>
    %24 = vector.shape_cast %23 : vector<1x16x32xbf16> to vector<16x32xbf16>
    %25 = vector.extract_strided_slice %7 {offsets = [0, 2], sizes = [32, 128], strides = [1, 1]} : vector<32x130xbf16> to vector<32x128xbf16>
    %cst_19 = arith.constant dense<0.000000e+00> : vector<16x128xf32>
    %26 = tpu.matmul %24, %25, %cst_19 {dimension_numbers = #tpu.dot_dimension_numbers<[1], [0], [0], [1], [0, 0, 1, 1], [], []>} : vector<16x32xbf16>, vector<32x128xbf16>, vector<16x128xf32> -> vector<16x128xf32>
    %c2 = arith.constant 2 : index
    %c0_20 = arith.constant 0 : index
    %c0_21 = arith.constant 0 : index
    %27 = vector.load %arg3[%c2, %c0_20, %c0_21] : memref<4x16x32xbf16, #tpu.memory_space<vmem>>, vector<1x16x32xbf16>
    %28 = vector.shape_cast %27 : vector<1x16x32xbf16> to vector<16x32xbf16>
    %29 = vector.extract_strided_slice %7 {offsets = [0, 1], sizes = [32, 128], strides = [1, 1]} : vector<32x130xbf16> to vector<32x128xbf16>
    %cst_22 = arith.constant dense<0.000000e+00> : vector<16x128xf32>
    %30 = tpu.matmul %28, %29, %cst_22 {dimension_numbers = #tpu.dot_dimension_numbers<[1], [0], [0], [1], [0, 0, 1, 1], [], []>} : vector<16x32xbf16>, vector<32x128xbf16>, vector<16x128xf32> -> vector<16x128xf32>
    %31 = arith.addf %26, %30 : vector<16x128xf32>
    %c0_23 = arith.constant 0 : index
    %c0_24 = arith.constant 0 : index
    %32 = vector.load %arg4[%c0_23, %c0_24] : memref<16x1xf32, #tpu.memory_space<vmem>>, vector<16x1xf32>
    %33 = vector.broadcast %32 : vector<16x1xf32> to vector<16x128xf32>
    %34 = arith.addf %31, %33 : vector<16x128xf32>
    %c0_25 = arith.constant 0 : index
    %c1_26 = arith.constant 1 : index
    %c0_27 = arith.constant 0 : index
    %c0_28 = arith.constant 0 : index
    %35 = vector.load %arg5[%c0_25, %c1_26, %c0_27, %c0_28] : memref<1x2x16x128xf32, #tpu.memory_space<vmem>>, vector<1x1x16x128xf32>
    %36 = vector.shape_cast %35 : vector<1x1x16x128xf32> to vector<16x128xf32>
    %37 = vector.shape_cast %34 : vector<16x128xf32> to vector<1x1x16x128xf32>
    tpu.vector_store %arg5[%c0_25, %c1_26, %c0_27, %c0_28], %37 {strides = array<i32>} : memref<1x2x16x128xf32, #tpu.memory_space<vmem>>, vector<1x1x16x128xf32>,
    return
  }
  func.func @transform_0(%arg0: i32, %arg1: i32) -> (i32, i32, i32, i32) {
    %c0_i32 = arith.constant 0 : i32
    %c0_i32_0 = arith.constant 0 : i32
    %c0_i32_1 = arith.constant 0 : i32
    return %arg0, %arg1, %c0_i32, %c0_i32_0 : i32, i32, i32, i32
  }
  func.func @transform_1(%arg0: i32, %arg1: i32) -> (i32, i32, i32) {
    %c0_i32 = arith.constant 0 : i32
    %c0_i32_0 = arith.constant 0 : i32
    %c0_i32_1 = arith.constant 0 : i32
    %c0_i32_2 = arith.constant 0 : i32
    return %c0_i32, %c0_i32_0, %c0_i32_1 : i32, i32, i32
  }
  func.func @transform_2(%arg0: i32, %arg1: i32) -> (i32, i32) {
    %c0_i32 = arith.constant 0 : i32
    %c0_i32_0 = arith.constant 0 : i32
    %c0_i32_1 = arith.constant 0 : i32
    return %c0_i32, %c0_i32_0 : i32, i32
  }
  func.func @transform_3(%arg0: i32, %arg1: i32) -> (i32, i32, i32, i32) {
    %c0_i32 = arith.constant 0 : i32
    %c0_i32_0 = arith.constant 0 : i32
    %c0_i32_1 = arith.constant 0 : i32
    return %arg0, %c0_i32, %c0_i32_0, %arg1 : i32, i32, i32, i32
  }
}

module attributes {stable_mosaic.version = 11 : i64} {
  func.func @_conv1d_kernel(%arg0: i32, %arg1: i32, %arg2: memref<1x1x16x130xf32, #tpu.memory_space<vmem>>, %arg3: memref<16x48xbf16, #tpu.memory_space<vmem>>, %arg4: memref<16x1xf32, #tpu.memory_space<vmem>>, %arg5: memref<1x16x128xf32, #tpu.memory_space<vmem>>) attributes {dimension_semantics = [#tpu.dimension_semantics<parallel>, #tpu.dimension_semantics<parallel>], iteration_bounds = array<i64: 2, 1>, scalar_prefetch = 0 : i64, scratch_operands = 0 : i64, tpu.core_type = #tpu.core_type<tc>, window_params = [{transform_indices = @transform_0, window_bounds = array<i64: 1, 1, 16, 130>}, {pipeline_mode = #tpu.pipeline_mode<synchronous>, transform_indices = @transform_1, window_bounds = array<i64: 16, 48>}, {pipeline_mode = #tpu.pipeline_mode<synchronous>, transform_indices = @transform_2, window_bounds = array<i64: 16, 1>}, {transform_indices = @transform_3, window_bounds = array<i64: 1, 16, 128>}]} {
    %c0 = arith.constant 0 : index
    %c0_0 = arith.constant 0 : index
    %c0_1 = arith.constant 0 : index
    %c0_2 = arith.constant 0 : index
    %0 = vector.load %arg2[%c0, %c0_0, %c0_1, %c0_2] : memref<1x1x16x130xf32, #tpu.memory_space<vmem>>, vector<1x1x16x130xf32>
    %1 = vector.shape_cast %0 : vector<1x1x16x130xf32> to vector<16x130xf32>
    %cst = arith.constant 0.000000e+00 : f32
    %2 = vector.broadcast %cst : f32 to vector<16x130xf32>
    %3 = arith.cmpf oge, %1, %2 : vector<16x130xf32>
    %cst_3 = arith.constant 0.00999999977 : f32
    %4 = vector.broadcast %cst_3 : f32 to vector<16x130xf32>
    %5 = arith.mulf %4, %1 : vector<16x130xf32>
    %6 = arith.select %3, %1, %5 : vector<16x130xi1>, vector<16x130xf32>
    %7 = vector.extract_strided_slice %6 {offsets = [0, 0], sizes = [16, 128], strides = [1, 1]} : vector<16x130xf32> to vector<16x128xf32>
    %8 = vector.extract_strided_slice %6 {offsets = [0, 1], sizes = [16, 128], strides = [1, 1]} : vector<16x130xf32> to vector<16x128xf32>
    %9 = vector.extract_strided_slice %6 {offsets = [0, 2], sizes = [16, 128], strides = [1, 1]} : vector<16x130xf32> to vector<16x128xf32>
    %10 = tpu.concatenate %7, %8, %9 in 0 : vector<16x128xf32>, vector<16x128xf32>, vector<16x128xf32> -> vector<48x128xf32>
    %c0_4 = arith.constant 0 : index
    %c0_5 = arith.constant 0 : index
    %11 = vector.load %arg3[%c0_4, %c0_5] : memref<16x48xbf16, #tpu.memory_space<vmem>>, vector<16x48xbf16>
    %12 = arith.truncf %10 : vector<48x128xf32> to vector<48x128xbf16>
    %cst_6 = arith.constant dense<0.000000e+00> : vector<16x128xf32>
    %13 = tpu.matmul %11, %12, %cst_6 {dimension_numbers = #tpu.dot_dimension_numbers<[1], [0], [0], [1], [0, 0, 1, 1], [], []>} : vector<16x48xbf16>, vector<48x128xbf16>, vector<16x128xf32> -> vector<16x128xf32>
    %c0_7 = arith.constant 0 : index
    %c0_8 = arith.constant 0 : index
    %14 = vector.load %arg4[%c0_7, %c0_8] : memref<16x1xf32, #tpu.memory_space<vmem>>, vector<16x1xf32>
    %15 = vector.broadcast %14 : vector<16x1xf32> to vector<16x128xf32>
    %16 = arith.addf %13, %15 : vector<16x128xf32>
    %17 = vector.extract_strided_slice %1 {offsets = [0, 1], sizes = [16, 128], strides = [1, 1]} : vector<16x130xf32> to vector<16x128xf32>
    %18 = arith.addf %16, %17 : vector<16x128xf32>
    %c0_9 = arith.constant 0 : index
    %c0_10 = arith.constant 0 : index
    %c0_11 = arith.constant 0 : index
    %19 = vector.load %arg5[%c0_9, %c0_10, %c0_11] : memref<1x16x128xf32, #tpu.memory_space<vmem>>, vector<1x16x128xf32>
    %20 = vector.shape_cast %19 : vector<1x16x128xf32> to vector<16x128xf32>
    %21 = vector.shape_cast %18 : vector<16x128xf32> to vector<1x16x128xf32>
    tpu.vector_store %arg5[%c0_9, %c0_10, %c0_11], %21 {strides = array<i32>} : memref<1x16x128xf32, #tpu.memory_space<vmem>>, vector<1x16x128xf32>,
    return
  }
  func.func @transform_0(%arg0: i32, %arg1: i32) -> (i32, i32, i32, i32) {
    %c0_i32 = arith.constant 0 : i32
    %c0_i32_0 = arith.constant 0 : i32
    %c0_i32_1 = arith.constant 0 : i32
    return %arg0, %arg1, %c0_i32, %c0_i32_0 : i32, i32, i32, i32
  }
  func.func @transform_1(%arg0: i32, %arg1: i32) -> (i32, i32) {
    %c0_i32 = arith.constant 0 : i32
    %c0_i32_0 = arith.constant 0 : i32
    %c0_i32_1 = arith.constant 0 : i32
    return %c0_i32, %c0_i32_0 : i32, i32
  }
  func.func @transform_2(%arg0: i32, %arg1: i32) -> (i32, i32) {
    %c0_i32 = arith.constant 0 : i32
    %c0_i32_0 = arith.constant 0 : i32
    %c0_i32_1 = arith.constant 0 : i32
    return %c0_i32, %c0_i32_0 : i32, i32
  }
  func.func @transform_3(%arg0: i32, %arg1: i32) -> (i32, i32, i32) {
    %c0_i32 = arith.constant 0 : i32
    %c0_i32_0 = arith.constant 0 : i32
    return %arg0, %c0_i32, %arg1 : i32, i32, i32
  }
}

module attributes {stable_mosaic.version = 11 : i64} {
  func.func @_conv1d_kernel(%arg0: i32, %arg1: i32, %arg2: memref<1x1x16x134xf32, #tpu.memory_space<vmem>>, %arg3: memref<16x48xbf16, #tpu.memory_space<vmem>>, %arg4: memref<16x1xf32, #tpu.memory_space<vmem>>, %arg5: memref<1x16x128xf32, #tpu.memory_space<vmem>>) attributes {dimension_semantics = [#tpu.dimension_semantics<parallel>, #tpu.dimension_semantics<parallel>], iteration_bounds = array<i64: 2, 1>, scalar_prefetch = 0 : i64, scratch_operands = 0 : i64, tpu.core_type = #tpu.core_type<tc>, window_params = [{transform_indices = @transform_0, window_bounds = array<i64: 1, 1, 16, 134>}, {pipeline_mode = #tpu.pipeline_mode<synchronous>, transform_indices = @transform_1, window_bounds = array<i64: 16, 48>}, {pipeline_mode = #tpu.pipeline_mode<synchronous>, transform_indices = @transform_2, window_bounds = array<i64: 16, 1>}, {transform_indices = @transform_3, window_bounds = array<i64: 1, 16, 128>}]} {
    %c0 = arith.constant 0 : index
    %c0_0 = arith.constant 0 : index
    %c0_1 = arith.constant 0 : index
    %c0_2 = arith.constant 0 : index
    %0 = vector.load %arg2[%c0, %c0_0, %c0_1, %c0_2] : memref<1x1x16x134xf32, #tpu.memory_space<vmem>>, vector<1x1x16x134xf32>
    %1 = vector.shape_cast %0 : vector<1x1x16x134xf32> to vector<16x134xf32>
    %cst = arith.constant 0.000000e+00 : f32
    %2 = vector.broadcast %cst : f32 to vector<16x134xf32>
    %3 = arith.cmpf oge, %1, %2 : vector<16x134xf32>
    %cst_3 = arith.constant 0.00999999977 : f32
    %4 = vector.broadcast %cst_3 : f32 to vector<16x134xf32>
    %5 = arith.mulf %4, %1 : vector<16x134xf32>
    %6 = arith.select %3, %1, %5 : vector<16x134xi1>, vector<16x134xf32>
    %7 = vector.extract_strided_slice %6 {offsets = [0, 0], sizes = [16, 128], strides = [1, 1]} : vector<16x134xf32> to vector<16x128xf32>
    %8 = vector.extract_strided_slice %6 {offsets = [0, 3], sizes = [16, 128], strides = [1, 1]} : vector<16x134xf32> to vector<16x128xf32>
    %9 = vector.extract_strided_slice %6 {offsets = [0, 6], sizes = [16, 128], strides = [1, 1]} : vector<16x134xf32> to vector<16x128xf32>
    %10 = tpu.concatenate %7, %8, %9 in 0 : vector<16x128xf32>, vector<16x128xf32>, vector<16x128xf32> -> vector<48x128xf32>
    %c0_4 = arith.constant 0 : index
    %c0_5 = arith.constant 0 : index
    %11 = vector.load %arg3[%c0_4, %c0_5] : memref<16x48xbf16, #tpu.memory_space<vmem>>, vector<16x48xbf16>
    %12 = arith.truncf %10 : vector<48x128xf32> to vector<48x128xbf16>
    %cst_6 = arith.constant dense<0.000000e+00> : vector<16x128xf32>
    %13 = tpu.matmul %11, %12, %cst_6 {dimension_numbers = #tpu.dot_dimension_numbers<[1], [0], [0], [1], [0, 0, 1, 1], [], []>} : vector<16x48xbf16>, vector<48x128xbf16>, vector<16x128xf32> -> vector<16x128xf32>
    %c0_7 = arith.constant 0 : index
    %c0_8 = arith.constant 0 : index
    %14 = vector.load %arg4[%c0_7, %c0_8] : memref<16x1xf32, #tpu.memory_space<vmem>>, vector<16x1xf32>
    %15 = vector.broadcast %14 : vector<16x1xf32> to vector<16x128xf32>
    %16 = arith.addf %13, %15 : vector<16x128xf32>
    %17 = vector.extract_strided_slice %1 {offsets = [0, 3], sizes = [16, 128], strides = [1, 1]} : vector<16x134xf32> to vector<16x128xf32>
    %18 = arith.addf %16, %17 : vector<16x128xf32>
    %c0_9 = arith.constant 0 : index
    %c0_10 = arith.constant 0 : index
    %c0_11 = arith.constant 0 : index
    %19 = vector.load %arg5[%c0_9, %c0_10, %c0_11] : memref<1x16x128xf32, #tpu.memory_space<vmem>>, vector<1x16x128xf32>
    %20 = vector.shape_cast %19 : vector<1x16x128xf32> to vector<16x128xf32>
    %21 = vector.shape_cast %18 : vector<16x128xf32> to vector<1x16x128xf32>
    tpu.vector_store %arg5[%c0_9, %c0_10, %c0_11], %21 {strides = array<i32>} : memref<1x16x128xf32, #tpu.memory_space<vmem>>, vector<1x16x128xf32>,
    return
  }
  func.func @transform_0(%arg0: i32, %arg1: i32) -> (i32, i32, i32, i32) {
    %c0_i32 = arith.constant 0 : i32
    %c0_i32_0 = arith.constant 0 : i32
    %c0_i32_1 = arith.constant 0 : i32
    return %arg0, %arg1, %c0_i32, %c0_i32_0 : i32, i32, i32, i32
  }
  func.func @transform_1(%arg0: i32, %arg1: i32) -> (i32, i32) {
    %c0_i32 = arith.constant 0 : i32
    %c0_i32_0 = arith.constant 0 : i32
    %c0_i32_1 = arith.constant 0 : i32
    return %c0_i32, %c0_i32_0 : i32, i32
  }
  func.func @transform_2(%arg0: i32, %arg1: i32) -> (i32, i32) {
    %c0_i32 = arith.constant 0 : i32
    %c0_i32_0 = arith.constant 0 : i32
    %c0_i32_1 = arith.constant 0 : i32
    return %c0_i32, %c0_i32_0 : i32, i32
  }
  func.func @transform_3(%arg0: i32, %arg1: i32) -> (i32, i32, i32) {
    %c0_i32 = arith.constant 0 : i32
    %c0_i32_0 = arith.constant 0 : i32
    return %arg0, %c0_i32, %arg1 : i32, i32, i32
  }
}

module attributes {stable_mosaic.version = 11 : i64} {
  func.func @_conv1d_kernel(%arg0: i32, %arg1: i32, %arg2: memref<1x1x16x132xf32, #tpu.memory_space<vmem>>, %arg3: memref<16x80xbf16, #tpu.memory_space<vmem>>, %arg4: memref<16x1xf32, #tpu.memory_space<vmem>>, %arg5: memref<1x16x128xf32, #tpu.memory_space<vmem>>) attributes {dimension_semantics = [#tpu.dimension_semantics<parallel>, #tpu.dimension_semantics<parallel>], iteration_bounds = array<i64: 2, 1>, scalar_prefetch = 0 : i64, scratch_operands = 0 : i64, tpu.core_type = #tpu.core_type<tc>, window_params = [{transform_indices = @transform_0, window_bounds = array<i64: 1, 1, 16, 132>}, {pipeline_mode = #tpu.pipeline_mode<synchronous>, transform_indices = @transform_1, window_bounds = array<i64: 16, 80>}, {pipeline_mode = #tpu.pipeline_mode<synchronous>, transform_indices = @transform_2, window_bounds = array<i64: 16, 1>}, {transform_indices = @transform_3, window_bounds = array<i64: 1, 16, 128>}]} {
    %c0 = arith.constant 0 : index
    %c0_0 = arith.constant 0 : index
    %c0_1 = arith.constant 0 : index
    %c0_2 = arith.constant 0 : index
    %0 = vector.load %arg2[%c0, %c0_0, %c0_1, %c0_2] : memref<1x1x16x132xf32, #tpu.memory_space<vmem>>, vector<1x1x16x132xf32>
    %1 = vector.shape_cast %0 : vector<1x1x16x132xf32> to vector<16x132xf32>
    %cst = arith.constant 0.000000e+00 : f32
    %2 = vector.broadcast %cst : f32 to vector<16x132xf32>
    %3 = arith.cmpf oge, %1, %2 : vector<16x132xf32>
    %cst_3 = arith.constant 0.00999999977 : f32
    %4 = vector.broadcast %cst_3 : f32 to vector<16x132xf32>
    %5 = arith.mulf %4, %1 : vector<16x132xf32>
    %6 = arith.select %3, %1, %5 : vector<16x132xi1>, vector<16x132xf32>
    %7 = vector.extract_strided_slice %6 {offsets = [0, 0], sizes = [16, 128], strides = [1, 1]} : vector<16x132xf32> to vector<16x128xf32>
    %8 = vector.extract_strided_slice %6 {offsets = [0, 1], sizes = [16, 128], strides = [1, 1]} : vector<16x132xf32> to vector<16x128xf32>
    %9 = vector.extract_strided_slice %6 {offsets = [0, 2], sizes = [16, 128], strides = [1, 1]} : vector<16x132xf32> to vector<16x128xf32>
    %10 = vector.extract_strided_slice %6 {offsets = [0, 3], sizes = [16, 128], strides = [1, 1]} : vector<16x132xf32> to vector<16x128xf32>
    %11 = vector.extract_strided_slice %6 {offsets = [0, 4], sizes = [16, 128], strides = [1, 1]} : vector<16x132xf32> to vector<16x128xf32>
    %12 = tpu.concatenate %7, %8, %9, %10, %11 in 0 : vector<16x128xf32>, vector<16x128xf32>, vector<16x128xf32>, vector<16x128xf32>, vector<16x128xf32> -> vector<80x128xf32>
    %c0_4 = arith.constant 0 : index
    %c0_5 = arith.constant 0 : index
    %13 = vector.load %arg3[%c0_4, %c0_5] : memref<16x80xbf16, #tpu.memory_space<vmem>>, vector<16x80xbf16>
    %14 = arith.truncf %12 : vector<80x128xf32> to vector<80x128xbf16>
    %cst_6 = arith.constant dense<0.000000e+00> : vector<16x128xf32>
    %15 = tpu.matmul %13, %14, %cst_6 {dimension_numbers = #tpu.dot_dimension_numbers<[1], [0], [0], [1], [0, 0, 1, 1], [], []>} : vector<16x80xbf16>, vector<80x128xbf16>, vector<16x128xf32> -> vector<16x128xf32>
    %c0_7 = arith.constant 0 : index
    %c0_8 = arith.constant 0 : index
    %16 = vector.load %arg4[%c0_7, %c0_8] : memref<16x1xf32, #tpu.memory_space<vmem>>, vector<16x1xf32>
    %17 = vector.broadcast %16 : vector<16x1xf32> to vector<16x128xf32>
    %18 = arith.addf %15, %17 : vector<16x128xf32>
    %19 = vector.extract_strided_slice %1 {offsets = [0, 2], sizes = [16, 128], strides = [1, 1]} : vector<16x132xf32> to vector<16x128xf32>
    %20 = arith.addf %18, %19 : vector<16x128xf32>
    %c0_9 = arith.constant 0 : index
    %c0_10 = arith.constant 0 : index
    %c0_11 = arith.constant 0 : index
    %21 = vector.load %arg5[%c0_9, %c0_10, %c0_11] : memref<1x16x128xf32, #tpu.memory_space<vmem>>, vector<1x16x128xf32>
    %22 = vector.shape_cast %21 : vector<1x16x128xf32> to vector<16x128xf32>
    %23 = vector.shape_cast %20 : vector<16x128xf32> to vector<1x16x128xf32>
    tpu.vector_store %arg5[%c0_9, %c0_10, %c0_11], %23 {strides = array<i32>} : memref<1x16x128xf32, #tpu.memory_space<vmem>>, vector<1x16x128xf32>,
    return
  }
  func.func @transform_0(%arg0: i32, %arg1: i32) -> (i32, i32, i32, i32) {
    %c0_i32 = arith.constant 0 : i32
    %c0_i32_0 = arith.constant 0 : i32
    %c0_i32_1 = arith.constant 0 : i32
    return %arg0, %arg1, %c0_i32, %c0_i32_0 : i32, i32, i32, i32
  }
  func.func @transform_1(%arg0: i32, %arg1: i32) -> (i32, i32) {
    %c0_i32 = arith.constant 0 : i32
    %c0_i32_0 = arith.constant 0 : i32
    %c0_i32_1 = arith.constant 0 : i32
    return %c0_i32, %c0_i32_0 : i32, i32
  }
  func.func @transform_2(%arg0: i32, %arg1: i32) -> (i32, i32) {
    %c0_i32 = arith.constant 0 : i32
    %c0_i32_0 = arith.constant 0 : i32
    %c0_i32_1 = arith.constant 0 : i32
    return %c0_i32, %c0_i32_0 : i32, i32
  }
  func.func @transform_3(%arg0: i32, %arg1: i32) -> (i32, i32, i32) {
    %c0_i32 = arith.constant 0 : i32
    %c0_i32_0 = arith.constant 0 : i32
    return %arg0, %c0_i32, %arg1 : i32, i32, i32
  }
}

module attributes {stable_mosaic.version = 11 : i64} {
  func.func @_conv1d_kernel(%arg0: i32, %arg1: i32, %arg2: memref<1x1x16x140xf32, #tpu.memory_space<vmem>>, %arg3: memref<16x80xbf16, #tpu.memory_space<vmem>>, %arg4: memref<16x1xf32, #tpu.memory_space<vmem>>, %arg5: memref<1x16x128xf32, #tpu.memory_space<vmem>>, %arg6: memref<1x16x128xf32, #tpu.memory_space<vmem>>) attributes {dimension_semantics = [#tpu.dimension_semantics<parallel>, #tpu.dimension_semantics<parallel>], iteration_bounds = array<i64: 2, 1>, scalar_prefetch = 0 : i64, scratch_operands = 0 : i64, tpu.core_type = #tpu.core_type<tc>, window_params = [{transform_indices = @transform_0, window_bounds = array<i64: 1, 1, 16, 140>}, {pipeline_mode = #tpu.pipeline_mode<synchronous>, transform_indices = @transform_1, window_bounds = array<i64: 16, 80>}, {pipeline_mode = #tpu.pipeline_mode<synchronous>, transform_indices = @transform_2, window_bounds = array<i64: 16, 1>}, {transform_indices = @transform_3, window_bounds = array<i64: 1, 16, 128>}, {transform_indices = @transform_4, window_bounds = array<i64: 1, 16, 128>}]} {
    %c0 = arith.constant 0 : index
    %c0_0 = arith.constant 0 : index
    %c0_1 = arith.constant 0 : index
    %c0_2 = arith.constant 0 : index
    %0 = vector.load %arg2[%c0, %c0_0, %c0_1, %c0_2] : memref<1x1x16x140xf32, #tpu.memory_space<vmem>>, vector<1x1x16x140xf32>
    %1 = vector.shape_cast %0 : vector<1x1x16x140xf32> to vector<16x140xf32>
    %cst = arith.constant 0.000000e+00 : f32
    %2 = vector.broadcast %cst : f32 to vector<16x140xf32>
    %3 = arith.cmpf oge, %1, %2 : vector<16x140xf32>
    %cst_3 = arith.constant 0.00999999977 : f32
    %4 = vector.broadcast %cst_3 : f32 to vector<16x140xf32>
    %5 = arith.mulf %4, %1 : vector<16x140xf32>
    %6 = arith.select %3, %1, %5 : vector<16x140xi1>, vector<16x140xf32>
    %7 = vector.extract_strided_slice %6 {offsets = [0, 0], sizes = [16, 128], strides = [1, 1]} : vector<16x140xf32> to vector<16x128xf32>
    %8 = vector.extract_strided_slice %6 {offsets = [0, 3], sizes = [16, 128], strides = [1, 1]} : vector<16x140xf32> to vector<16x128xf32>
    %9 = vector.extract_strided_slice %6 {offsets = [0, 6], sizes = [16, 128], strides = [1, 1]} : vector<16x140xf32> to vector<16x128xf32>
    %10 = vector.extract_strided_slice %6 {offsets = [0, 9], sizes = [16, 128], strides = [1, 1]} : vector<16x140xf32> to vector<16x128xf32>
    %11 = vector.extract_strided_slice %6 {offsets = [0, 12], sizes = [16, 128], strides = [1, 1]} : vector<16x140xf32> to vector<16x128xf32>
    %12 = tpu.concatenate %7, %8, %9, %10, %11 in 0 : vector<16x128xf32>, vector<16x128xf32>, vector<16x128xf32>, vector<16x128xf32>, vector<16x128xf32> -> vector<80x128xf32>
    %c0_4 = arith.constant 0 : index
    %c0_5 = arith.constant 0 : index
    %13 = vector.load %arg3[%c0_4, %c0_5] : memref<16x80xbf16, #tpu.memory_space<vmem>>, vector<16x80xbf16>
    %14 = arith.truncf %12 : vector<80x128xf32> to vector<80x128xbf16>
    %cst_6 = arith.constant dense<0.000000e+00> : vector<16x128xf32>
    %15 = tpu.matmul %13, %14, %cst_6 {dimension_numbers = #tpu.dot_dimension_numbers<[1], [0], [0], [1], [0, 0, 1, 1], [], []>} : vector<16x80xbf16>, vector<80x128xbf16>, vector<16x128xf32> -> vector<16x128xf32>
    %c0_7 = arith.constant 0 : index
    %c0_8 = arith.constant 0 : index
    %16 = vector.load %arg4[%c0_7, %c0_8] : memref<16x1xf32, #tpu.memory_space<vmem>>, vector<16x1xf32>
    %17 = vector.broadcast %16 : vector<16x1xf32> to vector<16x128xf32>
    %18 = arith.addf %15, %17 : vector<16x128xf32>
    %19 = vector.extract_strided_slice %1 {offsets = [0, 6], sizes = [16, 128], strides = [1, 1]} : vector<16x140xf32> to vector<16x128xf32>
    %20 = arith.addf %18, %19 : vector<16x128xf32>
    %c0_9 = arith.constant 0 : index
    %c0_10 = arith.constant 0 : index
    %c0_11 = arith.constant 0 : index
    %21 = vector.load %arg5[%c0_9, %c0_10, %c0_11] : memref<1x16x128xf32, #tpu.memory_space<vmem>>, vector<1x16x128xf32>
    %22 = vector.shape_cast %21 : vector<1x16x128xf32> to vector<16x128xf32>
    %23 = arith.addf %20, %22 : vector<16x128xf32>
    %cst_12 = arith.constant 5.000000e-01 : f32
    %24 = vector.broadcast %cst_12 : f32 to vector<16x128xf32>
    %25 = arith.mulf %23, %24 : vector<16x128xf32>
    %c0_13 = arith.constant 0 : index
    %c0_14 = arith.constant 0 : index
    %c0_15 = arith.constant 0 : index
    %26 = vector.load %arg6[%c0_13, %c0_14, %c0_15] : memref<1x16x128xf32, #tpu.memory_space<vmem>>, vector<1x16x128xf32>
    %27 = vector.shape_cast %26 : vector<1x16x128xf32> to vector<16x128xf32>
    %28 = vector.shape_cast %25 : vector<16x128xf32> to vector<1x16x128xf32>
    tpu.vector_store %arg6[%c0_13, %c0_14, %c0_15], %28 {strides = array<i32>} : memref<1x16x128xf32, #tpu.memory_space<vmem>>, vector<1x16x128xf32>,
    return
  }
  func.func @transform_0(%arg0: i32, %arg1: i32) -> (i32, i32, i32, i32) {
    %c0_i32 = arith.constant 0 : i32
    %c0_i32_0 = arith.constant 0 : i32
    %c0_i32_1 = arith.constant 0 : i32
    return %arg0, %arg1, %c0_i32, %c0_i32_0 : i32, i32, i32, i32
  }
  func.func @transform_1(%arg0: i32, %arg1: i32) -> (i32, i32) {
    %c0_i32 = arith.constant 0 : i32
    %c0_i32_0 = arith.constant 0 : i32
    %c0_i32_1 = arith.constant 0 : i32
    return %c0_i32, %c0_i32_0 : i32, i32
  }
  func.func @transform_2(%arg0: i32, %arg1: i32) -> (i32, i32) {
    %c0_i32 = arith.constant 0 : i32
    %c0_i32_0 = arith.constant 0 : i32
    %c0_i32_1 = arith.constant 0 : i32
    return %c0_i32, %c0_i32_0 : i32, i32
  }
  func.func @transform_3(%arg0: i32, %arg1: i32) -> (i32, i32, i32) {
    %c0_i32 = arith.constant 0 : i32
    %c0_i32_0 = arith.constant 0 : i32
    return %arg0, %c0_i32, %arg1 : i32, i32, i32
  }
  func.func @transform_4(%arg0: i32, %arg1: i32) -> (i32, i32, i32) {
    %c0_i32 = arith.constant 0 : i32
    %c0_i32_0 = arith.constant 0 : i32
    return %arg0, %c0_i32, %arg1 : i32, i32, i32
  }
}

module attributes {stable_mosaic.version = 11 : i64} {
  func.func @_conv_transpose_kernel(%arg0: i32, %arg1: i32, %arg2: memref<1x1x16x130xf32, #tpu.memory_space<vmem>>, %arg3: memref<4x8x16xbf16, #tpu.memory_space<vmem>>, %arg4: memref<8x1xf32, #tpu.memory_space<vmem>>, %arg5: memref<1x2x8x128xf32, #tpu.memory_space<vmem>>) attributes {dimension_semantics = [#tpu.dimension_semantics<parallel>, #tpu.dimension_semantics<parallel>], iteration_bounds = array<i64: 2, 1>, scalar_prefetch = 0 : i64, scratch_operands = 0 : i64, tpu.core_type = #tpu.core_type<tc>, window_params = [{transform_indices = @transform_0, window_bounds = array<i64: 1, 1, 16, 130>}, {pipeline_mode = #tpu.pipeline_mode<synchronous>, transform_indices = @transform_1, window_bounds = array<i64: 4, 8, 16>}, {pipeline_mode = #tpu.pipeline_mode<synchronous>, transform_indices = @transform_2, window_bounds = array<i64: 8, 1>}, {transform_indices = @transform_3, window_bounds = array<i64: 1, 2, 8, 128>}]} {
    %c0 = arith.constant 0 : index
    %c0_0 = arith.constant 0 : index
    %c0_1 = arith.constant 0 : index
    %c0_2 = arith.constant 0 : index
    %0 = vector.load %arg2[%c0, %c0_0, %c0_1, %c0_2] : memref<1x1x16x130xf32, #tpu.memory_space<vmem>>, vector<1x1x16x130xf32>
    %1 = vector.shape_cast %0 : vector<1x1x16x130xf32> to vector<16x130xf32>
    %cst = arith.constant 0.000000e+00 : f32
    %2 = vector.broadcast %cst : f32 to vector<16x130xf32>
    %3 = arith.cmpf oge, %1, %2 : vector<16x130xf32>
    %cst_3 = arith.constant 0.00999999977 : f32
    %4 = vector.broadcast %cst_3 : f32 to vector<16x130xf32>
    %5 = arith.mulf %4, %1 : vector<16x130xf32>
    %6 = arith.select %3, %1, %5 : vector<16x130xi1>, vector<16x130xf32>
    %7 = arith.truncf %6 : vector<16x130xf32> to vector<16x130xbf16>
    %c1 = arith.constant 1 : index
    %c0_4 = arith.constant 0 : index
    %c0_5 = arith.constant 0 : index
    %8 = vector.load %arg3[%c1, %c0_4, %c0_5] : memref<4x8x16xbf16, #tpu.memory_space<vmem>>, vector<1x8x16xbf16>
    %9 = vector.shape_cast %8 : vector<1x8x16xbf16> to vector<8x16xbf16>
    %10 = vector.extract_strided_slice %7 {offsets = [0, 1], sizes = [16, 128], strides = [1, 1]} : vector<16x130xbf16> to vector<16x128xbf16>
    %cst_6 = arith.constant dense<0.000000e+00> : vector<8x128xf32>
    %11 = tpu.matmul %9, %10, %cst_6 {dimension_numbers = #tpu.dot_dimension_numbers<[1], [0], [0], [1], [0, 0, 1, 1], [], []>} : vector<8x16xbf16>, vector<16x128xbf16>, vector<8x128xf32> -> vector<8x128xf32>
    %c3 = arith.constant 3 : index
    %c0_7 = arith.constant 0 : index
    %c0_8 = arith.constant 0 : index
    %12 = vector.load %arg3[%c3, %c0_7, %c0_8] : memref<4x8x16xbf16, #tpu.memory_space<vmem>>, vector<1x8x16xbf16>
    %13 = vector.shape_cast %12 : vector<1x8x16xbf16> to vector<8x16xbf16>
    %14 = vector.extract_strided_slice %7 {offsets = [0, 0], sizes = [16, 128], strides = [1, 1]} : vector<16x130xbf16> to vector<16x128xbf16>
    %cst_9 = arith.constant dense<0.000000e+00> : vector<8x128xf32>
    %15 = tpu.matmul %13, %14, %cst_9 {dimension_numbers = #tpu.dot_dimension_numbers<[1], [0], [0], [1], [0, 0, 1, 1], [], []>} : vector<8x16xbf16>, vector<16x128xbf16>, vector<8x128xf32> -> vector<8x128xf32>
    %16 = arith.addf %11, %15 : vector<8x128xf32>
    %c0_10 = arith.constant 0 : index
    %c0_11 = arith.constant 0 : index
    %17 = vector.load %arg4[%c0_10, %c0_11] : memref<8x1xf32, #tpu.memory_space<vmem>>, vector<8x1xf32>
    %18 = vector.broadcast %17 : vector<8x1xf32> to vector<8x128xf32>
    %19 = arith.addf %16, %18 : vector<8x128xf32>
    %c0_12 = arith.constant 0 : index
    %c0_13 = arith.constant 0 : index
    %c0_14 = arith.constant 0 : index
    %c0_15 = arith.constant 0 : index
    %20 = vector.load %arg5[%c0_12, %c0_13, %c0_14, %c0_15] : memref<1x2x8x128xf32, #tpu.memory_space<vmem>>, vector<1x1x8x128xf32>
    %21 = vector.shape_cast %20 : vector<1x1x8x128xf32> to vector<8x128xf32>
    %22 = vector.shape_cast %19 : vector<8x128xf32> to vector<1x1x8x128xf32>
    tpu.vector_store %arg5[%c0_12, %c0_13, %c0_14, %c0_15], %22 {strides = array<i32>} : memref<1x2x8x128xf32, #tpu.memory_space<vmem>>, vector<1x1x8x128xf32>,
    %c0_16 = arith.constant 0 : index
    %c0_17 = arith.constant 0 : index
    %c0_18 = arith.constant 0 : index
    %23 = vector.load %arg3[%c0_16, %c0_17, %c0_18] : memref<4x8x16xbf16, #tpu.memory_space<vmem>>, vector<1x8x16xbf16>
    %24 = vector.shape_cast %23 : vector<1x8x16xbf16> to vector<8x16xbf16>
    %25 = vector.extract_strided_slice %7 {offsets = [0, 2], sizes = [16, 128], strides = [1, 1]} : vector<16x130xbf16> to vector<16x128xbf16>
    %cst_19 = arith.constant dense<0.000000e+00> : vector<8x128xf32>
    %26 = tpu.matmul %24, %25, %cst_19 {dimension_numbers = #tpu.dot_dimension_numbers<[1], [0], [0], [1], [0, 0, 1, 1], [], []>} : vector<8x16xbf16>, vector<16x128xbf16>, vector<8x128xf32> -> vector<8x128xf32>
    %c2 = arith.constant 2 : index
    %c0_20 = arith.constant 0 : index
    %c0_21 = arith.constant 0 : index
    %27 = vector.load %arg3[%c2, %c0_20, %c0_21] : memref<4x8x16xbf16, #tpu.memory_space<vmem>>, vector<1x8x16xbf16>
    %28 = vector.shape_cast %27 : vector<1x8x16xbf16> to vector<8x16xbf16>
    %29 = vector.extract_strided_slice %7 {offsets = [0, 1], sizes = [16, 128], strides = [1, 1]} : vector<16x130xbf16> to vector<16x128xbf16>
    %cst_22 = arith.constant dense<0.000000e+00> : vector<8x128xf32>
    %30 = tpu.matmul %28, %29, %cst_22 {dimension_numbers = #tpu.dot_dimension_numbers<[1], [0], [0], [1], [0, 0, 1, 1], [], []>} : vector<8x16xbf16>, vector<16x128xbf16>, vector<8x128xf32> -> vector<8x128xf32>
    %31 = arith.addf %26, %30 : vector<8x128xf32>
    %c0_23 = arith.constant 0 : index
    %c0_24 = arith.constant 0 : index
    %32 = vector.load %arg4[%c0_23, %c0_24] : memref<8x1xf32, #tpu.memory_space<vmem>>, vector<8x1xf32>
    %33 = vector.broadcast %32 : vector<8x1xf32> to vector<8x128xf32>
    %34 = arith.addf %31, %33 : vector<8x128xf32>
    %c0_25 = arith.constant 0 : index
    %c1_26 = arith.constant 1 : index
    %c0_27 = arith.constant 0 : index
    %c0_28 = arith.constant 0 : index
    %35 = vector.load %arg5[%c0_25, %c1_26, %c0_27, %c0_28] : memref<1x2x8x128xf32, #tpu.memory_space<vmem>>, vector<1x1x8x128xf32>
    %36 = vector.shape_cast %35 : vector<1x1x8x128xf32> to vector<8x128xf32>
    %37 = vector.shape_cast %34 : vector<8x128xf32> to vector<1x1x8x128xf32>
    tpu.vector_store %arg5[%c0_25, %c1_26, %c0_27, %c0_28], %37 {strides = array<i32>} : memref<1x2x8x128xf32, #tpu.memory_space<vmem>>, vector<1x1x8x128xf32>,
    return
  }
  func.func @transform_0(%arg0: i32, %arg1: i32) -> (i32, i32, i32, i32) {
    %c0_i32 = arith.constant 0 : i32
    %c0_i32_0 = arith.constant 0 : i32
    %c0_i32_1 = arith.constant 0 : i32
    return %arg0, %arg1, %c0_i32, %c0_i32_0 : i32, i32, i32, i32
  }
  func.func @transform_1(%arg0: i32, %arg1: i32) -> (i32, i32, i32) {
    %c0_i32 = arith.constant 0 : i32
    %c0_i32_0 = arith.constant 0 : i32
    %c0_i32_1 = arith.constant 0 : i32
    %c0_i32_2 = arith.constant 0 : i32
    return %c0_i32, %c0_i32_0, %c0_i32_1 : i32, i32, i32
  }
  func.func @transform_2(%arg0: i32, %arg1: i32) -> (i32, i32) {
    %c0_i32 = arith.constant 0 : i32
    %c0_i32_0 = arith.constant 0 : i32
    %c0_i32_1 = arith.constant 0 : i32
    return %c0_i32, %c0_i32_0 : i32, i32
  }
  func.func @transform_3(%arg0: i32, %arg1: i32) -> (i32, i32, i32, i32) {
    %c0_i32 = arith.constant 0 : i32
    %c0_i32_0 = arith.constant 0 : i32
    %c0_i32_1 = arith.constant 0 : i32
    return %arg0, %c0_i32, %c0_i32_0, %arg1 : i32, i32, i32, i32
  }
}

module attributes {stable_mosaic.version = 11 : i64} {
  func.func @_conv1d_kernel(%arg0: i32, %arg1: i32, %arg2: memref<1x1x8x130xf32, #tpu.memory_space<vmem>>, %arg3: memref<8x24xbf16, #tpu.memory_space<vmem>>, %arg4: memref<8x1xf32, #tpu.memory_space<vmem>>, %arg5: memref<1x8x128xf32, #tpu.memory_space<vmem>>) attributes {dimension_semantics = [#tpu.dimension_semantics<parallel>, #tpu.dimension_semantics<parallel>], iteration_bounds = array<i64: 2, 1>, scalar_prefetch = 0 : i64, scratch_operands = 0 : i64, tpu.core_type = #tpu.core_type<tc>, window_params = [{transform_indices = @transform_0, window_bounds = array<i64: 1, 1, 8, 130>}, {pipeline_mode = #tpu.pipeline_mode<synchronous>, transform_indices = @transform_1, window_bounds = array<i64: 8, 24>}, {pipeline_mode = #tpu.pipeline_mode<synchronous>, transform_indices = @transform_2, window_bounds = array<i64: 8, 1>}, {transform_indices = @transform_3, window_bounds = array<i64: 1, 8, 128>}]} {
    %c0 = arith.constant 0 : index
    %c0_0 = arith.constant 0 : index
    %c0_1 = arith.constant 0 : index
    %c0_2 = arith.constant 0 : index
    %0 = vector.load %arg2[%c0, %c0_0, %c0_1, %c0_2] : memref<1x1x8x130xf32, #tpu.memory_space<vmem>>, vector<1x1x8x130xf32>
    %1 = vector.shape_cast %0 : vector<1x1x8x130xf32> to vector<8x130xf32>
    %cst = arith.constant 0.000000e+00 : f32
    %2 = vector.broadcast %cst : f32 to vector<8x130xf32>
    %3 = arith.cmpf oge, %1, %2 : vector<8x130xf32>
    %cst_3 = arith.constant 0.00999999977 : f32
    %4 = vector.broadcast %cst_3 : f32 to vector<8x130xf32>
    %5 = arith.mulf %4, %1 : vector<8x130xf32>
    %6 = arith.select %3, %1, %5 : vector<8x130xi1>, vector<8x130xf32>
    %7 = vector.extract_strided_slice %6 {offsets = [0, 0], sizes = [8, 128], strides = [1, 1]} : vector<8x130xf32> to vector<8x128xf32>
    %8 = vector.extract_strided_slice %6 {offsets = [0, 1], sizes = [8, 128], strides = [1, 1]} : vector<8x130xf32> to vector<8x128xf32>
    %9 = vector.extract_strided_slice %6 {offsets = [0, 2], sizes = [8, 128], strides = [1, 1]} : vector<8x130xf32> to vector<8x128xf32>
    %10 = tpu.concatenate %7, %8, %9 in 0 : vector<8x128xf32>, vector<8x128xf32>, vector<8x128xf32> -> vector<24x128xf32>
    %c0_4 = arith.constant 0 : index
    %c0_5 = arith.constant 0 : index
    %11 = vector.load %arg3[%c0_4, %c0_5] : memref<8x24xbf16, #tpu.memory_space<vmem>>, vector<8x24xbf16>
    %12 = arith.truncf %10 : vector<24x128xf32> to vector<24x128xbf16>
    %cst_6 = arith.constant dense<0.000000e+00> : vector<8x128xf32>
    %13 = tpu.matmul %11, %12, %cst_6 {dimension_numbers = #tpu.dot_dimension_numbers<[1], [0], [0], [1], [0, 0, 1, 1], [], []>} : vector<8x24xbf16>, vector<24x128xbf16>, vector<8x128xf32> -> vector<8x128xf32>
    %c0_7 = arith.constant 0 : index
    %c0_8 = arith.constant 0 : index
    %14 = vector.load %arg4[%c0_7, %c0_8] : memref<8x1xf32, #tpu.memory_space<vmem>>, vector<8x1xf32>
    %15 = vector.broadcast %14 : vector<8x1xf32> to vector<8x128xf32>
    %16 = arith.addf %13, %15 : vector<8x128xf32>
    %17 = vector.extract_strided_slice %1 {offsets = [0, 1], sizes = [8, 128], strides = [1, 1]} : vector<8x130xf32> to vector<8x128xf32>
    %18 = arith.addf %16, %17 : vector<8x128xf32>
    %c0_9 = arith.constant 0 : index
    %c0_10 = arith.constant 0 : index
    %c0_11 = arith.constant 0 : index
    %19 = vector.load %arg5[%c0_9, %c0_10, %c0_11] : memref<1x8x128xf32, #tpu.memory_space<vmem>>, vector<1x8x128xf32>
    %20 = vector.shape_cast %19 : vector<1x8x128xf32> to vector<8x128xf32>
    %21 = vector.shape_cast %18 : vector<8x128xf32> to vector<1x8x128xf32>
    tpu.vector_store %arg5[%c0_9, %c0_10, %c0_11], %21 {strides = array<i32>} : memref<1x8x128xf32, #tpu.memory_space<vmem>>, vector<1x8x128xf32>,
    return
  }
  func.func @transform_0(%arg0: i32, %arg1: i32) -> (i32, i32, i32, i32) {
    %c0_i32 = arith.constant 0 : i32
    %c0_i32_0 = arith.constant 0 : i32
    %c0_i32_1 = arith.constant 0 : i32
    return %arg0, %arg1, %c0_i32, %c0_i32_0 : i32, i32, i32, i32
  }
  func.func @transform_1(%arg0: i32, %arg1: i32) -> (i32, i32) {
    %c0_i32 = arith.constant 0 : i32
    %c0_i32_0 = arith.constant 0 : i32
    %c0_i32_1 = arith.constant 0 : i32
    return %c0_i32, %c0_i32_0 : i32, i32
  }
  func.func @transform_2(%arg0: i32, %arg1: i32) -> (i32, i32) {
    %c0_i32 = arith.constant 0 : i32
    %c0_i32_0 = arith.constant 0 : i32
    %c0_i32_1 = arith.constant 0 : i32
    return %c0_i32, %c0_i32_0 : i32, i32
  }
  func.func @transform_3(%arg0: i32, %arg1: i32) -> (i32, i32, i32) {
    %c0_i32 = arith.constant 0 : i32
    %c0_i32_0 = arith.constant 0 : i32
    return %arg0, %c0_i32, %arg1 : i32, i32, i32
  }
}

module attributes {stable_mosaic.version = 11 : i64} {
  func.func @_conv1d_kernel(%arg0: i32, %arg1: i32, %arg2: memref<1x1x8x134xf32, #tpu.memory_space<vmem>>, %arg3: memref<8x24xbf16, #tpu.memory_space<vmem>>, %arg4: memref<8x1xf32, #tpu.memory_space<vmem>>, %arg5: memref<1x8x128xf32, #tpu.memory_space<vmem>>) attributes {dimension_semantics = [#tpu.dimension_semantics<parallel>, #tpu.dimension_semantics<parallel>], iteration_bounds = array<i64: 2, 1>, scalar_prefetch = 0 : i64, scratch_operands = 0 : i64, tpu.core_type = #tpu.core_type<tc>, window_params = [{transform_indices = @transform_0, window_bounds = array<i64: 1, 1, 8, 134>}, {pipeline_mode = #tpu.pipeline_mode<synchronous>, transform_indices = @transform_1, window_bounds = array<i64: 8, 24>}, {pipeline_mode = #tpu.pipeline_mode<synchronous>, transform_indices = @transform_2, window_bounds = array<i64: 8, 1>}, {transform_indices = @transform_3, window_bounds = array<i64: 1, 8, 128>}]} {
    %c0 = arith.constant 0 : index
    %c0_0 = arith.constant 0 : index
    %c0_1 = arith.constant 0 : index
    %c0_2 = arith.constant 0 : index
    %0 = vector.load %arg2[%c0, %c0_0, %c0_1, %c0_2] : memref<1x1x8x134xf32, #tpu.memory_space<vmem>>, vector<1x1x8x134xf32>
    %1 = vector.shape_cast %0 : vector<1x1x8x134xf32> to vector<8x134xf32>
    %cst = arith.constant 0.000000e+00 : f32
    %2 = vector.broadcast %cst : f32 to vector<8x134xf32>
    %3 = arith.cmpf oge, %1, %2 : vector<8x134xf32>
    %cst_3 = arith.constant 0.00999999977 : f32
    %4 = vector.broadcast %cst_3 : f32 to vector<8x134xf32>
    %5 = arith.mulf %4, %1 : vector<8x134xf32>
    %6 = arith.select %3, %1, %5 : vector<8x134xi1>, vector<8x134xf32>
    %7 = vector.extract_strided_slice %6 {offsets = [0, 0], sizes = [8, 128], strides = [1, 1]} : vector<8x134xf32> to vector<8x128xf32>
    %8 = vector.extract_strided_slice %6 {offsets = [0, 3], sizes = [8, 128], strides = [1, 1]} : vector<8x134xf32> to vector<8x128xf32>
    %9 = vector.extract_strided_slice %6 {offsets = [0, 6], sizes = [8, 128], strides = [1, 1]} : vector<8x134xf32> to vector<8x128xf32>
    %10 = tpu.concatenate %7, %8, %9 in 0 : vector<8x128xf32>, vector<8x128xf32>, vector<8x128xf32> -> vector<24x128xf32>
    %c0_4 = arith.constant 0 : index
    %c0_5 = arith.constant 0 : index
    %11 = vector.load %arg3[%c0_4, %c0_5] : memref<8x24xbf16, #tpu.memory_space<vmem>>, vector<8x24xbf16>
    %12 = arith.truncf %10 : vector<24x128xf32> to vector<24x128xbf16>
    %cst_6 = arith.constant dense<0.000000e+00> : vector<8x128xf32>
    %13 = tpu.matmul %11, %12, %cst_6 {dimension_numbers = #tpu.dot_dimension_numbers<[1], [0], [0], [1], [0, 0, 1, 1], [], []>} : vector<8x24xbf16>, vector<24x128xbf16>, vector<8x128xf32> -> vector<8x128xf32>
    %c0_7 = arith.constant 0 : index
    %c0_8 = arith.constant 0 : index
    %14 = vector.load %arg4[%c0_7, %c0_8] : memref<8x1xf32, #tpu.memory_space<vmem>>, vector<8x1xf32>
    %15 = vector.broadcast %14 : vector<8x1xf32> to vector<8x128xf32>
    %16 = arith.addf %13, %15 : vector<8x128xf32>
    %17 = vector.extract_strided_slice %1 {offsets = [0, 3], sizes = [8, 128], strides = [1, 1]} : vector<8x134xf32> to vector<8x128xf32>
    %18 = arith.addf %16, %17 : vector<8x128xf32>
    %c0_9 = arith.constant 0 : index
    %c0_10 = arith.constant 0 : index
    %c0_11 = arith.constant 0 : index
    %19 = vector.load %arg5[%c0_9, %c0_10, %c0_11] : memref<1x8x128xf32, #tpu.memory_space<vmem>>, vector<1x8x128xf32>
    %20 = vector.shape_cast %19 : vector<1x8x128xf32> to vector<8x128xf32>
    %21 = vector.shape_cast %18 : vector<8x128xf32> to vector<1x8x128xf32>
    tpu.vector_store %arg5[%c0_9, %c0_10, %c0_11], %21 {strides = array<i32>} : memref<1x8x128xf32, #tpu.memory_space<vmem>>, vector<1x8x128xf32>,
    return
  }
  func.func @transform_0(%arg0: i32, %arg1: i32) -> (i32, i32, i32, i32) {
    %c0_i32 = arith.constant 0 : i32
    %c0_i32_0 = arith.constant 0 : i32
    %c0_i32_1 = arith.constant 0 : i32
    return %arg0, %arg1, %c0_i32, %c0_i32_0 : i32, i32, i32, i32
  }
  func.func @transform_1(%arg0: i32, %arg1: i32) -> (i32, i32) {
    %c0_i32 = arith.constant 0 : i32
    %c0_i32_0 = arith.constant 0 : i32
    %c0_i32_1 = arith.constant 0 : i32
    return %c0_i32, %c0_i32_0 : i32, i32
  }
  func.func @transform_2(%arg0: i32, %arg1: i32) -> (i32, i32) {
    %c0_i32 = arith.constant 0 : i32
    %c0_i32_0 = arith.constant 0 : i32
    %c0_i32_1 = arith.constant 0 : i32
    return %c0_i32, %c0_i32_0 : i32, i32
  }
  func.func @transform_3(%arg0: i32, %arg1: i32) -> (i32, i32, i32) {
    %c0_i32 = arith.constant 0 : i32
    %c0_i32_0 = arith.constant 0 : i32
    return %arg0, %c0_i32, %arg1 : i32, i32, i32
  }
}

module attributes {stable_mosaic.version = 11 : i64} {
  func.func @_conv1d_kernel(%arg0: i32, %arg1: i32, %arg2: memref<1x1x8x132xf32, #tpu.memory_space<vmem>>, %arg3: memref<8x40xbf16, #tpu.memory_space<vmem>>, %arg4: memref<8x1xf32, #tpu.memory_space<vmem>>, %arg5: memref<1x8x128xf32, #tpu.memory_space<vmem>>) attributes {dimension_semantics = [#tpu.dimension_semantics<parallel>, #tpu.dimension_semantics<parallel>], iteration_bounds = array<i64: 2, 1>, scalar_prefetch = 0 : i64, scratch_operands = 0 : i64, tpu.core_type = #tpu.core_type<tc>, window_params = [{transform_indices = @transform_0, window_bounds = array<i64: 1, 1, 8, 132>}, {pipeline_mode = #tpu.pipeline_mode<synchronous>, transform_indices = @transform_1, window_bounds = array<i64: 8, 40>}, {pipeline_mode = #tpu.pipeline_mode<synchronous>, transform_indices = @transform_2, window_bounds = array<i64: 8, 1>}, {transform_indices = @transform_3, window_bounds = array<i64: 1, 8, 128>}]} {
    %c0 = arith.constant 0 : index
    %c0_0 = arith.constant 0 : index
    %c0_1 = arith.constant 0 : index
    %c0_2 = arith.constant 0 : index
    %0 = vector.load %arg2[%c0, %c0_0, %c0_1, %c0_2] : memref<1x1x8x132xf32, #tpu.memory_space<vmem>>, vector<1x1x8x132xf32>
    %1 = vector.shape_cast %0 : vector<1x1x8x132xf32> to vector<8x132xf32>
    %cst = arith.constant 0.000000e+00 : f32
    %2 = vector.broadcast %cst : f32 to vector<8x132xf32>
    %3 = arith.cmpf oge, %1, %2 : vector<8x132xf32>
    %cst_3 = arith.constant 0.00999999977 : f32
    %4 = vector.broadcast %cst_3 : f32 to vector<8x132xf32>
    %5 = arith.mulf %4, %1 : vector<8x132xf32>
    %6 = arith.select %3, %1, %5 : vector<8x132xi1>, vector<8x132xf32>
    %7 = vector.extract_strided_slice %6 {offsets = [0, 0], sizes = [8, 128], strides = [1, 1]} : vector<8x132xf32> to vector<8x128xf32>
    %8 = vector.extract_strided_slice %6 {offsets = [0, 1], sizes = [8, 128], strides = [1, 1]} : vector<8x132xf32> to vector<8x128xf32>
    %9 = vector.extract_strided_slice %6 {offsets = [0, 2], sizes = [8, 128], strides = [1, 1]} : vector<8x132xf32> to vector<8x128xf32>
    %10 = vector.extract_strided_slice %6 {offsets = [0, 3], sizes = [8, 128], strides = [1, 1]} : vector<8x132xf32> to vector<8x128xf32>
    %11 = vector.extract_strided_slice %6 {offsets = [0, 4], sizes = [8, 128], strides = [1, 1]} : vector<8x132xf32> to vector<8x128xf32>
    %12 = tpu.concatenate %7, %8, %9, %10, %11 in 0 : vector<8x128xf32>, vector<8x128xf32>, vector<8x128xf32>, vector<8x128xf32>, vector<8x128xf32> -> vector<40x128xf32>
    %c0_4 = arith.constant 0 : index
    %c0_5 = arith.constant 0 : index
    %13 = vector.load %arg3[%c0_4, %c0_5] : memref<8x40xbf16, #tpu.memory_space<vmem>>, vector<8x40xbf16>
    %14 = arith.truncf %12 : vector<40x128xf32> to vector<40x128xbf16>
    %cst_6 = arith.constant dense<0.000000e+00> : vector<8x128xf32>
    %15 = tpu.matmul %13, %14, %cst_6 {dimension_numbers = #tpu.dot_dimension_numbers<[1], [0], [0], [1], [0, 0, 1, 1], [], []>} : vector<8x40xbf16>, vector<40x128xbf16>, vector<8x128xf32> -> vector<8x128xf32>
    %c0_7 = arith.constant 0 : index
    %c0_8 = arith.constant 0 : index
    %16 = vector.load %arg4[%c0_7, %c0_8] : memref<8x1xf32, #tpu.memory_space<vmem>>, vector<8x1xf32>
    %17 = vector.broadcast %16 : vector<8x1xf32> to vector<8x128xf32>
    %18 = arith.addf %15, %17 : vector<8x128xf32>
    %19 = vector.extract_strided_slice %1 {offsets = [0, 2], sizes = [8, 128], strides = [1, 1]} : vector<8x132xf32> to vector<8x128xf32>
    %20 = arith.addf %18, %19 : vector<8x128xf32>
    %c0_9 = arith.constant 0 : index
    %c0_10 = arith.constant 0 : index
    %c0_11 = arith.constant 0 : index
    %21 = vector.load %arg5[%c0_9, %c0_10, %c0_11] : memref<1x8x128xf32, #tpu.memory_space<vmem>>, vector<1x8x128xf32>
    %22 = vector.shape_cast %21 : vector<1x8x128xf32> to vector<8x128xf32>
    %23 = vector.shape_cast %20 : vector<8x128xf32> to vector<1x8x128xf32>
    tpu.vector_store %arg5[%c0_9, %c0_10, %c0_11], %23 {strides = array<i32>} : memref<1x8x128xf32, #tpu.memory_space<vmem>>, vector<1x8x128xf32>,
    return
  }
  func.func @transform_0(%arg0: i32, %arg1: i32) -> (i32, i32, i32, i32) {
    %c0_i32 = arith.constant 0 : i32
    %c0_i32_0 = arith.constant 0 : i32
    %c0_i32_1 = arith.constant 0 : i32
    return %arg0, %arg1, %c0_i32, %c0_i32_0 : i32, i32, i32, i32
  }
  func.func @transform_1(%arg0: i32, %arg1: i32) -> (i32, i32) {
    %c0_i32 = arith.constant 0 : i32
    %c0_i32_0 = arith.constant 0 : i32
    %c0_i32_1 = arith.constant 0 : i32
    return %c0_i32, %c0_i32_0 : i32, i32
  }
  func.func @transform_2(%arg0: i32, %arg1: i32) -> (i32, i32) {
    %c0_i32 = arith.constant 0 : i32
    %c0_i32_0 = arith.constant 0 : i32
    %c0_i32_1 = arith.constant 0 : i32
    return %c0_i32, %c0_i32_0 : i32, i32
  }
  func.func @transform_3(%arg0: i32, %arg1: i32) -> (i32, i32, i32) {
    %c0_i32 = arith.constant 0 : i32
    %c0_i32_0 = arith.constant 0 : i32
    return %arg0, %c0_i32, %arg1 : i32, i32, i32
  }
}

module attributes {stable_mosaic.version = 11 : i64} {
  func.func @_conv1d_kernel(%arg0: i32, %arg1: i32, %arg2: memref<1x1x8x140xf32, #tpu.memory_space<vmem>>, %arg3: memref<8x40xbf16, #tpu.memory_space<vmem>>, %arg4: memref<8x1xf32, #tpu.memory_space<vmem>>, %arg5: memref<1x8x128xf32, #tpu.memory_space<vmem>>, %arg6: memref<1x8x128xf32, #tpu.memory_space<vmem>>) attributes {dimension_semantics = [#tpu.dimension_semantics<parallel>, #tpu.dimension_semantics<parallel>], iteration_bounds = array<i64: 2, 1>, scalar_prefetch = 0 : i64, scratch_operands = 0 : i64, tpu.core_type = #tpu.core_type<tc>, window_params = [{transform_indices = @transform_0, window_bounds = array<i64: 1, 1, 8, 140>}, {pipeline_mode = #tpu.pipeline_mode<synchronous>, transform_indices = @transform_1, window_bounds = array<i64: 8, 40>}, {pipeline_mode = #tpu.pipeline_mode<synchronous>, transform_indices = @transform_2, window_bounds = array<i64: 8, 1>}, {transform_indices = @transform_3, window_bounds = array<i64: 1, 8, 128>}, {transform_indices = @transform_4, window_bounds = array<i64: 1, 8, 128>}]} {
    %c0 = arith.constant 0 : index
    %c0_0 = arith.constant 0 : index
    %c0_1 = arith.constant 0 : index
    %c0_2 = arith.constant 0 : index
    %0 = vector.load %arg2[%c0, %c0_0, %c0_1, %c0_2] : memref<1x1x8x140xf32, #tpu.memory_space<vmem>>, vector<1x1x8x140xf32>
    %1 = vector.shape_cast %0 : vector<1x1x8x140xf32> to vector<8x140xf32>
    %cst = arith.constant 0.000000e+00 : f32
    %2 = vector.broadcast %cst : f32 to vector<8x140xf32>
    %3 = arith.cmpf oge, %1, %2 : vector<8x140xf32>
    %cst_3 = arith.constant 0.00999999977 : f32
    %4 = vector.broadcast %cst_3 : f32 to vector<8x140xf32>
    %5 = arith.mulf %4, %1 : vector<8x140xf32>
    %6 = arith.select %3, %1, %5 : vector<8x140xi1>, vector<8x140xf32>
    %7 = vector.extract_strided_slice %6 {offsets = [0, 0], sizes = [8, 128], strides = [1, 1]} : vector<8x140xf32> to vector<8x128xf32>
    %8 = vector.extract_strided_slice %6 {offsets = [0, 3], sizes = [8, 128], strides = [1, 1]} : vector<8x140xf32> to vector<8x128xf32>
    %9 = vector.extract_strided_slice %6 {offsets = [0, 6], sizes = [8, 128], strides = [1, 1]} : vector<8x140xf32> to vector<8x128xf32>
    %10 = vector.extract_strided_slice %6 {offsets = [0, 9], sizes = [8, 128], strides = [1, 1]} : vector<8x140xf32> to vector<8x128xf32>
    %11 = vector.extract_strided_slice %6 {offsets = [0, 12], sizes = [8, 128], strides = [1, 1]} : vector<8x140xf32> to vector<8x128xf32>
    %12 = tpu.concatenate %7, %8, %9, %10, %11 in 0 : vector<8x128xf32>, vector<8x128xf32>, vector<8x128xf32>, vector<8x128xf32>, vector<8x128xf32> -> vector<40x128xf32>
    %c0_4 = arith.constant 0 : index
    %c0_5 = arith.constant 0 : index
    %13 = vector.load %arg3[%c0_4, %c0_5] : memref<8x40xbf16, #tpu.memory_space<vmem>>, vector<8x40xbf16>
    %14 = arith.truncf %12 : vector<40x128xf32> to vector<40x128xbf16>
    %cst_6 = arith.constant dense<0.000000e+00> : vector<8x128xf32>
    %15 = tpu.matmul %13, %14, %cst_6 {dimension_numbers = #tpu.dot_dimension_numbers<[1], [0], [0], [1], [0, 0, 1, 1], [], []>} : vector<8x40xbf16>, vector<40x128xbf16>, vector<8x128xf32> -> vector<8x128xf32>
    %c0_7 = arith.constant 0 : index
    %c0_8 = arith.constant 0 : index
    %16 = vector.load %arg4[%c0_7, %c0_8] : memref<8x1xf32, #tpu.memory_space<vmem>>, vector<8x1xf32>
    %17 = vector.broadcast %16 : vector<8x1xf32> to vector<8x128xf32>
    %18 = arith.addf %15, %17 : vector<8x128xf32>
    %19 = vector.extract_strided_slice %1 {offsets = [0, 6], sizes = [8, 128], strides = [1, 1]} : vector<8x140xf32> to vector<8x128xf32>
    %20 = arith.addf %18, %19 : vector<8x128xf32>
    %c0_9 = arith.constant 0 : index
    %c0_10 = arith.constant 0 : index
    %c0_11 = arith.constant 0 : index
    %21 = vector.load %arg5[%c0_9, %c0_10, %c0_11] : memref<1x8x128xf32, #tpu.memory_space<vmem>>, vector<1x8x128xf32>
    %22 = vector.shape_cast %21 : vector<1x8x128xf32> to vector<8x128xf32>
    %23 = arith.addf %20, %22 : vector<8x128xf32>
    %cst_12 = arith.constant 5.000000e-01 : f32
    %24 = vector.broadcast %cst_12 : f32 to vector<8x128xf32>
    %25 = arith.mulf %23, %24 : vector<8x128xf32>
    %c0_13 = arith.constant 0 : index
    %c0_14 = arith.constant 0 : index
    %c0_15 = arith.constant 0 : index
    %26 = vector.load %arg6[%c0_13, %c0_14, %c0_15] : memref<1x8x128xf32, #tpu.memory_space<vmem>>, vector<1x8x128xf32>
    %27 = vector.shape_cast %26 : vector<1x8x128xf32> to vector<8x128xf32>
    %28 = vector.shape_cast %25 : vector<8x128xf32> to vector<1x8x128xf32>
    tpu.vector_store %arg6[%c0_13, %c0_14, %c0_15], %28 {strides = array<i32>} : memref<1x8x128xf32, #tpu.memory_space<vmem>>, vector<1x8x128xf32>,
    return
  }
  func.func @transform_0(%arg0: i32, %arg1: i32) -> (i32, i32, i32, i32) {
    %c0_i32 = arith.constant 0 : i32
    %c0_i32_0 = arith.constant 0 : i32
    %c0_i32_1 = arith.constant 0 : i32
    return %arg0, %arg1, %c0_i32, %c0_i32_0 : i32, i32, i32, i32
  }
  func.func @transform_1(%arg0: i32, %arg1: i32) -> (i32, i32) {
    %c0_i32 = arith.constant 0 : i32
    %c0_i32_0 = arith.constant 0 : i32
    %c0_i32_1 = arith.constant 0 : i32
    return %c0_i32, %c0_i32_0 : i32, i32
  }
  func.func @transform_2(%arg0: i32, %arg1: i32) -> (i32, i32) {
    %c0_i32 = arith.constant 0 : i32
    %c0_i32_0 = arith.constant 0 : i32
    %c0_i32_1 = arith.constant 0 : i32
    return %c0_i32, %c0_i32_0 : i32, i32
  }
  func.func @transform_3(%arg0: i32, %arg1: i32) -> (i32, i32, i32) {
    %c0_i32 = arith.constant 0 : i32
    %c0_i32_0 = arith.constant 0 : i32
    return %arg0, %c0_i32, %arg1 : i32, i32, i32
  }
  func.func @transform_4(%arg0: i32, %arg1: i32) -> (i32, i32, i32) {
    %c0_i32 = arith.constant 0 : i32
    %c0_i32_0 = arith.constant 0 : i32
    return %arg0, %c0_i32, %arg1 : i32, i32, i32
  }
}

module attributes {stable_mosaic.version = 11 : i64} {
  func.func @_conv1d_kernel(%arg0: i32, %arg1: i32, %arg2: memref<1x1x8x134xf32, #tpu.memory_space<vmem>>, %arg3: memref<1x56xbf16, #tpu.memory_space<vmem>>, %arg4: memref<1x1xf32, #tpu.memory_space<vmem>>, %arg5: memref<1x1x128xf32, #tpu.memory_space<vmem>>) attributes {dimension_semantics = [#tpu.dimension_semantics<parallel>, #tpu.dimension_semantics<parallel>], iteration_bounds = array<i64: 2, 1>, scalar_prefetch = 0 : i64, scratch_operands = 0 : i64, tpu.core_type = #tpu.core_type<tc>, window_params = [{transform_indices = @transform_0, window_bounds = array<i64: 1, 1, 8, 134>}, {pipeline_mode = #tpu.pipeline_mode<synchronous>, transform_indices = @transform_1, window_bounds = array<i64: 1, 56>}, {pipeline_mode = #tpu.pipeline_mode<synchronous>, transform_indices = @transform_2, window_bounds = array<i64: 1, 1>}, {transform_indices = @transform_3, window_bounds = array<i64: 1, 1, 128>}]} {
    %c0 = arith.constant 0 : index
    %c0_0 = arith.constant 0 : index
    %c0_1 = arith.constant 0 : index
    %c0_2 = arith.constant 0 : index
    %0 = vector.load %arg2[%c0, %c0_0, %c0_1, %c0_2] : memref<1x1x8x134xf32, #tpu.memory_space<vmem>>, vector<1x1x8x134xf32>
    %1 = vector.shape_cast %0 : vector<1x1x8x134xf32> to vector<8x134xf32>
    %cst = arith.constant 0.000000e+00 : f32
    %2 = vector.broadcast %cst : f32 to vector<8x134xf32>
    %3 = arith.cmpf oge, %1, %2 : vector<8x134xf32>
    %cst_3 = arith.constant 0.00999999977 : f32
    %4 = vector.broadcast %cst_3 : f32 to vector<8x134xf32>
    %5 = arith.mulf %4, %1 : vector<8x134xf32>
    %6 = arith.select %3, %1, %5 : vector<8x134xi1>, vector<8x134xf32>
    %7 = vector.extract_strided_slice %6 {offsets = [0, 0], sizes = [8, 128], strides = [1, 1]} : vector<8x134xf32> to vector<8x128xf32>
    %8 = vector.extract_strided_slice %6 {offsets = [0, 1], sizes = [8, 128], strides = [1, 1]} : vector<8x134xf32> to vector<8x128xf32>
    %9 = vector.extract_strided_slice %6 {offsets = [0, 2], sizes = [8, 128], strides = [1, 1]} : vector<8x134xf32> to vector<8x128xf32>
    %10 = vector.extract_strided_slice %6 {offsets = [0, 3], sizes = [8, 128], strides = [1, 1]} : vector<8x134xf32> to vector<8x128xf32>
    %11 = vector.extract_strided_slice %6 {offsets = [0, 4], sizes = [8, 128], strides = [1, 1]} : vector<8x134xf32> to vector<8x128xf32>
    %12 = vector.extract_strided_slice %6 {offsets = [0, 5], sizes = [8, 128], strides = [1, 1]} : vector<8x134xf32> to vector<8x128xf32>
    %13 = vector.extract_strided_slice %6 {offsets = [0, 6], sizes = [8, 128], strides = [1, 1]} : vector<8x134xf32> to vector<8x128xf32>
    %14 = tpu.concatenate %7, %8, %9, %10, %11, %12, %13 in 0 : vector<8x128xf32>, vector<8x128xf32>, vector<8x128xf32>, vector<8x128xf32>, vector<8x128xf32>, vector<8x128xf32>, vector<8x128xf32> -> vector<56x128xf32>
    %c0_4 = arith.constant 0 : index
    %c0_5 = arith.constant 0 : index
    %15 = vector.load %arg3[%c0_4, %c0_5] : memref<1x56xbf16, #tpu.memory_space<vmem>>, vector<1x56xbf16>
    %16 = arith.truncf %14 : vector<56x128xf32> to vector<56x128xbf16>
    %cst_6 = arith.constant dense<0.000000e+00> : vector<1x128xf32>
    %17 = tpu.matmul %15, %16, %cst_6 {dimension_numbers = #tpu.dot_dimension_numbers<[1], [0], [0], [1], [0, 0, 1, 1], [], []>} : vector<1x56xbf16>, vector<56x128xbf16>, vector<1x128xf32> -> vector<1x128xf32>
    %c0_7 = arith.constant 0 : index
    %c0_8 = arith.constant 0 : index
    %18 = vector.load %arg4[%c0_7, %c0_8] : memref<1x1xf32, #tpu.memory_space<vmem>>, vector<1x1xf32>
    %19 = vector.broadcast %18 : vector<1x1xf32> to vector<1x128xf32>
    %20 = arith.addf %17, %19 : vector<1x128xf32>
    %21 = math.tanh %20 : vector<1x128xf32>
    %c0_9 = arith.constant 0 : index
    %c0_10 = arith.constant 0 : index
    %c0_11 = arith.constant 0 : index
    %22 = vector.load %arg5[%c0_9, %c0_10, %c0_11] : memref<1x1x128xf32, #tpu.memory_space<vmem>>, vector<1x1x128xf32>
    %23 = vector.shape_cast %22 : vector<1x1x128xf32> to vector<1x128xf32>
    %24 = vector.shape_cast %21 : vector<1x128xf32> to vector<1x1x128xf32>
    tpu.vector_store %arg5[%c0_9, %c0_10, %c0_11], %24 {strides = array<i32>} : memref<1x1x128xf32, #tpu.memory_space<vmem>>, vector<1x1x128xf32>,
    return
  }
  func.func @transform_0(%arg0: i32, %arg1: i32) -> (i32, i32, i32, i32) {
    %c0_i32 = arith.constant 0 : i32
    %c0_i32_0 = arith.constant 0 : i32
    %c0_i32_1 = arith.constant 0 : i32
    return %arg0, %arg1, %c0_i32, %c0_i32_0 : i32, i32, i32, i32
  }
  func.func @transform_1(%arg0: i32, %arg1: i32) -> (i32, i32) {
    %c0_i32 = arith.constant 0 : i32
    %c0_i32_0 = arith.constant 0 : i32
    %c0_i32_1 = arith.constant 0 : i32
    return %c0_i32, %c0_i32_0 : i32, i32
  }
  func.func @transform_2(%arg0: i32, %arg1: i32) -> (i32, i32) {
    %c0_i32 = arith.constant 0 : i32
    %c0_i32_0 = arith.constant 0 : i32
    %c0_i32_1 = arith.constant 0 : i32
    return %c0_i32, %c0_i32_0 : i32, i32
  }
  func.func @transform_3(%arg0: i32, %arg1: i32) -> (i32, i32, i32) {
    %c0_i32 = arith.constant 0 : i32
    %c0_i32_0 = arith.constant 0 : i32
    return %arg0, %c0_i32, %arg1 : i32, i32, i32
  }
}

</mosaic_0001>

<bundles_post_ra>
// kernel: hifi_forward.12
= control target key start
LH: loop header
LB: loop body
LE: loop exit
PB: predicated region body
PF: predicated region fallthrough
CT: control target
= control target key end

     0   :  { %s1470_s12 = smov 0   ;;  %s1472_s13 = smov 0   ;;  %s1776_s0 = inlined_call_operand.vmem [shape: f32[2,1,80,134], index: 0, kind: input, shape index: {}]   ;;  %s1777_s1 = inlined_call_operand.vmem [shape: bf16[32,560], index: 1, kind: input, shape index: {}]   ;;  %s1778_s2 = inlined_call_operand.vmem [shape: f32[32,1], index: 2, kind: input, shape index: {}]   ;;  %s1779_s3 = inlined_call_operand.vmem [shape: f32[2,32,128], index: 3, kind: output, shape index: {}]  }
   0x1   :  { %s1474_s14 = smov 0  }
   0x2 LB: > { %s25_s15 = sadd.s32 1, %s1437_s13  ;;  %p981_p0 = scmp.ge.s32.totalorder %s1441_s14, 1  ;;  %s1441_s14 = sphi %s1474_s14, %s13_s14   ;;  %s1437_s13 = sphi %s1472_s13, %s1781_s13   ;;  %s1433_s12 = sphi %s1470_s12, %s1780_s12  }
   0x3   : > { %p27_p1 = scmp.ge.s32.totalorder %s25_s15, 2  ;;  %p157_p2 = scmp.lt.s32.totalorder %s1441_s14, 3 }
   0x5   : > { %s1783_s15 = smov (%p27_p1, %s25_s15), 0  ;;  %p158_p3 = pnand %p981_p0, %p157_p2 }
   0x6   : > { %p188_p4 = scmp.lt.s32.totalorder (!%p158_p3), %s1433_s12, 1  ;;  %s1443_s20 = smov (!%p158_p3), 127   ;;  %v1407_v35 = vld [vmem:[%s1777_s1 + $0x4] ss:$20 sps:$4 sm:$0xff] (!%p158_p3)   ;;  %v1410_v36 = vld [vmem:[%s1777_s1 + $0xc] ss:$20 sps:$4 sm:$0xff] (!%p158_p3)  }
   0x7   : > { %161 = sbr.rel (%p158_p3) target bundleno = 480 (0x1e0), region = 32  ;;  %s1444_s21 = smov (!%p158_p3), 124   ;;  %772 = vmatprep.mubr.bf16.mxu0 (!%p158_p3), %v1407_v35  ;;  %821 = vmatprep.mubr.bf16.mxu1 (!%p158_p3), %v1410_v36  ;;  %v1449_v38 = vmov (!%p158_p3), 0   ;;  %v660_v40 = vld [vmem:[%s1778_s2 + $0x8] sm:$0xff] (!%p158_p3)  ;;  %v659_v44 = vld [vmem:[%s1778_s2] sm:$0xff] (!%p158_p3)  ;;  %vm286_vm0 = vcmask (!%p158_p3), 1039360  }
   0x8   : > { %s1445_s22 = smov (!%p158_p3), 125   ;;  %s1446_s23 = smov (!%p158_p3), 126   ;;  %1404 = vset.pattern.permute.xlu1 (!%p158_p3), %v1449_v38  ;;  %1403 = vset.pattern.permute.xlu0 (!%p158_p3), %v1449_v38  ;;  %v661_v52 = vld [vmem:[%s1778_s2 + $0x10] sm:$0xff] (!%p158_p3)  ;;  %vm469_vm1 = vcmask (!%p158_p3), 1014784   ;;  %v662_v57 = vld [vmem:[%s1778_s2 + $0x18] sm:$0xff] (!%p158_p3)  ;;  %vm408_vm2 = vcmask (!%p158_p3), 1022976  }
   0x9   : > { %s1447_s24 = smov (!%p158_p3), 123   ;;  %s1448_s25 = smov (!%p158_p3), 122   ;;  %vm347_vm3 = vcmask (!%p158_p3), 1031168   ;;  %vm530_vm4 = vcmask (!%p158_p3), 1006592   ;;  %vm591_vm5 = vcmask (!%p158_p3), 998400   ;;  %vm733_vm6 = vcmask (!%p158_p3), 392192  }
   0xe   : > { %s1785_s12 = smov (!%p188_p4, %s1433_s12), 1 }
   0xf   : > { %s1071_s16 = smul.u32 160, %s1785_s12  ;;  %s999_s4 = sshll.u32 %s1785_s12, 5 }
  0x10   : > { %s204_s7 = scalar_lea.vmem %s1779_s3, %s999_s4 }
  0x11   : > { %s1494_s19 = scalar_lea.vmem %s1776_s0, %s1071_s16 }
  0x12   : > { %v1497_v0 = vld [vmem:[%s1494_s19 + $0x80] sm:$0xff]  ;;  %v223_v1 = vld [vmem:[%s1494_s19 + $0x88] sm:$0xff]  ;;  %v1508_v5 = vld [vmem:[%s1494_s19 + $0x90] sm:$0xff] }
  0x13   : > { %v1501_v2 = vld [vmem:[%s1494_s19 + $0x60] sm:$0xff]  ;;  %v1504_v3 = vpack.i.bf16 %v223_v1, %v1497_v0  ;;  %v219_v4 = vld [vmem:[%s1494_s19 + $0x68] sm:$0xff]  ;;  %v225_v6 = vld [vmem:[%s1494_s19 + $0x98] sm:$0xff]  ;;  %v628_v34 = vpack.c.bf16 %v1508_v5, %v1497_v0 }
  0x14   : > { %v1512_v7 = vpack.i.bf16 %v219_v4, %v1501_v2  ;;  %v1515_v8 = vld [vmem:[%s1494_s19 + $0x70] sm:$0xff]  ;;  %v221_v9 = vld [vmem:[%s1494_s19 + $0x78] sm:$0xff]  ;;  %v1521_v10 = vpack.i.bf16 %v225_v6, %v1508_v5  ;;  %v1533_v14 = vld [vmem:[%s1494_s19 + $0x20] sm:$0xff] }
  0x15   : > { %1114 = vrot.lane.b32.xlu1 %v1504_v3, %s1443_s20  ;;  %v1526_v11 = vpack.i.bf16 %v221_v9, %v1515_v8  ;;  %v1529_v12 = vld [vmem:[%s1494_s19 + $0x30] sm:$0xff]  ;;  %v213_v13 = vld [vmem:[%s1494_s19 + $0x38] sm:$0xff]  ;;  %v211_v15 = vld [vmem:[%s1494_s19 + $0x28] sm:$0xff]  ;;  %v627_v33 = vpack.c.bf16 %v1515_v8, %v1501_v2 }
  0x16   : > { %1104 = vrot.lane.b32.xlu0 %v1512_v7, %s1443_s20  ;;  %v1537_v16 = vld [vmem:[%s1494_s19 + $0x10] sm:$0xff]  ;;  %v209_v17 = vld [vmem:[%s1494_s19 + $0x18] sm:$0xff]  ;;  %v1545_v18 = vpack.i.bf16 %v213_v13, %v1529_v12  ;;  %v1548_v19 = vpack.i.bf16 %v211_v15, %v1533_v14  ;;  %v1552_v21 = vld [vmem:[%s1494_s19] sm:$0xff]  ;;  %v625_v31 = vpack.c.bf16 %v1529_v12, %v1533_v14 }
  0x17   : > { %v1148_v20 = vpack.i.bf16 %v209_v17, %v1537_v16  ;;  %v207_v22 = vld [vmem:[%s1494_s19 + $0x8] sm:$0xff]  ;;  %v1556_v23 = vld [vmem:[%s1494_s19 + $0x50] sm:$0xff]  ;;  %v217_v24 = vld [vmem:[%s1494_s19 + $0x58] sm:$0xff]  ;;  %v624_v30 = vpack.c.bf16 %v1537_v16, %v1552_v21 }
  0x18   : > { %v1562_v25 = vld [vmem:[%s1494_s19 + $0x40] sm:$0xff]  ;;  %v215_v26 = vld [vmem:[%s1494_s19 + $0x48] sm:$0xff]  ;;  %v1313_v27 = vpack.i.bf16 %v207_v22, %v1552_v21  ;;  %v1338_v28 = vpack.i.bf16 %v217_v24, %v1556_v23 }
  0x19   : > { %1119 = vrot.lane.b32.xlu1 %v1521_v10, %s1443_s20  ;;  %v1333_v29 = vpack.i.bf16 %v215_v26, %v1562_v25  ;;  %v626_v32 = vpack.c.bf16 %v1556_v23, %v1562_v25 }
  0x1a   : > { %1109 = vrot.lane.b32.xlu0 %v1526_v11, %s1443_s20 }
  0x1d   : > { %1129 = vrot.lane.b32.xlu1 %v1521_v10, %s1444_s21 }
  0x1e   : > { %1124 = vrot.lane.b32.xlu0 %v1504_v3, %s1444_s21 }
  0x21   : > { %1139 = vrot.lane.b32.xlu1 %v1545_v18, %s1445_s22 }
  0x22   : > { %1134 = vrot.lane.b32.xlu0 %v1548_v19, %s1445_s22 }
  0x25   : > { %1149 = vrot.lane.b32.xlu1 %v1148_v20, %s1446_s23 }
  0x26   : > { %1144 = vrot.lane.b32.xlu0 %v1313_v27, %s1446_s23 }
  0x29   : > { %1159 = vrot.lane.b32.xlu1 %v1148_v20, %s1447_s24 }
  0x2a   : > { %1154 = vrot.lane.b32.xlu0 %v1313_v27, %s1447_s24 }
  0x2d   : > { %1169 = vrot.lane.b32.xlu1 %v1338_v28, %s1445_s22 }
  0x2e   : > { %1164 = vrot.lane.b32.xlu0 %v1333_v29, %s1445_s22 }
  0x31   : > { %1179 = vrot.lane.b32.xlu1 %v1545_v18, %s1446_s23 }
  0x32   : > { %1174 = vrot.lane.b32.xlu0 %v1548_v19, %s1446_s23 }
  0x35   : > { %1189 = vrot.lane.b32.xlu1 %v1545_v18, %s1447_s24 }
  0x36   : > { %1184 = vrot.lane.b32.xlu0 %v1548_v19, %s1447_s24 }
  0x39   : > { %1199 = vrot.lane.b32.xlu1 %v1526_v11, %s1445_s22 }
  0x3a   : > { %1194 = vrot.lane.b32.xlu0 %v1512_v7, %s1445_s22 }
  0x3d   : > { %1209 = vrot.lane.b32.xlu1 %v1338_v28, %s1446_s23 }
  0x3e   : > { %1204 = vrot.lane.b32.xlu0 %v1333_v29, %s1446_s23 }
  0x41   : > { %1219 = vrot.lane.b32.xlu1 %v1338_v28, %s1447_s24 }
  0x42   : > { %1214 = vrot.lane.b32.xlu0 %v1333_v29, %s1447_s24 }
  0x45   : > { %1229 = vrot.lane.b32.xlu1 %v1521_v10, %s1445_s22 }
  0x46   : > { %1224 = vrot.lane.b32.xlu0 %v1504_v3, %s1445_s22 }
  0x49   : > { %1239 = vrot.lane.b32.xlu1 %v1526_v11, %s1446_s23 }
  0x4a   : > { %1234 = vrot.lane.b32.xlu0 %v1512_v7, %s1446_s23 }
  0x4d   : > { %1249 = vrot.lane.b32.xlu1 %v1526_v11, %s1447_s24 }
  0x4e   : > { %1244 = vrot.lane.b32.xlu0 %v1512_v7, %s1447_s24 }
  0x51   : > { %1259 = vrot.lane.b32.xlu1 %v1148_v20, %s1443_s20 }
  0x52   : > { %1254 = vrot.lane.b32.xlu0 %v1313_v27, %s1443_s20 }
  0x55   : > { %1269 = vrot.lane.b32.xlu1 %v1148_v20, %s1444_s21 }
  0x56   : > { %1264 = vrot.lane.b32.xlu0 %v1313_v27, %s1444_s21 }
  0x59   : > { %1279 = vrot.lane.b32.xlu1 %v1521_v10, %s1446_s23 }
  0x5a   : > { %1274 = vrot.lane.b32.xlu0 %v1504_v3, %s1446_s23 }
  0x5d   : > { %1289 = vrot.lane.b32.xlu1 %v1521_v10, %s1447_s24 }
  0x5e   : > { %1284 = vrot.lane.b32.xlu0 %v1504_v3, %s1447_s24 }
  0x61   : > { %1299 = vrot.lane.b32.xlu1 %v1545_v18, %s1443_s20 }
  0x62   : > { %1294 = vrot.lane.b32.xlu0 %v1548_v19, %s1443_s20 }
  0x65   : > { %1309 = vrot.lane.b32.xlu1 %v1545_v18, %s1444_s21 }
  0x66   : > { %1304 = vrot.lane.b32.xlu0 %v1548_v19, %s1444_s21 }
  0x69   : > { %1319 = vrot.lane.b32.xlu1 %v1148_v20, %s1445_s22 }
  0x6a   : > { %1314 = vrot.lane.b32.xlu0 %v1313_v27, %s1445_s22 }
  0x6d   : > { %1329 = vrot.lane.b32.xlu1 %v1148_v20, %s1448_s25 }
  0x6e   : > { %1324 = vrot.lane.b32.xlu0 %v1313_v27, %s1448_s25 }
  0x71   : > { %1339 = vrot.lane.b32.xlu1 %v1338_v28, %s1443_s20 }
  0x72   : > { %1334 = vrot.lane.b32.xlu0 %v1333_v29, %s1443_s20 }
  0x75   : > { %1349 = vrot.lane.b32.xlu1 %v1338_v28, %s1444_s21 }
  0x76   : > { %1344 = vrot.lane.b32.xlu0 %v1333_v29, %s1444_s21 }
  0x79   : > { %1359 = vrot.lane.b32.xlu1 %v1545_v18, %s1448_s25 }
  0x7a   : > { %1354 = vrot.lane.b32.xlu0 %v1548_v19, %s1448_s25 }
  0x7d   : > { %1369 = vrot.lane.b32.xlu1 %v1526_v11, %s1444_s21 }
  0x7e   : > { %1364 = vrot.lane.b32.xlu0 %v1512_v7, %s1444_s21 }
  0x81   : > { %1379 = vrot.lane.b32.xlu1 %v1338_v28, %s1448_s25 }
  0x82   : > { %1374 = vrot.lane.b32.xlu0 %v1333_v29, %s1448_s25 }
  0x85   : > { %1389 = vrot.lane.b32.xlu1 %v1526_v11, %s1448_s25 }
  0x86   : > { %1384 = vrot.lane.b32.xlu0 %v1512_v7, %s1448_s25 }
  0x87   : > { %v1115_v37 = vpop.permute.xlu1 %1114 }
  0x88   : > { %v1105_v39 = vpop.permute.xlu0 %1104  ;;  %v1117_v48 = vunpack.i.h.bf16 %v1115_v37  ;;  %v1116_v49 = vunpack.i.l.bf16 %v1115_v37 }
  0x89   : > { %1399 = vrot.lane.b32.xlu1 %v1521_v10, %s1448_s25  ;;  %v1107_v41 = vunpack.i.h.bf16 %v1105_v39  ;;  %v1106_v42 = vunpack.i.l.bf16 %v1105_v39 }
  0x8a   : > { %1394 = vrot.lane.b32.xlu0 %v1504_v3, %s1448_s25  ;;  %v295_v1 = vsel %vm286_vm0, %v1116_v49, %v1117_v48 }
  0x8b   : > { %v1120_v43 = vpop.permute.xlu1 %1119  ;;  %v293_v54 = vsel %vm286_vm0, %v1106_v42, %v1107_v41 }
  0x8c   : > { %v1122_v45 = vunpack.i.h.bf16 %v1120_v43  ;;  %v1121_v46 = vunpack.i.l.bf16 %v1120_v43  ;;  %v1110_v47 = vpop.permute.xlu0 %1109 }
  0x8d   : > { %v1112_v50 = vunpack.i.h.bf16 %v1110_v47  ;;  %v1111_v51 = vunpack.i.l.bf16 %v1110_v47  ;;  %670 = vperm.xlu1 %1404, %v660_v40  }
  0x8e   : > { %665 = vperm.xlu0 %1403, %v659_v44   ;;  %v296_v56 = vsel %vm286_vm0, %v1121_v46, %v1122_v45 }
  0x8f   : > { %v1130_v53 = vpop.permute.xlu1 %1129  ;;  %v294_v55 = vsel %vm286_vm0, %v1111_v51, %v1112_v50  ;;  %v633_v3 = vpack.c.bf16 %v296_v56, %v295_v1 }
  0x90   : > { %v1132_v58 = vunpack.i.h.bf16 %v1130_v53  ;;  %v1131_v59 = vunpack.i.l.bf16 %v1130_v53  ;;  %v1125_v60 = vpop.permute.xlu0 %1124  ;;  %v632_v61 = vpack.c.bf16 %v294_v55, %v293_v54 }
  0x91   : > { %v1127_v62 = vunpack.i.h.bf16 %v1125_v60  ;;  %v1126_v63 = vunpack.i.l.bf16 %v1125_v60  ;;  %675 = vperm.xlu1 %1404, %v661_v52  }
  0x92   : > { %1000 = vmatprep.subr.bf16.mxu0 %v632_v61  ;;  %v479_v4 = vsel %vm469_vm1, %v1131_v59, %v1132_v58  ;;  %680 = vperm.xlu0 %1403, %v662_v57  }
  0x93   : > { %1001 = vmatpush3.bf16.msra.mxu0 %v624_v30  ;;  %v1140_v6 = vpop.permute.xlu1 %1139  ;;  %v478_v7 = vsel %vm469_vm1, %v1126_v63, %v1127_v62 }
  0x94   : > { %v1142_v9 = vunpack.i.h.bf16 %v1140_v6  ;;  %v1141_v10 = vunpack.i.l.bf16 %v1140_v6  ;;  %v1135_v11 = vpop.permute.xlu0 %1134  ;;  %1002 = vmatprep.subr.bf16.mxu0 %v633_v3  ;;  %v648_v13 = vpack.c.bf16 %v479_v4, %v478_v7 }
  0x95   : > { %v1137_v15 = vunpack.i.h.bf16 %v1135_v11  ;;  %v1136_v17 = vunpack.i.l.bf16 %v1135_v11 }
  0x96   : > { %1028 = vmatprep.subr.bf16.mxu1 %v648_v13  ;;  %v412_v18 = vsel %vm408_vm2, %v1141_v10, %v1142_v9 }
  0x97   : > { %v1150_v19 = vpop.permute.xlu1 %1149  ;;  %v411_v20 = vsel %vm408_vm2, %v1136_v17, %v1137_v15  ;;  %1003 = vmatpush3.bf16.msra.mxu0 %v625_v31 }
  0x98   : > { %v1152_v16 = vunpack.i.h.bf16 %v1150_v19  ;;  %v1151_v21 = vunpack.i.l.bf16 %v1150_v19  ;;  %v1145_v22 = vpop.permute.xlu0 %1144  ;;  %v640_v24 = vpack.c.bf16 %v412_v18, %v411_v20 }
  0x99   : > { %v1147_v26 = vunpack.i.h.bf16 %v1145_v22  ;;  %v1146_v27 = vunpack.i.l.bf16 %v1145_v22 }
  0x9a   : > { %1029 = vmatpush3.bf16.msra.mxu1 %v640_v24  ;;  %v349_v28 = vsel %vm347_vm3, %v1151_v21, %v1152_v16 }
  0x9b   : > { %v1160_v29 = vpop.permute.xlu1 %1159  ;;  %v348_v30 = vsel %vm347_vm3, %v1146_v27, %v1147_v26 }
  0x9c   : > { %v1162_v35 = vunpack.i.h.bf16 %v1160_v29  ;;  %v1161_v36 = vunpack.i.l.bf16 %v1160_v29  ;;  %v1155_v37 = vpop.permute.xlu0 %1154  ;;  %v634_v38 = vpack.c.bf16 %v349_v28, %v348_v30 }
  0x9d   : > { %v1157_v12 = vunpack.i.h.bf16 %v1155_v37  ;;  %v1156_v14 = vunpack.i.l.bf16 %v1155_v37 }
  0x9e   : > { %1004 = vmatprep.subr.bf16.mxu0 %v634_v38  ;;  %v532_v31 = vsel %vm530_vm4, %v1161_v36, %v1162_v35 }
  0x9f   : > { %v1170_v39 = vpop.permute.xlu1 %1169  ;;  %v531_v40 = vsel %vm530_vm4, %v1156_v14, %v1157_v12  ;;  %1005 = vmatpush3.bf16.msra.mxu0 %v626_v32 }
  0xa0   : > { %v1172_v41 = vunpack.i.h.bf16 %v1170_v39  ;;  %v1171_v42 = vunpack.i.l.bf16 %v1170_v39  ;;  %v1165_v43 = vpop.permute.xlu0 %1164  ;;  %v649_v44 = vpack.c.bf16 %v532_v31, %v531_v40 }
  0xa1   : > { %v1167_v45 = vunpack.i.h.bf16 %v1165_v43  ;;  %v1166_v46 = vunpack.i.l.bf16 %v1165_v43 }
  0xa2   : > { %1030 = vmatprep.subr.bf16.mxu1 %v649_v44  ;;  %v414_v47 = vsel %vm408_vm2, %v1171_v42, %v1172_v41 }
  0xa3   : > { %v1180_v48 = vpop.permute.xlu1 %1179  ;;  %v413_v49 = vsel %vm408_vm2, %v1166_v46, %v1167_v45 }
  0xa4   : > { %v1182_v50 = vunpack.i.h.bf16 %v1180_v48  ;;  %v1181_v51 = vunpack.i.l.bf16 %v1180_v48  ;;  %v1175_v52 = vpop.permute.xlu0 %1174  ;;  %v641_v53 = vpack.c.bf16 %v414_v47, %v413_v49 }
  0xa5   : > { %v1177_v54 = vunpack.i.h.bf16 %v1175_v52  ;;  %v1176_v55 = vunpack.i.l.bf16 %v1175_v52 }
  0xa6   : > { %1031 = vmatpush3.bf16.msra.mxu1 %v641_v53  ;;  %v351_v23 = vsel %vm347_vm3, %v1181_v51, %v1182_v50 }
  0xa7   : > { %v1190_v25 = vpop.permute.xlu1 %1189  ;;  %v350_v32 = vsel %vm347_vm3, %v1176_v55, %v1177_v54 }
  0xa8   : > { %v1192_v56 = vunpack.i.h.bf16 %v1190_v25  ;;  %v1191_v57 = vunpack.i.l.bf16 %v1190_v25  ;;  %v1185_v58 = vpop.permute.xlu0 %1184  ;;  %v635_v59 = vpack.c.bf16 %v351_v23, %v350_v32 }
  0xa9   : > { %v1187_v60 = vunpack.i.h.bf16 %v1185_v58  ;;  %v1186_v61 = vunpack.i.l.bf16 %v1185_v58 }
  0xaa   : > { %1006 = vmatprep.subr.bf16.mxu0 %v635_v59  ;;  %v534_v62 = vsel %vm530_vm4, %v1191_v57, %v1192_v56 }
  0xab   : > { %v1200_v63 = vpop.permute.xlu1 %1199  ;;  %v533_v1 = vsel %vm530_vm4, %v1186_v61, %v1187_v60  ;;  %1007 = vmatpush3.bf16.msra.mxu0 %v627_v33 }
  0xac   : > { %v1202_v3 = vunpack.i.h.bf16 %v1200_v63  ;;  %v1201_v4 = vunpack.i.l.bf16 %v1200_v63  ;;  %v1195_v6 = vpop.permute.xlu0 %1194  ;;  %v650_v7 = vpack.c.bf16 %v534_v62, %v533_v1 }
  0xad   : > { %v1197_v9 = vunpack.i.h.bf16 %v1195_v6  ;;  %v1196_v10 = vunpack.i.l.bf16 %v1195_v6 }
  0xae   : > { %1032 = vmatprep.subr.bf16.mxu1 %v650_v7  ;;  %v416_v11 = vsel %vm408_vm2, %v1201_v4, %v1202_v3 }
  0xaf   : > { %v1210_v13 = vpop.permute.xlu1 %1209  ;;  %v415_v15 = vsel %vm408_vm2, %v1196_v10, %v1197_v9 }
  0xb0   : > { %v1212_v17 = vunpack.i.h.bf16 %v1210_v13  ;;  %v1211_v18 = vunpack.i.l.bf16 %v1210_v13  ;;  %v1205_v19 = vpop.permute.xlu0 %1204  ;;  %v642_v20 = vpack.c.bf16 %v416_v11, %v415_v15 }
  0xb1   : > { %v1207_v16 = vunpack.i.h.bf16 %v1205_v19  ;;  %v1206_v21 = vunpack.i.l.bf16 %v1205_v19 }
  0xb2   : > { %1033 = vmatpush3.bf16.msra.mxu1 %v642_v20  ;;  %v353_v2 = vsel %vm347_vm3, %v1211_v18, %v1212_v17 }
  0xb3   : > { %v1220_v8 = vpop.permute.xlu1 %1219  ;;  %v352_v33 = vsel %vm347_vm3, %v1206_v21, %v1207_v16 }
  0xb4   : > { %v1222_v22 = vunpack.i.h.bf16 %v1220_v8  ;;  %v1221_v24 = vunpack.i.l.bf16 %v1220_v8  ;;  %v1215_v26 = vpop.permute.xlu0 %1214  ;;  %v636_v27 = vpack.c.bf16 %v353_v2, %v352_v33 }
  0xb5   : > { %v1217_v28 = vunpack.i.h.bf16 %v1215_v26  ;;  %v1216_v29 = vunpack.i.l.bf16 %v1215_v26 }
  0xb6   : > { %1008 = vmatprep.subr.bf16.mxu0 %v636_v27  ;;  %v536_v30 = vsel %vm530_vm4, %v1221_v24, %v1222_v22 }
  0xb7   : > { %v1230_v35 = vpop.permute.xlu1 %1229  ;;  %v535_v36 = vsel %vm530_vm4, %v1216_v29, %v1217_v28  ;;  %1009 = vmatpush3.bf16.msra.mxu0 %v628_v34 }
  0xb8   : > { %v1232_v37 = vunpack.i.h.bf16 %v1230_v35  ;;  %v1231_v38 = vunpack.i.l.bf16 %v1230_v35  ;;  %v1225_v12 = vpop.permute.xlu0 %1224  ;;  %v651_v14 = vpack.c.bf16 %v536_v30, %v535_v36 }
  0xb9   : > { %v1227_v31 = vunpack.i.h.bf16 %v1225_v12  ;;  %v1226_v39 = vunpack.i.l.bf16 %v1225_v12 }
  0xba   : > { %1034 = vmatprep.subr.bf16.mxu1 %v651_v14  ;;  %v418_v40 = vsel %vm408_vm2, %v1231_v38, %v1232_v37 }
  0xbb   : > { %v1240_v41 = vpop.permute.xlu1 %1239  ;;  %v417_v42 = vsel %vm408_vm2, %v1226_v39, %v1227_v31 }
  0xbc   : > { %v1242_v43 = vunpack.i.h.bf16 %v1240_v41  ;;  %v1241_v44 = vunpack.i.l.bf16 %v1240_v41  ;;  %v1235_v45 = vpop.permute.xlu0 %1234  ;;  %v643_v46 = vpack.c.bf16 %v418_v40, %v417_v42 }
  0xbd   : > { %v1237_v47 = vunpack.i.h.bf16 %v1235_v45  ;;  %v1236_v48 = vunpack.i.l.bf16 %v1235_v45 }
  0xbe   : > { %1035 = vmatpush3.bf16.msra.mxu1 %v643_v46  ;;  %v355_v0 = vsel %vm347_vm3, %v1241_v44, %v1242_v43 }
  0xbf   : > { %v1250_v5 = vpop.permute.xlu1 %1249  ;;  %v354_v34 = vsel %vm347_vm3, %v1236_v48, %v1237_v47 }
  0xc0   : > { %v1252_v49 = vunpack.i.h.bf16 %v1250_v5  ;;  %v1251_v50 = vunpack.i.l.bf16 %v1250_v5  ;;  %v1245_v51 = vpop.permute.xlu0 %1244  ;;  %v637_v52 = vpack.c.bf16 %v355_v0, %v354_v34 }
  0xc1   : > { %v1247_v53 = vunpack.i.h.bf16 %v1245_v51  ;;  %v1246_v54 = vunpack.i.l.bf16 %v1245_v51 }
  0xc2   : > { %1010 = vmatprep.subr.bf16.mxu0 %v637_v52  ;;  %v538_v55 = vsel %vm530_vm4, %v1251_v50, %v1252_v49 }
  0xc3   : > { %v1260_v23 = vpop.permute.xlu1 %1259  ;;  %v537_v25 = vsel %vm530_vm4, %v1246_v54, %v1247_v53 }
  0xc4   : > { %v1262_v32 = vunpack.i.h.bf16 %v1260_v23  ;;  %v1261_v56 = vunpack.i.l.bf16 %v1260_v23  ;;  %v1255_v57 = vpop.permute.xlu0 %1254  ;;  %v652_v58 = vpack.c.bf16 %v538_v55, %v537_v25 }
  0xc5   : > { %v1257_v59 = vunpack.i.h.bf16 %v1255_v57  ;;  %v1256_v60 = vunpack.i.l.bf16 %v1255_v57 }
  0xc6   : > { %1036 = vmatprep.subr.bf16.mxu1 %v652_v58  ;;  %v288_v61 = vsel %vm286_vm0, %v1261_v56, %v1262_v32 }
  0xc7   : > { %v1270_v62 = vpop.permute.xlu1 %1269  ;;  %v287_v63 = vsel %vm286_vm0, %v1256_v60, %v1257_v59 }
  0xc8   : > { %v1272_v1 = vunpack.i.h.bf16 %v1270_v62  ;;  %v1271_v3 = vunpack.i.l.bf16 %v1270_v62  ;;  %v1265_v4 = vpop.permute.xlu0 %1264  ;;  %v629_v6 = vpack.c.bf16 %v288_v61, %v287_v63 }
  0xc9   : > { %v1267_v7 = vunpack.i.h.bf16 %v1265_v4  ;;  %v1266_v9 = vunpack.i.l.bf16 %v1265_v4 }
  0xca   : > { %1011 = vmatpush3.bf16.msra.mxu0 %v629_v6  ;;  %v471_v10 = vsel %vm469_vm1, %v1271_v3, %v1272_v1 }
  0xcb   : > { %v1280_v11 = vpop.permute.xlu1 %1279  ;;  %v470_v13 = vsel %vm469_vm1, %v1266_v9, %v1267_v7 }
  0xcc   : > { %v1282_v15 = vunpack.i.h.bf16 %v1280_v11  ;;  %v1281_v17 = vunpack.i.l.bf16 %v1280_v11  ;;  %v1275_v18 = vpop.permute.xlu0 %1274  ;;  %v644_v19 = vpack.c.bf16 %v471_v10, %v470_v13 }
  0xcd   : > { %v1277_v20 = vunpack.i.h.bf16 %v1275_v18  ;;  %v1276_v16 = vunpack.i.l.bf16 %v1275_v18 }
  0xce   : > { %1037 = vmatpush3.bf16.msra.mxu1 %v644_v19  ;;  %v357_v21 = vsel %vm347_vm3, %v1281_v17, %v1282_v15 }
  0xcf   : > { %v1290_v2 = vpop.permute.xlu1 %1289  ;;  %v356_v8 = vsel %vm347_vm3, %v1276_v16, %v1277_v20  ;;  %v1405_v16 = vld [vmem:[%s1777_s1] ss:$20 sps:$4 sm:$0xff]  }
  0xd0   : > { %v1292_v33 = vunpack.i.h.bf16 %v1290_v2  ;;  %v1291_v22 = vunpack.i.l.bf16 %v1290_v2  ;;  %v1285_v24 = vpop.permute.xlu0 %1284  ;;  %v638_v26 = vpack.c.bf16 %v357_v21, %v356_v8  ;;  %v1411_v2 = vld [vmem:[%s1777_s1 + $0x2c] ss:$20 sps:$4 sm:$0xff]  }
  0xd1   : > { %v1287_v27 = vunpack.i.h.bf16 %v1285_v24  ;;  %v1286_v28 = vunpack.i.l.bf16 %v1285_v24 }
  0xd2   : > { %1012 = vmatprep.subr.bf16.mxu0 %v638_v26  ;;  %v540_v29 = vsel %vm530_vm4, %v1291_v22, %v1292_v33 }
  0xd3   : > { %v1300_v30 = vpop.permute.xlu1 %1299  ;;  %v539_v35 = vsel %vm530_vm4, %v1286_v28, %v1287_v27 }
  0xd4   : > { %v1302_v36 = vunpack.i.h.bf16 %v1300_v30  ;;  %v1301_v37 = vunpack.i.l.bf16 %v1300_v30  ;;  %v1295_v38 = vpop.permute.xlu0 %1294  ;;  %v653_v12 = vpack.c.bf16 %v540_v29, %v539_v35 }
  0xd5   : > { %v1297_v14 = vunpack.i.h.bf16 %v1295_v38  ;;  %v1296_v31 = vunpack.i.l.bf16 %v1295_v38 }
  0xd6   : > { %1038 = vmatprep.subr.bf16.mxu1 %v653_v12  ;;  %v290_v39 = vsel %vm286_vm0, %v1301_v37, %v1302_v36 }
  0xd7   : > { %v1310_v40 = vpop.permute.xlu1 %1309  ;;  %v289_v41 = vsel %vm286_vm0, %v1296_v31, %v1297_v14 }
  0xd8   : > { %v1312_v42 = vunpack.i.h.bf16 %v1310_v40  ;;  %v1311_v43 = vunpack.i.l.bf16 %v1310_v40  ;;  %v1305_v44 = vpop.permute.xlu0 %1304  ;;  %v630_v45 = vpack.c.bf16 %v290_v39, %v289_v41  ;;  %v1413_v40 = vld [vmem:[%s1777_s1 + $0x28] ss:$20 sps:$4 sm:$0xff]  }
  0xd9   : > { %v1307_v46 = vunpack.i.h.bf16 %v1305_v44  ;;  %v1306_v47 = vunpack.i.l.bf16 %v1305_v44 }
  0xda   : > { %1013 = vmatpush3.bf16.msra.mxu0 %v630_v45  ;;  %v473_v48 = vsel %vm469_vm1, %v1311_v43, %v1312_v42  ;;  %v1417_v42 = vld [vmem:[%s1777_s1 + $0x10] ss:$20 sps:$4 sm:$0xff]  }
  0xdb   : > { %v1320_v0 = vpop.permute.xlu1 %1319  ;;  %v472_v5 = vsel %vm469_vm1, %v1306_v47, %v1307_v46 }
  0xdc   : > { %v1322_v34 = vunpack.i.h.bf16 %v1320_v0  ;;  %v1321_v49 = vunpack.i.l.bf16 %v1320_v0  ;;  %v1315_v50 = vpop.permute.xlu0 %1314  ;;  %v645_v51 = vpack.c.bf16 %v473_v48, %v472_v5 }
  0xdd   : > { %v1317_v52 = vunpack.i.h.bf16 %v1315_v50  ;;  %v1316_v53 = vunpack.i.l.bf16 %v1315_v50  ;;  %v1414_v50 = vld [vmem:[%s1777_s1 + $0x34] ss:$20 sps:$4 sm:$0xff]  }
  0xde   : > { %1039 = vmatpush3.bf16.msra.mxu1 %v645_v51  ;;  %v410_v54 = vsel %vm408_vm2, %v1321_v49, %v1322_v34  ;;  %v1408_v34 = vld [vmem:[%s1777_s1 + $0x8] ss:$20 sps:$4 sm:$0xff]  }
  0xdf   : > { %v1330_v55 = vpop.permute.xlu1 %1329  ;;  %v409_v23 = vsel %vm408_vm2, %v1316_v53, %v1317_v52 }
  0xe0   : > { %v1332_v25 = vunpack.i.h.bf16 %v1330_v55  ;;  %v1331_v32 = vunpack.i.l.bf16 %v1330_v55  ;;  %v1325_v56 = vpop.permute.xlu0 %1324  ;;  %v639_v57 = vpack.c.bf16 %v410_v54, %v409_v23 }
  0xe1   : > { %v1327_v58 = vunpack.i.h.bf16 %v1325_v56  ;;  %v1326_v59 = vunpack.i.l.bf16 %v1325_v56 }
  0xe2   : > { %1014 = vmatprep.subr.bf16.mxu0 %v639_v57  ;;  %v593_v60 = vsel %vm591_vm5, %v1331_v32, %v1332_v25 }
  0xe3   : > { %v1340_v61 = vpop.permute.xlu1 %1339  ;;  %v592_v62 = vsel %vm591_vm5, %v1326_v59, %v1327_v58 }
  0xe4   : > { %v1342_v63 = vunpack.i.h.bf16 %v1340_v61  ;;  %v1341_v1 = vunpack.i.l.bf16 %v1340_v61  ;;  %v1335_v3 = vpop.permute.xlu0 %1334  ;;  %v654_v4 = vpack.c.bf16 %v593_v60, %v592_v62 }
  0xe5   : > { %v1337_v6 = vunpack.i.h.bf16 %v1335_v3  ;;  %v1336_v7 = vunpack.i.l.bf16 %v1335_v3  ;;  %v1416_v3 = vld [vmem:[%s1777_s1 + $0x30] ss:$20 sps:$4 sm:$0xff]  }
  0xe6   : > { %1040 = vmatprep.subr.bf16.mxu1 %v654_v4  ;;  %v292_v9 = vsel %vm286_vm0, %v1341_v1, %v1342_v63 }
  0xe7   : > { %v1350_v10 = vpop.permute.xlu1 %1349  ;;  %v291_v11 = vsel %vm286_vm0, %v1336_v7, %v1337_v6 }
  0xe8   : > { %v1352_v13 = vunpack.i.h.bf16 %v1350_v10  ;;  %v1351_v15 = vunpack.i.l.bf16 %v1350_v10  ;;  %v1345_v17 = vpop.permute.xlu0 %1344  ;;  %v631_v18 = vpack.c.bf16 %v292_v9, %v291_v11  ;;  %v1418_v9 = vld [vmem:[%s1777_s1 + $0x38] ss:$20 sps:$4 sm:$0xff]  }
  0xe9   : > { %v1347_v19 = vunpack.i.h.bf16 %v1345_v17  ;;  %v1346_v20 = vunpack.i.l.bf16 %v1345_v17 }
  0xea   : > { %1015 = vmatpush3.bf16.msra.mxu0 %v631_v18  ;;  %v475_v21 = vsel %vm469_vm1, %v1351_v15, %v1352_v13 }
  0xeb   : > { %v1360_v8 = vpop.permute.xlu1 %1359  ;;  %v474_v33 = vsel %vm469_vm1, %v1346_v20, %v1347_v19 }
  0xec   : > { %v1362_v22 = vunpack.i.h.bf16 %v1360_v8  ;;  %v1361_v24 = vunpack.i.l.bf16 %v1360_v8  ;;  %v1355_v26 = vpop.permute.xlu0 %1354  ;;  %v646_v27 = vpack.c.bf16 %v475_v21, %v474_v33 }
  0xed   : > { %v1357_v28 = vunpack.i.h.bf16 %v1355_v26  ;;  %v1356_v29 = vunpack.i.l.bf16 %v1355_v26  ;;  %773 = vmatmul.mubr.bf16.vlgmr.msra.gmra.mrb[0].mxu0 %v1405_v16 }
  0xee   : > { %1041 = vmatpush3.bf16.msra.mxu1 %v646_v27  ;;  %v595_v30 = vsel %vm591_vm5, %v1361_v24, %v1362_v22  ;;  %780 = vmatprep.mubr.bf16.mxu0 %v1411_v2 }
  0xef   : > { %v1370_v35 = vpop.permute.xlu1 %1369  ;;  %v594_v36 = vsel %vm591_vm5, %v1356_v29, %v1357_v28 }
  0xf0   : > { %v1372_v37 = vunpack.i.h.bf16 %v1370_v35  ;;  %v1371_v38 = vunpack.i.l.bf16 %v1370_v35  ;;  %v1365_v12 = vpop.permute.xlu0 %1364  ;;  %v655_v14 = vpack.c.bf16 %v595_v30, %v594_v36 }
  0xf1   : > { %v1367_v31 = vunpack.i.h.bf16 %v1365_v12  ;;  %v1366_v39 = vunpack.i.l.bf16 %v1365_v12 }
  0xf2   : > { %1042 = vmatprep.subr.bf16.mxu1 %v655_v14  ;;  %v477_v41 = vsel %vm469_vm1, %v1371_v38, %v1372_v37 }
  0xf3   : > { %v1380_v43 = vpop.permute.xlu1 %1379  ;;  %v476_v44 = vsel %vm469_vm1, %v1366_v39, %v1367_v31 }
  0xf4   : > { %v1382_v45 = vunpack.i.h.bf16 %v1380_v43  ;;  %v1381_v46 = vunpack.i.l.bf16 %v1380_v43  ;;  %v1375_v47 = vpop.permute.xlu0 %1374  ;;  %v647_v48 = vpack.c.bf16 %v477_v41, %v476_v44 }
  0xf5   : > { %v1377_v0 = vunpack.i.h.bf16 %v1375_v47  ;;  %v1376_v5 = vunpack.i.l.bf16 %v1375_v47  ;;  %781 = vmatmul.mubr.bf16.gmra.mrb[4].mxu0 %v1413_v40 }
  0xf6   : > { %1043 = vmatpush3.bf16.msra.mxu1 %v647_v48  ;;  %v597_v49 = vsel %vm591_vm5, %v1381_v46, %v1382_v45  ;;  %1067 = vmatprep.mubr.msk.bf16.mxu0 %vm733_vm6, %v1417_v42 }
  0xf7   : > { %v1390_v51 = vpop.permute.xlu1 %1389  ;;  %v596_v52 = vsel %vm591_vm5, %v1376_v5, %v1377_v0 }
  0xf8   : > { %v1392_v53 = vunpack.i.h.bf16 %v1390_v51  ;;  %v1391_v54 = vunpack.i.l.bf16 %v1390_v51  ;;  %v1385_v55 = vpop.permute.xlu0 %1384  ;;  %v656_v23 = vpack.c.bf16 %v597_v49, %v596_v52 }
  0xf9   : > { %v1387_v25 = vunpack.i.h.bf16 %v1385_v55  ;;  %v1386_v32 = vunpack.i.l.bf16 %v1385_v55  ;;  %822 = vmatmul.mubr.bf16.vlgmr.msra.gmra.mrb[0].mxu1 %v1408_v34 }
  0xfa   : > { %1061 = vmatprep.subr.bf16.mxu0 %v656_v23  ;;  %v599_v56 = vsel %vm591_vm5, %v1391_v54, %v1392_v53  ;;  %829 = vmatprep.mubr.bf16.mxu1 %v1414_v50 }
  0xfb   : > { %1062 = vmatpush3.bf16.msra.mxu0 %v656_v23  ;;  %v1400_v57 = vpop.permute.xlu1 %1399  ;;  %v598_v58 = vsel %vm591_vm5, %v1386_v32, %v1387_v25 }
  0xfc   : > { %v1402_v59 = vunpack.i.h.bf16 %v1400_v57  ;;  %v1401_v60 = vunpack.i.l.bf16 %v1400_v57  ;;  %v1395_v61 = vpop.permute.xlu0 %1394  ;;  %v657_v62 = vpack.c.bf16 %v599_v56, %v598_v58 }
  0xfd   : > { %v1397_v63 = vunpack.i.h.bf16 %v1395_v61  ;;  %v1396_v1 = vunpack.i.l.bf16 %v1395_v61 }
  0xfe   : > { %1063 = vmatprep.subr.bf16.mxu0 %v657_v62  ;;  %v601_v4 = vsel %vm591_vm5, %v1401_v60, %v1402_v59 }
  0xff   : > { %1064 = vmatpush3.bf16.msra.mxu0 %v657_v62  ;;  %v600_v6 = vsel %vm591_vm5, %v1396_v1, %v1397_v63 }
 0x100   : > { %v658_v7 = vpack.c.bf16 %v601_v4, %v600_v6 }
 0x101   : > { %830 = vmatmul.mubr.bf16.gmra.mrb[4].mxu1 %v1416_v3 }
 0x102   : > { %1065 = vmatprep.subr.bf16.mxu0 %v658_v7 }
 0x103   : > { %1066 = vmatpush3.bf16.msra.mxu0 %v658_v7 }
 0x106   : > { %1068 = vmatmul.mubr.msk.bf16.vlgmr.msra.gmra.mrb[8].mxu0 %vm733_vm6, %v1418_v9 }
 0x10c   : > { %v671_v26 = vpop.permute.xlu1 %670 }
 0x10d   : > { %v666_v2 = vpop.permute.xlu0 %665 }
 0x110   : > { %v676_v12 = vpop.permute.xlu1 %675 }
 0x111   : > { %v681_v39 = vpop.permute.xlu0 %680 }
 0x1c0   : > { %v1016_v10 = vpop.f32.mrb[0].mxu0 }
 0x1c1   : > { %v1017_v11 = vpop.f32.mrb[1].mxu0 }
 0x1c2   : > { %v1018_v13 = vadd.f32 %v1017_v11, %v1016_v10  ;;  %v1019_v15 = vpop.f32.mrb[2].mxu0 }
 0x1c3   : > { %v1020_v17 = vpop.f32.mrb[3].mxu0 }
 0x1c4   : > { %v1021_v18 = vadd.f32 %v1020_v17, %v1019_v15  ;;  %v775_v29 = vadd.f32 %v1018_v13, %v666_v2 }
 0x1c6   : > { %v778_v35 = vadd.f32 %v1021_v18, %v671_v26 }
 0x1c8   : > { %v1022_v19 = vpop.f32.mrb[4].mxu0 }
 0x1c9   : > { %v1023_v20 = vpop.f32.mrb[5].mxu0 }
 0x1ca   : > { %v1024_v16 = vadd.f32 %v1023_v20, %v1022_v19  ;;  %v1025_v21 = vpop.f32.mrb[6].mxu0 }
 0x1cb   : > { %v1026_v8 = vpop.f32.mrb[7].mxu0 }
 0x1cc   : > { %v1044_v33 = vpop.f32.mrb[0].mxu1  ;;  %v1027_v22 = vadd.f32 %v1026_v8, %v1025_v21  ;;  %v783_v42 = vadd.f32 %v1024_v16, %v676_v12 }
 0x1cd   : > { %v1045_v24 = vpop.f32.mrb[1].mxu1 }
 0x1ce   : > { %v1046_v27 = vadd.f32 %v1045_v24, %v1044_v33  ;;  %v1047_v28 = vpop.f32.mrb[2].mxu1  ;;  %v786_v44 = vadd.f32 %v1027_v22, %v681_v39 }
 0x1cf   : > { %v1048_v30 = vpop.f32.mrb[3].mxu1 }
 0x1d0   : > { %v1049_v36 = vadd.f32 %v1048_v30, %v1047_v28  ;;  %v824_v37 = vadd.f32 %v1046_v27, %v775_v29 }
 0x1d2   : > { %v827_v38 = vadd.f32 %v1049_v36, %v778_v35 }
 0x1d4   : > { %v1050_v14 = vpop.f32.mrb[4].mxu1 }
 0x1d5   : > { %v1051_v31 = vpop.f32.mrb[5].mxu1 }
 0x1d6   : > { %v1052_v40 = vadd.f32 %v1051_v31, %v1050_v14  ;;  %v1053_v41 = vpop.f32.mrb[6].mxu1 }
 0x1d7   : > { %v1054_v43 = vpop.f32.mrb[7].mxu1 }
 0x1d8   : > { %v1055_v45 = vadd.f32 %v1054_v43, %v1053_v41  ;;  %v832_v46 = vadd.f32 %v1052_v40, %v783_v42 }
 0x1d9   : > { %v1069_v47 = vpop.f32.mrb[8].mxu0 }
 0x1da   : > { %v881_v48 = vadd.f32 %v1069_v47, %v832_v46  ;;  %v872_v0 = vpop.f32.mrb[9].mxu0  ;;  %v835_v5 = vadd.f32 %v1055_v45, %v786_v44 }
 0x1db   : > { %v873_v34 = vadd.f32 %v872_v0, %v824_v37  ;;  %v1070_v49 = vpop.f32.mrb[10].mxu0 }
 0x1dc   : > { %889 = vst [vmem:[%s204_s7 + $0x10] sm:$0xff] %v881_v48  ;;  %v884_v50 = vadd.f32 %v1070_v49, %v835_v5  ;;  %v875_v51 = vpop.f32.mrb[11].mxu0 }
 0x1dd   : > { %887 = vst [vmem:[%s204_s7] sm:$0xff] %v873_v34  ;;  %v876_v52 = vadd.f32 %v875_v51, %v827_v38 }
 0x1de   : > { %890 = vst [vmem:[%s204_s7 + $0x18] sm:$0xff] %v884_v50 }
 0x1df   : > { %888 = vst [vmem:[%s204_s7 + $0x8] sm:$0xff] %v876_v52 }
 0x1e0 PF: > { %s13_s14 = sadd.s32 1, %s1441_s14   ;;  %s1780_s12 = smov %s1437_s13 }
 0x1e1   : > { %p10_p5 = scmp.ge.s32.totalorder %s13_s14, 4   ;;  %s1781_s13 = smov %s1783_s15 }
 0x1e3   :  { %12 = sbr.rel (!%p10_p5) target bundleno = 2 (0x2), region = 62 }

// kernel: hifi_forward.13
= control target key start
LH: loop header
LB: loop body
LE: loop exit
PB: predicated region body
PF: predicated region fallthrough
CT: control target
= control target key end

     0   :  { %s756_s12 = smov 0   ;;  %s758_s13 = smov 0   ;;  %s831_s0 = inlined_call_operand.vmem [shape: f32[2,1,32,130], index: 0, kind: input, shape index: {}]   ;;  %s832_s1 = inlined_call_operand.vmem [shape: bf16[4,16,32], index: 1, kind: input, shape index: {}]   ;;  %s833_s2 = inlined_call_operand.vmem [shape: f32[16,1], index: 2, kind: input, shape index: {}]   ;;  %s834_s3 = inlined_call_operand.vmem [shape: f32[2,2,16,128], index: 3, kind: output, shape index: {}]  }
   0x1   :  { %s760_s14 = smov 0  }
   0x2 LB: > { %s25_s15 = sadd.s32 1, %s725_s13  ;;  %p603_p0 = scmp.ge.s32.totalorder %s729_s14, 1  ;;  %s729_s14 = sphi %s760_s14, %s13_s14   ;;  %s725_s13 = sphi %s758_s13, %s836_s13   ;;  %s721_s12 = sphi %s756_s12, %s835_s12  }
   0x3   : > { %p27_p1 = scmp.ge.s32.totalorder %s25_s15, 2  ;;  %p157_p2 = scmp.lt.s32.totalorder %s729_s14, 3 }
   0x5   : > { %s838_s15 = smov (%p27_p1, %s25_s15), 0  ;;  %p158_p3 = pnand %p603_p0, %p157_p2 }
   0x6   : > { %p188_p4 = scmp.lt.s32.totalorder (!%p158_p3), %s721_s12, 1  ;;  %v731_v0 = vmov (!%p158_p3), 0.0   ;;  %vm732_vm0 = vmmov (!%p158_p3), 0   ;;  %s733_s20 = smov (!%p158_p3), 127   ;;  %v703_v29 = vld [vmem:[%s832_s1 + $0x18] sm:$0xff] (!%p158_p3)   ;;  %vm253_vm9 = vcmask (!%p158_p3), 261120  }
   0x7   : > { %161 = sbr.rel (%p158_p3) target bundleno = 379 (0x17b), region = 32  ;;  %640 = vmatprep.subr.bf16.mxu0 (!%p158_p3), %v731_v0  ;;  %648 = vmatprep.subr.bf16.mxu1 (!%p158_p3), %v731_v0  ;;  %s734_s23 = smov (!%p158_p3), 126   ;;  %v735_v30 = vmov (!%p158_p3), 0   ;;  %v365_v31 = vld [vmem:[%s833_s2 + $0x8] sm:$0xff] (!%p158_p3)  ;;  %v364_v32 = vld [vmem:[%s833_s2] sm:$0xff] (!%p158_p3)  ;;  %vm315_vm10 = vcmask (!%p158_p3), 1039360  }
   0x8   : > { %644 = vmatprep.mubr.msk.bf16.mxu0 (!%p158_p3), %vm732_vm0, %v731_v0  ;;  %652 = vmatprep.mubr.msk.bf16.mxu1 (!%p158_p3), %vm732_vm0, %v731_v0  ;;  %vm447_vm11 = vcmask (!%p158_p3), 1031168   ;;  %v704_v41 = vld [vmem:[%s832_s1 + $0x8] sm:$0xff] (!%p158_p3)   ;;  %v705_v42 = vld [vmem:[%s832_s1 + $0x10] sm:$0xff] (!%p158_p3)   ;;  %v706_v47 = vld [vmem:[%s832_s1] sm:$0xff] (!%p158_p3)  }
   0x9   : > { %701 = vset.pattern.permute.xlu0 (!%p158_p3), %v735_v30  ;;  %702 = vset.pattern.permute.xlu1 (!%p158_p3), %v735_v30 }
   0xe   : > { %s840_s12 = smov (!%p188_p4, %s721_s12), 1 }
   0xf   : > { %s626_s16 = sshll.u32 %s840_s12, 6  ;;  %s627_s7 = sshll.u32 %s840_s12, 5 }
  0x10   : > { %s196_s19 = scalar_lea.vmem %s831_s0, %s626_s16  ;;  %s204_s10 = scalar_lea.vmem %s834_s3, %s627_s7 }
  0x11   : > { %v210_v1 = vld [vmem:[%s196_s19 + $0x20] sm:$0xff]  ;;  %v212_v2 = vld [vmem:[%s196_s19 + $0x30] sm:$0xff]  ;;  %v211_v8 = vld [vmem:[%s196_s19 + $0x28] sm:$0xff] }
  0x12   : > { %v206_v3 = vld [vmem:[%s196_s19] sm:$0xff]  ;;  %vm218_vm1 = vcmp.ge.f32.partialorder %v210_v1, 0.0  ;;  %vm220_vm2 = vcmp.ge.f32.partialorder %v212_v2, 0.0  ;;  %v226_v4 = vmul.f32 0.01, %v210_v1  ;;  %v208_v6 = vld [vmem:[%s196_s19 + $0x10] sm:$0xff] }
  0x13   : > { %v228_v5 = vmul.f32 0.01, %v212_v2  ;;  %vm214_vm3 = vcmp.ge.f32.partialorder %v206_v3, 0.0  ;;  %v222_v7 = vmul.f32 0.01, %v206_v3  ;;  %v213_v9 = vld [vmem:[%s196_s19 + $0x38] sm:$0xff] }
  0x14   : > { %v234_v10 = vsel %vm218_vm1, %v210_v1, %v226_v4  ;;  %vm216_vm4 = vcmp.ge.f32.partialorder %v208_v6, 0.0  ;;  %v224_v12 = vmul.f32 0.01, %v208_v6  ;;  %v207_v13 = vld [vmem:[%s196_s19 + $0x8] sm:$0xff]  ;;  %v209_v14 = vld [vmem:[%s196_s19 + $0x18] sm:$0xff]  ;;  %vm219_vm5 = vcmp.ge.f32.partialorder %v211_v8, 0.0 }
  0x15   : > { %v236_v11 = vsel %vm220_vm2, %v212_v2, %v228_v5  ;;  %v230_v16 = vsel %vm214_vm3, %v206_v3, %v222_v7  ;;  %vm221_vm6 = vcmp.ge.f32.partialorder %v213_v9, 0.0  ;;  %v227_v18 = vmul.f32 0.01, %v211_v8 }
  0x16   : > { %v240_v15 = vpack.c.bf16 %v236_v11, %v234_v10  ;;  %v232_v17 = vsel %vm216_vm4, %v208_v6, %v224_v12  ;;  %v229_v19 = vmul.f32 0.01, %v213_v9  ;;  %vm215_vm7 = vcmp.ge.f32.partialorder %v207_v13, 0.0 }
  0x17   : > { %v238_v20 = vpack.c.bf16 %v232_v17, %v230_v16  ;;  %vm217_vm8 = vcmp.ge.f32.partialorder %v209_v14, 0.0  ;;  %v223_v21 = vmul.f32 0.01, %v207_v13  ;;  %v225_v22 = vmul.f32 0.01, %v209_v14 }
  0x18   : > { %311 = vrot.lane.b32.xlu1 %v240_v15, %s733_s20  ;;  %v235_v23 = vsel %vm219_vm5, %v211_v8, %v227_v18  ;;  %v237_v24 = vsel %vm221_vm6, %v213_v9, %v229_v19 }
  0x19   : > { %307 = vrot.lane.b32.xlu0 %v238_v20, %s733_s20  ;;  %v241_v25 = vpack.c.bf16 %v237_v24, %v235_v23  ;;  %v231_v26 = vsel %vm215_vm7, %v207_v13, %v223_v21  ;;  %v233_v27 = vsel %vm217_vm8, %v209_v14, %v225_v22  ;;  %641 = vmatpush3.bf16.msra.mxu0 %v238_v20 }
  0x1a   : > { %v239_v28 = vpack.c.bf16 %v233_v27, %v231_v26  ;;  %642 = vmatprep.subr.bf16.mxu0 %v731_v0 }
  0x1c   : > { %313 = vrot.lane.b32.xlu1 %v241_v25, %s733_s20 }
  0x1d   : > { %309 = vrot.lane.b32.xlu0 %v239_v28, %s733_s20  ;;  %643 = vmatpush3.bf16.msra.mxu0 %v240_v15 }
  0x1e   : > { %656 = vmatprep.subr.bf16.mxu0 %v731_v0 }
  0x20   : > { %441 = vrot.lane.b32.xlu1 %v239_v28, %s734_s23  ;;  %645 = vmatmul.mubr.msk.bf16.vlgmr.msra.gmra.mrb[0].mxu0 %vm253_vm9, %v703_v29 }
  0x21   : > { %439 = vrot.lane.b32.xlu0 %v238_v20, %s734_s23  ;;  %660 = vmatprep.mubr.msk.bf16.mxu0 %vm732_vm0, %v731_v0 }
  0x24   : > { %445 = vrot.lane.b32.xlu1 %v241_v25, %s734_s23 }
  0x25   : > { %443 = vrot.lane.b32.xlu0 %v240_v15, %s734_s23 }
  0x28   : > { %373 = vperm.xlu1 %702, %v365_v31  }
  0x29   : > { %368 = vperm.xlu0 %701, %v364_v32  }
  0x2c   : > { %500 = vperm.xlu1 %702, %v364_v32  }
  0x2d   : > { %505 = vperm.xlu0 %701, %v365_v31  }
  0x8a   : > { %v312_v33 = vpop.permute.xlu1 %311 }
  0x8b   : > { %v308_v34 = vpop.permute.xlu0 %307 }
  0x8e   : > { %v314_v35 = vpop.permute.xlu1 %313 }
  0x8f   : > { %v310_v36 = vpop.permute.xlu0 %309  ;;  %v317_v40 = vsel %vm315_vm10, %v312_v33, %v314_v35 }
  0x90   : > { %v316_v37 = vsel %vm315_vm10, %v308_v34, %v310_v36 }
  0x91   : > { %649 = vmatpush3.bf16.msra.mxu1 %v316_v37  ;;  %657 = vmatpush3.bf16.msra.mxu0 %v316_v37 }
  0x92   : > { %v442_v38 = vpop.permute.xlu1 %441  ;;  %650 = vmatprep.subr.bf16.mxu1 %v731_v0  ;;  %658 = vmatprep.subr.bf16.mxu0 %v731_v0 }
  0x93   : > { %v440_v39 = vpop.permute.xlu0 %439 }
  0x94   : > { %v448_v43 = vsel %vm447_vm11, %v440_v39, %v442_v38 }
  0x95   : > { %651 = vmatpush3.bf16.msra.mxu1 %v317_v40  ;;  %659 = vmatpush3.bf16.msra.mxu0 %v317_v40 }
  0x96   : > { %664 = vmatprep.subr.bf16.mxu1 %v731_v0  ;;  %v446_v44 = vpop.permute.xlu1 %445 }
  0x97   : > { %v444_v45 = vpop.permute.xlu0 %443 }
  0x98   : > { %653 = vmatmul.mubr.msk.bf16.vlgmr.msra.gmra.mrb[0].mxu1 %vm253_vm9, %v704_v41  ;;  %661 = vmatmul.mubr.msk.bf16.vlgmr.msra.gmra.mrb[4].mxu0 %vm253_vm9, %v705_v42  ;;  %v449_v46 = vsel %vm447_vm11, %v444_v45, %v446_v44 }
  0x99   : > { %665 = vmatpush3.bf16.msra.mxu1 %v448_v43  ;;  %668 = vmatprep.mubr.msk.bf16.mxu1 %vm732_vm0, %v731_v0 }
  0x9a   : > { %666 = vmatprep.subr.bf16.mxu1 %v731_v0 }
  0x9d   : > { %667 = vmatpush3.bf16.msra.mxu1 %v449_v46 }
  0xa0   : > { %669 = vmatmul.mubr.msk.bf16.vlgmr.msra.gmra.mrb[4].mxu1 %vm253_vm9, %v706_v47 }
  0xa7   : > { %v374_v53 = vpop.permute.xlu1 %373 }
  0xa8   : > { %v369_v52 = vpop.permute.xlu0 %368 }
  0xab   : > { %v501_v5 = vpop.permute.xlu1 %500 }
  0xac   : > { %v506_v10 = vpop.permute.xlu0 %505 }
  0xf3   : > { %v291_v48 = vpop.f32.mrb[0].mxu0 }
  0xf4   : > { %v646_v49 = vpop.f32.mrb[1].mxu0 }
  0xf5   : > { %v294_v50 = vpop.f32.mrb[2].mxu0 }
  0xf6   : > { %v647_v51 = vpop.f32.mrb[3].mxu0 }
 0x16b   : > { %v357_v54 = vpop.f32.mrb[0].mxu1  ;;  %v427_v55 = vpop.f32.mrb[4].mxu0 }
 0x16c   : > { %v358_v56 = vadd.f32 %v357_v54, %v291_v48  ;;  %v654_v57 = vpop.f32.mrb[1].mxu1  ;;  %v662_v58 = vpop.f32.mrb[5].mxu0 }
 0x16d   : > { %v360_v59 = vpop.f32.mrb[2].mxu1  ;;  %v430_v60 = vpop.f32.mrb[6].mxu0 }
 0x16e   : > { %v361_v61 = vadd.f32 %v360_v59, %v294_v50  ;;  %v655_v62 = vpop.f32.mrb[3].mxu1  ;;  %v376_v63 = vadd.f32 %v369_v52, %v358_v56  ;;  %v663_v0 = vpop.f32.mrb[7].mxu0 }
 0x170   : > { %378 = vst [vmem:[%s204_s10] sm:$0xff] %v376_v63  ;;  %v377_v1 = vadd.f32 %v374_v53, %v361_v61 }
 0x172   : > { %379 = vst [vmem:[%s204_s10 + $0x8] sm:$0xff] %v377_v1 }
 0x173   : > { %v489_v2 = vpop.f32.mrb[4].mxu1 }
 0x174   : > { %v490_v3 = vadd.f32 %v489_v2, %v427_v55  ;;  %v670_v4 = vpop.f32.mrb[5].mxu1 }
 0x175   : > { %v492_v6 = vpop.f32.mrb[6].mxu1 }
 0x176   : > { %v508_v7 = vadd.f32 %v501_v5, %v490_v3  ;;  %v493_v8 = vadd.f32 %v492_v6, %v430_v60  ;;  %v671_v9 = vpop.f32.mrb[7].mxu1 }
 0x178   : > { %622 = vst [vmem:[%s204_s10 + $0x10] sm:$0xff] %v508_v7  ;;  %v509_v11 = vadd.f32 %v506_v10, %v493_v8 }
 0x17a   : > { %623 = vst [vmem:[%s204_s10 + $0x18] sm:$0xff] %v509_v11 }
 0x17b PF: > { %s13_s14 = sadd.s32 1, %s729_s14   ;;  %s835_s12 = smov %s725_s13 }
 0x17c   : > { %p10_p5 = scmp.ge.s32.totalorder %s13_s14, 4   ;;  %s836_s13 = smov %s838_s15 }
 0x17e   :  { %12 = sbr.rel (!%p10_p5) target bundleno = 2 (0x2), region = 66 }

// kernel: hifi_forward.14
= control target key start
LH: loop header
LB: loop body
LE: loop exit
PB: predicated region body
PF: predicated region fallthrough
CT: control target
= control target key end

     0   :  { %s555_s12 = smov 0   ;;  %s557_s13 = smov 0   ;;  %s609_s0 = inlined_call_operand.vmem [shape: f32[2,1,16,130], index: 0, kind: input, shape index: {}]   ;;  %s610_s1 = inlined_call_operand.vmem [shape: bf16[16,48], index: 1, kind: input, shape index: {}]   ;;  %s611_s2 = inlined_call_operand.vmem [shape: f32[16,1], index: 2, kind: input, shape index: {}]   ;;  %s612_s3 = inlined_call_operand.vmem [shape: f32[2,16,128], index: 3, kind: output, shape index: {}]  }
   0x1   :  { %s559_s14 = smov 0  }
   0x2 LB: > { %s25_s15 = sadd.s32 1, %s524_s13  ;;  %p429_p0 = scmp.ge.s32.totalorder %s528_s14, 1  ;;  %s528_s14 = sphi %s559_s14, %s13_s14   ;;  %s524_s13 = sphi %s557_s13, %s614_s13   ;;  %s520_s12 = sphi %s555_s12, %s613_s12  }
   0x3   : > { %p27_p1 = scmp.ge.s32.totalorder %s25_s15, 2  ;;  %p157_p2 = scmp.lt.s32.totalorder %s528_s14, 3 }
   0x5   : > { %s616_s15 = smov (%p27_p1, %s25_s15), 0  ;;  %p158_p3 = pnand %p429_p0, %p157_p2 }
   0x6   : > { %p188_p4 = scmp.lt.s32.totalorder (!%p158_p3), %s520_s12, 1  ;;  %v530_v0 = vmov (!%p158_p3), 0.0   ;;  %s531_s20 = smov (!%p158_p3), 126   ;;  %vm533_vm4 = vmmov (!%p158_p3), 0   ;;  %v534_v16 = vmov (!%p158_p3), 0   ;;  %v258_v17 = vld [vmem:[%s611_s2 + $0x8] sm:$0xff] (!%p158_p3) }
   0x7   : > { %161 = sbr.rel (%p158_p3) target bundleno = 373 (0x175), region = 32  ;;  %444 = vmatprep.subr.bf16.mxu0 (!%p158_p3), %v530_v0  ;;  %s532_s21 = smov (!%p158_p3), 127   ;;  %450 = vmatprep.mubr.msk.bf16.mxu0 (!%p158_p3), %vm533_vm4, %v530_v0  ;;  %v257_v18 = vld [vmem:[%s611_s2] sm:$0xff] (!%p158_p3)  ;;  %vm234_vm5 = vcmask (!%p158_p3), 1039360   ;;  %vm247_vm6 = vcmask (!%p158_p3), 1031168   ;;  %vm274_vm7 = vcmask (!%p158_p3), 392192  }
   0x8   : > { %504 = vset.pattern.permute.xlu1 (!%p158_p3), %v534_v16  ;;  %503 = vset.pattern.permute.xlu0 (!%p158_p3), %v534_v16  ;;  %v505_v37 = vld [vmem:[%s610_s1] sm:$0xff] (!%p158_p3)  }
   0xe   : > { %s618_s12 = smov (!%p188_p4, %s520_s12), 1 }
   0xf   : > { %s438_s16 = sshll.u32 %s618_s12, 5  ;;  %s439_s28 = sshll.u32 %s618_s12, 4 }
  0x10   : > { %s196_s19 = scalar_lea.vmem %s609_s0, %s438_s16  ;;  %s204_s4 = scalar_lea.vmem %s612_s3, %s439_s28 }
  0x11   : > { %v206_v1 = vld [vmem:[%s196_s19] sm:$0xff]  ;;  %v207_v2 = vld [vmem:[%s196_s19 + $0x8] sm:$0xff]  ;;  %v208_v3 = vld [vmem:[%s196_s19 + $0x10] sm:$0xff] }
  0x12   : > { %vm210_vm0 = vcmp.ge.f32.partialorder %v206_v1, 0.0  ;;  %vm211_vm1 = vcmp.ge.f32.partialorder %v207_v2, 0.0  ;;  %v214_v4 = vmul.f32 0.01, %v206_v1  ;;  %v215_v5 = vmul.f32 0.01, %v207_v2 }
  0x13   : > { %v209_v6 = vld [vmem:[%s196_s19 + $0x18] sm:$0xff]  ;;  %vm212_vm2 = vcmp.ge.f32.partialorder %v208_v3, 0.0  ;;  %v216_v7 = vmul.f32 0.01, %v208_v3 }
  0x14   : > { %v218_v8 = vsel %vm210_vm0, %v206_v1, %v214_v4  ;;  %v219_v9 = vsel %vm211_vm1, %v207_v2, %v215_v5  ;;  %vm213_vm3 = vcmp.ge.f32.partialorder %v209_v6, 0.0  ;;  %v217_v10 = vmul.f32 0.01, %v209_v6 }
  0x15   : > { %v493_v11 = vpack.i.bf16 %v219_v9, %v218_v8  ;;  %v220_v12 = vsel %vm212_vm2, %v208_v3, %v216_v7 }
  0x16   : > { %v221_v13 = vsel %vm213_vm3, %v209_v6, %v217_v10  ;;  %v254_v14 = vpack.c.bf16 %v220_v12, %v218_v8 }
  0x17   : > { %494 = vrot.lane.b32.xlu1 %v493_v11, %s531_s20  ;;  %484 = vrot.lane.b32.xlu0 %v493_v11, %s532_s21  ;;  %v498_v15 = vpack.i.bf16 %v221_v13, %v220_v12 }
  0x18   : > { %445 = vmatpush3.bf16.msra.mxu0 %v254_v14 }
  0x19   : > { %446 = vmatprep.subr.bf16.mxu0 %v530_v0 }
  0x1b   : > { %499 = vrot.lane.b32.xlu1 %v498_v15, %s531_s20  ;;  %489 = vrot.lane.b32.xlu0 %v498_v15, %s532_s21 }
  0x1f   : > { %266 = vperm.xlu1 %504, %v258_v17   ;;  %261 = vperm.xlu0 %503, %v257_v18  }
  0x23   : > { %323 = vrot.lane.b32.xlu1 %v206_v1, %s532_s21  ;;  %325 = vrot.lane.b32.xlu0 %v207_v2, %s532_s21 }
  0x27   : > { %327 = vrot.lane.b32.xlu1 %v208_v3, %s532_s21  ;;  %329 = vrot.lane.b32.xlu0 %v209_v6, %s532_s21 }
  0x89   : > { %v495_v19 = vpop.permute.xlu1 %494  ;;  %v485_v20 = vpop.permute.xlu0 %484 }
  0x8a   : > { %v487_v21 = vunpack.i.h.bf16 %v485_v20  ;;  %v486_v22 = vunpack.i.l.bf16 %v485_v20  ;;  %v497_v23 = vunpack.i.h.bf16 %v495_v19  ;;  %v496_v24 = vunpack.i.l.bf16 %v495_v19 }
  0x8c   : > { %v235_v31 = vsel %vm234_vm5, %v486_v22, %v487_v21  ;;  %v248_v34 = vsel %vm247_vm6, %v496_v24, %v497_v23 }
  0x8d   : > { %v500_v25 = vpop.permute.xlu1 %499  ;;  %v490_v26 = vpop.permute.xlu0 %489 }
  0x8e   : > { %v502_v27 = vunpack.i.h.bf16 %v500_v25  ;;  %v501_v28 = vunpack.i.l.bf16 %v500_v25  ;;  %v492_v29 = vunpack.i.h.bf16 %v490_v26  ;;  %v491_v30 = vunpack.i.l.bf16 %v490_v26 }
  0x90   : > { %v236_v32 = vsel %vm234_vm5, %v491_v30, %v492_v29  ;;  %v249_v35 = vsel %vm247_vm6, %v501_v28, %v502_v27 }
  0x91   : > { %v255_v33 = vpack.c.bf16 %v236_v32, %v235_v31  ;;  %v256_v36 = vpack.c.bf16 %v249_v35, %v248_v34 }
  0x93   : > { %447 = vmatpush3.bf16.msra.mxu0 %v255_v33 }
  0x94   : > { %448 = vmatprep.subr.bf16.mxu0 %v530_v0 }
  0x97   : > { %449 = vmatpush3.bf16.msra.mxu0 %v256_v36 }
  0x9a   : > { %451 = vmatmul.mubr.msk.bf16.vlgmr.msra.gmra.mrb[0].mxu0 %vm274_vm7, %v505_v37 }
  0x9e   : > { %v267_v38 = vpop.permute.xlu1 %266  ;;  %v262_v39 = vpop.permute.xlu0 %261 }
  0xa2   : > { %v324_v40 = vpop.permute.xlu1 %323  ;;  %v326_v41 = vpop.permute.xlu0 %325 }
  0xa3   : > { %v331_v47 = vsel %vm234_vm5, %v324_v40, %v326_v41 }
  0xa6   : > { %v328_v42 = vpop.permute.xlu1 %327  ;;  %v330_v43 = vpop.permute.xlu0 %329 }
  0xa7   : > { %v332_v49 = vsel %vm234_vm5, %v328_v42, %v330_v43 }
 0x16d   : > { %v312_v44 = vpop.f32.mrb[0].mxu0 }
 0x16e   : > { %v313_v45 = vadd.f32 %v312_v44, %v262_v39  ;;  %v452_v46 = vpop.f32.mrb[1].mxu0 }
 0x16f   : > { %v315_v48 = vpop.f32.mrb[2].mxu0 }
 0x170   : > { %v335_v50 = vadd.f32 %v331_v47, %v313_v45  ;;  %v316_v51 = vadd.f32 %v315_v48, %v267_v38  ;;  %v453_v52 = vpop.f32.mrb[3].mxu0 }
 0x172   : > { %337 = vst [vmem:[%s204_s4] sm:$0xff] %v335_v50  ;;  %v336_v53 = vadd.f32 %v332_v49, %v316_v51 }
 0x174   : > { %338 = vst [vmem:[%s204_s4 + $0x8] sm:$0xff] %v336_v53 }
 0x175 PF: > { %s13_s14 = sadd.s32 1, %s528_s14   ;;  %s613_s12 = smov %s524_s13 }
 0x176   : > { %p10_p5 = scmp.ge.s32.totalorder %s13_s14, 4   ;;  %s614_s13 = smov %s616_s15 }
 0x178   :  { %12 = sbr.rel (!%p10_p5) target bundleno = 2 (0x2), region = 62 }

// kernel: hifi_forward.15
= control target key start
LH: loop header
LB: loop body
LE: loop exit
PB: predicated region body
PF: predicated region fallthrough
CT: control target
= control target key end

     0   :  { %s555_s12 = smov 0   ;;  %s557_s13 = smov 0   ;;  %s609_s0 = inlined_call_operand.vmem [shape: f32[2,1,16,134], index: 0, kind: input, shape index: {}]   ;;  %s610_s1 = inlined_call_operand.vmem [shape: bf16[16,48], index: 1, kind: input, shape index: {}]   ;;  %s611_s2 = inlined_call_operand.vmem [shape: f32[16,1], index: 2, kind: input, shape index: {}]   ;;  %s612_s3 = inlined_call_operand.vmem [shape: f32[2,16,128], index: 3, kind: output, shape index: {}]  }
   0x1   :  { %s559_s14 = smov 0  }
   0x2 LB: > { %s25_s15 = sadd.s32 1, %s524_s13  ;;  %p429_p0 = scmp.ge.s32.totalorder %s528_s14, 1  ;;  %s528_s14 = sphi %s559_s14, %s13_s14   ;;  %s524_s13 = sphi %s557_s13, %s614_s13   ;;  %s520_s12 = sphi %s555_s12, %s613_s12  }
   0x3   : > { %p27_p1 = scmp.ge.s32.totalorder %s25_s15, 2  ;;  %p157_p2 = scmp.lt.s32.totalorder %s528_s14, 3 }
   0x5   : > { %s616_s15 = smov (%p27_p1, %s25_s15), 0  ;;  %p158_p3 = pnand %p429_p0, %p157_p2 }
   0x6   : > { %p188_p4 = scmp.lt.s32.totalorder (!%p158_p3), %s520_s12, 1  ;;  %v530_v0 = vmov (!%p158_p3), 0.0   ;;  %s531_s20 = smov (!%p158_p3), 122   ;;  %vm533_vm4 = vmmov (!%p158_p3), 0   ;;  %v534_v16 = vmov (!%p158_p3), 0   ;;  %v258_v17 = vld [vmem:[%s611_s2 + $0x8] sm:$0xff] (!%p158_p3) }
   0x7   : > { %161 = sbr.rel (%p158_p3) target bundleno = 373 (0x175), region = 32  ;;  %444 = vmatprep.subr.bf16.mxu0 (!%p158_p3), %v530_v0  ;;  %s532_s21 = smov (!%p158_p3), 125   ;;  %450 = vmatprep.mubr.msk.bf16.mxu0 (!%p158_p3), %vm533_vm4, %v530_v0  ;;  %v257_v18 = vld [vmem:[%s611_s2] sm:$0xff] (!%p158_p3)  ;;  %vm234_vm5 = vcmask (!%p158_p3), 1022976   ;;  %vm247_vm6 = vcmask (!%p158_p3), 998400   ;;  %vm274_vm7 = vcmask (!%p158_p3), 392192  }
   0x8   : > { %504 = vset.pattern.permute.xlu1 (!%p158_p3), %v534_v16  ;;  %503 = vset.pattern.permute.xlu0 (!%p158_p3), %v534_v16  ;;  %v505_v37 = vld [vmem:[%s610_s1] sm:$0xff] (!%p158_p3)  }
   0xe   : > { %s618_s12 = smov (!%p188_p4, %s520_s12), 1 }
   0xf   : > { %s438_s16 = sshll.u32 %s618_s12, 5  ;;  %s439_s28 = sshll.u32 %s618_s12, 4 }
  0x10   : > { %s196_s19 = scalar_lea.vmem %s609_s0, %s438_s16  ;;  %s204_s4 = scalar_lea.vmem %s612_s3, %s439_s28 }
  0x11   : > { %v206_v1 = vld [vmem:[%s196_s19] sm:$0xff]  ;;  %v207_v2 = vld [vmem:[%s196_s19 + $0x8] sm:$0xff]  ;;  %v208_v3 = vld [vmem:[%s196_s19 + $0x10] sm:$0xff] }
  0x12   : > { %vm210_vm0 = vcmp.ge.f32.partialorder %v206_v1, 0.0  ;;  %vm211_vm1 = vcmp.ge.f32.partialorder %v207_v2, 0.0  ;;  %v214_v4 = vmul.f32 0.01, %v206_v1  ;;  %v215_v5 = vmul.f32 0.01, %v207_v2 }
  0x13   : > { %v209_v6 = vld [vmem:[%s196_s19 + $0x18] sm:$0xff]  ;;  %vm212_vm2 = vcmp.ge.f32.partialorder %v208_v3, 0.0  ;;  %v216_v7 = vmul.f32 0.01, %v208_v3 }
  0x14   : > { %v218_v8 = vsel %vm210_vm0, %v206_v1, %v214_v4  ;;  %v219_v9 = vsel %vm211_vm1, %v207_v2, %v215_v5  ;;  %vm213_vm3 = vcmp.ge.f32.partialorder %v209_v6, 0.0  ;;  %v217_v10 = vmul.f32 0.01, %v209_v6 }
  0x15   : > { %v493_v11 = vpack.i.bf16 %v219_v9, %v218_v8  ;;  %v220_v12 = vsel %vm212_vm2, %v208_v3, %v216_v7 }
  0x16   : > { %v221_v13 = vsel %vm213_vm3, %v209_v6, %v217_v10  ;;  %v254_v14 = vpack.c.bf16 %v220_v12, %v218_v8 }
  0x17   : > { %494 = vrot.lane.b32.xlu1 %v493_v11, %s531_s20  ;;  %484 = vrot.lane.b32.xlu0 %v493_v11, %s532_s21  ;;  %v498_v15 = vpack.i.bf16 %v221_v13, %v220_v12 }
  0x18   : > { %445 = vmatpush3.bf16.msra.mxu0 %v254_v14 }
  0x19   : > { %446 = vmatprep.subr.bf16.mxu0 %v530_v0 }
  0x1b   : > { %499 = vrot.lane.b32.xlu1 %v498_v15, %s531_s20  ;;  %489 = vrot.lane.b32.xlu0 %v498_v15, %s532_s21 }
  0x1f   : > { %266 = vperm.xlu1 %504, %v258_v17   ;;  %261 = vperm.xlu0 %503, %v257_v18  }
  0x23   : > { %323 = vrot.lane.b32.xlu1 %v206_v1, %s532_s21  ;;  %325 = vrot.lane.b32.xlu0 %v207_v2, %s532_s21 }
  0x27   : > { %327 = vrot.lane.b32.xlu1 %v208_v3, %s532_s21  ;;  %329 = vrot.lane.b32.xlu0 %v209_v6, %s532_s21 }
  0x89   : > { %v495_v19 = vpop.permute.xlu1 %494  ;;  %v485_v20 = vpop.permute.xlu0 %484 }
  0x8a   : > { %v487_v21 = vunpack.i.h.bf16 %v485_v20  ;;  %v486_v22 = vunpack.i.l.bf16 %v485_v20  ;;  %v497_v23 = vunpack.i.h.bf16 %v495_v19  ;;  %v496_v24 = vunpack.i.l.bf16 %v495_v19 }
  0x8c   : > { %v235_v31 = vsel %vm234_vm5, %v486_v22, %v487_v21  ;;  %v248_v34 = vsel %vm247_vm6, %v496_v24, %v497_v23 }
  0x8d   : > { %v500_v25 = vpop.permute.xlu1 %499  ;;  %v490_v26 = vpop.permute.xlu0 %489 }
  0x8e   : > { %v502_v27 = vunpack.i.h.bf16 %v500_v25  ;;  %v501_v28 = vunpack.i.l.bf16 %v500_v25  ;;  %v492_v29 = vunpack.i.h.bf16 %v490_v26  ;;  %v491_v30 = vunpack.i.l.bf16 %v490_v26 }
  0x90   : > { %v236_v32 = vsel %vm234_vm5, %v491_v30, %v492_v29  ;;  %v249_v35 = vsel %vm247_vm6, %v501_v28, %v502_v27 }
  0x91   : > { %v255_v33 = vpack.c.bf16 %v236_v32, %v235_v31  ;;  %v256_v36 = vpack.c.bf16 %v249_v35, %v248_v34 }
  0x93   : > { %447 = vmatpush3.bf16.msra.mxu0 %v255_v33 }
  0x94   : > { %448 = vmatprep.subr.bf16.mxu0 %v530_v0 }
  0x97   : > { %449 = vmatpush3.bf16.msra.mxu0 %v256_v36 }
  0x9a   : > { %451 = vmatmul.mubr.msk.bf16.vlgmr.msra.gmra.mrb[0].mxu0 %vm274_vm7, %v505_v37 }
  0x9e   : > { %v267_v38 = vpop.permute.xlu1 %266  ;;  %v262_v39 = vpop.permute.xlu0 %261 }
  0xa2   : > { %v324_v40 = vpop.permute.xlu1 %323  ;;  %v326_v41 = vpop.permute.xlu0 %325 }
  0xa3   : > { %v331_v47 = vsel %vm234_vm5, %v324_v40, %v326_v41 }
  0xa6   : > { %v328_v42 = vpop.permute.xlu1 %327  ;;  %v330_v43 = vpop.permute.xlu0 %329 }
  0xa7   : > { %v332_v49 = vsel %vm234_vm5, %v328_v42, %v330_v43 }
 0x16d   : > { %v312_v44 = vpop.f32.mrb[0].mxu0 }
 0x16e   : > { %v313_v45 = vadd.f32 %v312_v44, %v262_v39  ;;  %v452_v46 = vpop.f32.mrb[1].mxu0 }
 0x16f   : > { %v315_v48 = vpop.f32.mrb[2].mxu0 }
 0x170   : > { %v335_v50 = vadd.f32 %v331_v47, %v313_v45  ;;  %v316_v51 = vadd.f32 %v315_v48, %v267_v38  ;;  %v453_v52 = vpop.f32.mrb[3].mxu0 }
 0x172   : > { %337 = vst [vmem:[%s204_s4] sm:$0xff] %v335_v50  ;;  %v336_v53 = vadd.f32 %v332_v49, %v316_v51 }
 0x174   : > { %338 = vst [vmem:[%s204_s4 + $0x8] sm:$0xff] %v336_v53 }
 0x175 PF: > { %s13_s14 = sadd.s32 1, %s528_s14   ;;  %s613_s12 = smov %s524_s13 }
 0x176   : > { %p10_p5 = scmp.ge.s32.totalorder %s13_s14, 4   ;;  %s614_s13 = smov %s616_s15 }
 0x178   :  { %12 = sbr.rel (!%p10_p5) target bundleno = 2 (0x2), region = 62 }

// kernel: hifi_forward.16
= control target key start
LH: loop header
LB: loop body
LE: loop exit
PB: predicated region body
PF: predicated region fallthrough
CT: control target
= control target key end

     0   :  { %s613_s12 = smov 0   ;;  %s615_s13 = smov 0   ;;  %s669_s0 = inlined_call_operand.vmem [shape: f32[2,1,16,132], index: 0, kind: input, shape index: {}]   ;;  %s670_s1 = inlined_call_operand.vmem [shape: bf16[16,80], index: 1, kind: input, shape index: {}]   ;;  %s671_s2 = inlined_call_operand.vmem [shape: f32[16,1], index: 2, kind: input, shape index: {}]   ;;  %s672_s3 = inlined_call_operand.vmem [shape: f32[2,16,128], index: 3, kind: output, shape index: {}]  }
   0x1   :  { %s617_s14 = smov 0  }
   0x2 LB: > { %s25_s15 = sadd.s32 1, %s580_s13  ;;  %p457_p0 = scmp.ge.s32.totalorder %s584_s14, 1  ;;  %s584_s14 = sphi %s617_s14, %s13_s14   ;;  %s580_s13 = sphi %s615_s13, %s674_s13   ;;  %s576_s12 = sphi %s613_s12, %s673_s12  }
   0x3   : > { %p27_p1 = scmp.ge.s32.totalorder %s25_s15, 2  ;;  %p157_p2 = scmp.lt.s32.totalorder %s584_s14, 3 }
   0x5   : > { %s676_s15 = smov (%p27_p1, %s25_s15), 0  ;;  %p158_p3 = pnand %p457_p0, %p157_p2 }
   0x6   : > { %p188_p4 = scmp.lt.s32.totalorder (!%p158_p3), %s576_s12, 1  ;;  %v586_v0 = vmov (!%p158_p3), 0.0   ;;  %s587_s20 = smov (!%p158_p3), 126   ;;  %vm590_vm4 = vmmov (!%p158_p3), 0   ;;  %v592_v16 = vmov (!%p158_p3), 0   ;;  %v286_v17 = vld [vmem:[%s671_s2 + $0x8] sm:$0xff] (!%p158_p3) }
   0x7   : > { %161 = sbr.rel (%p158_p3) target bundleno = 381 (0x17d), region = 32  ;;  %474 = vmatprep.subr.bf16.mxu0 (!%p158_p3), %v586_v0  ;;  %s588_s21 = smov (!%p158_p3), 127   ;;  %484 = vmatprep.mubr.msk.bf16.mxu0 (!%p158_p3), %vm590_vm4, %v586_v0  ;;  %v285_v18 = vld [vmem:[%s671_s2] sm:$0xff] (!%p158_p3)  ;;  %vm234_vm5 = vcmask (!%p158_p3), 1039360   ;;  %vm247_vm6 = vcmask (!%p158_p3), 1031168   ;;  %vm260_vm7 = vcmask (!%p158_p3), 1022976  }
   0x8   : > { %s589_s22 = smov (!%p158_p3), 125   ;;  %s591_s23 = smov (!%p158_p3), 124   ;;  %560 = vset.pattern.permute.xlu1 (!%p158_p3), %v592_v16  ;;  %559 = vset.pattern.permute.xlu0 (!%p158_p3), %v592_v16  ;;  %vm273_vm8 = vcmask (!%p158_p3), 1014784   ;;  %v561_v55 = vld [vmem:[%s670_s1] sm:$0xff] (!%p158_p3)   ;;  %vm302_vm9 = vcmask (!%p158_p3), 654336  }
   0xe   : > { %s678_s12 = smov (!%p188_p4, %s576_s12), 1 }
   0xf   : > { %s466_s16 = sshll.u32 %s678_s12, 5  ;;  %s467_s30 = sshll.u32 %s678_s12, 4 }
  0x10   : > { %s196_s19 = scalar_lea.vmem %s669_s0, %s466_s16  ;;  %s204_s6 = scalar_lea.vmem %s672_s3, %s467_s30 }
  0x11   : > { %v206_v1 = vld [vmem:[%s196_s19] sm:$0xff]  ;;  %v207_v2 = vld [vmem:[%s196_s19 + $0x8] sm:$0xff]  ;;  %v208_v3 = vld [vmem:[%s196_s19 + $0x10] sm:$0xff] }
  0x12   : > { %vm210_vm0 = vcmp.ge.f32.partialorder %v206_v1, 0.0  ;;  %vm211_vm1 = vcmp.ge.f32.partialorder %v207_v2, 0.0  ;;  %v214_v4 = vmul.f32 0.01, %v206_v1  ;;  %v215_v5 = vmul.f32 0.01, %v207_v2 }
  0x13   : > { %v209_v6 = vld [vmem:[%s196_s19 + $0x18] sm:$0xff]  ;;  %vm212_vm2 = vcmp.ge.f32.partialorder %v208_v3, 0.0  ;;  %v216_v7 = vmul.f32 0.01, %v208_v3 }
  0x14   : > { %v218_v8 = vsel %vm210_vm0, %v206_v1, %v214_v4  ;;  %v219_v9 = vsel %vm211_vm1, %v207_v2, %v215_v5  ;;  %vm213_vm3 = vcmp.ge.f32.partialorder %v209_v6, 0.0  ;;  %v217_v10 = vmul.f32 0.01, %v209_v6 }
  0x15   : > { %v529_v11 = vpack.i.bf16 %v219_v9, %v218_v8  ;;  %v220_v12 = vsel %vm212_vm2, %v208_v3, %v216_v7 }
  0x16   : > { %v221_v13 = vsel %vm213_vm3, %v209_v6, %v217_v10  ;;  %v280_v14 = vpack.c.bf16 %v220_v12, %v218_v8 }
  0x17   : > { %530 = vrot.lane.b32.xlu1 %v529_v11, %s587_s20  ;;  %520 = vrot.lane.b32.xlu0 %v529_v11, %s588_s21  ;;  %v534_v15 = vpack.i.bf16 %v221_v13, %v220_v12 }
  0x18   : > { %475 = vmatpush3.bf16.msra.mxu0 %v280_v14 }
  0x19   : > { %476 = vmatprep.subr.bf16.mxu0 %v586_v0 }
  0x1b   : > { %535 = vrot.lane.b32.xlu1 %v534_v15, %s587_s20  ;;  %525 = vrot.lane.b32.xlu0 %v534_v15, %s588_s21 }
  0x1f   : > { %545 = vrot.lane.b32.xlu1 %v534_v15, %s589_s22  ;;  %540 = vrot.lane.b32.xlu0 %v529_v11, %s589_s22 }
  0x23   : > { %555 = vrot.lane.b32.xlu1 %v534_v15, %s591_s23  ;;  %550 = vrot.lane.b32.xlu0 %v529_v11, %s591_s23 }
  0x27   : > { %294 = vperm.xlu1 %560, %v286_v17   ;;  %289 = vperm.xlu0 %559, %v285_v18  }
  0x2b   : > { %351 = vrot.lane.b32.xlu1 %v206_v1, %s587_s20  ;;  %353 = vrot.lane.b32.xlu0 %v207_v2, %s587_s20 }
  0x2f   : > { %355 = vrot.lane.b32.xlu1 %v208_v3, %s587_s20  ;;  %357 = vrot.lane.b32.xlu0 %v209_v6, %s587_s20 }
  0x89   : > { %v531_v19 = vpop.permute.xlu1 %530  ;;  %v521_v20 = vpop.permute.xlu0 %520 }
  0x8a   : > { %v523_v21 = vunpack.i.h.bf16 %v521_v20  ;;  %v522_v22 = vunpack.i.l.bf16 %v521_v20  ;;  %v533_v23 = vunpack.i.h.bf16 %v531_v19  ;;  %v532_v24 = vunpack.i.l.bf16 %v531_v19 }
  0x8c   : > { %v235_v31 = vsel %vm234_vm5, %v522_v22, %v523_v21  ;;  %v248_v36 = vsel %vm247_vm6, %v532_v24, %v533_v23 }
  0x8d   : > { %v536_v25 = vpop.permute.xlu1 %535  ;;  %v526_v26 = vpop.permute.xlu0 %525 }
  0x8e   : > { %v538_v27 = vunpack.i.h.bf16 %v536_v25  ;;  %v537_v28 = vunpack.i.l.bf16 %v536_v25  ;;  %v528_v29 = vunpack.i.h.bf16 %v526_v26  ;;  %v527_v30 = vunpack.i.l.bf16 %v526_v26 }
  0x90   : > { %v236_v32 = vsel %vm234_vm5, %v527_v30, %v528_v29  ;;  %v249_v37 = vsel %vm247_vm6, %v537_v28, %v538_v27 }
  0x91   : > { %v281_v33 = vpack.c.bf16 %v236_v32, %v235_v31  ;;  %v546_v34 = vpop.permute.xlu1 %545  ;;  %v541_v35 = vpop.permute.xlu0 %540  ;;  %v282_v44 = vpack.c.bf16 %v249_v37, %v248_v36 }
  0x92   : > { %v548_v38 = vunpack.i.h.bf16 %v546_v34  ;;  %v547_v39 = vunpack.i.l.bf16 %v546_v34  ;;  %v543_v40 = vunpack.i.h.bf16 %v541_v35  ;;  %v542_v41 = vunpack.i.l.bf16 %v541_v35 }
  0x93   : > { %477 = vmatpush3.bf16.msra.mxu0 %v281_v33 }
  0x94   : > { %478 = vmatprep.subr.bf16.mxu0 %v586_v0  ;;  %v261_v42 = vsel %vm260_vm7, %v542_v41, %v543_v40  ;;  %v262_v43 = vsel %vm260_vm7, %v547_v39, %v548_v38 }
  0x95   : > { %v556_v45 = vpop.permute.xlu1 %555  ;;  %v551_v46 = vpop.permute.xlu0 %550  ;;  %v283_v51 = vpack.c.bf16 %v262_v43, %v261_v42 }
  0x96   : > { %v558_v47 = vunpack.i.h.bf16 %v556_v45  ;;  %v557_v48 = vunpack.i.l.bf16 %v556_v45  ;;  %v553_v49 = vunpack.i.h.bf16 %v551_v46  ;;  %v552_v50 = vunpack.i.l.bf16 %v551_v46 }
  0x97   : > { %479 = vmatpush3.bf16.msra.mxu0 %v282_v44 }
  0x98   : > { %480 = vmatprep.subr.bf16.mxu0 %v586_v0  ;;  %v274_v52 = vsel %vm273_vm8, %v552_v50, %v553_v49  ;;  %v275_v53 = vsel %vm273_vm8, %v557_v48, %v558_v47 }
  0x99   : > { %v284_v54 = vpack.c.bf16 %v275_v53, %v274_v52 }
  0x9b   : > { %481 = vmatpush3.bf16.msra.mxu0 %v283_v51 }
  0x9c   : > { %482 = vmatprep.subr.bf16.mxu0 %v586_v0 }
  0x9f   : > { %483 = vmatpush3.bf16.msra.mxu0 %v284_v54 }
  0xa2   : > { %485 = vmatmul.mubr.msk.bf16.vlgmr.msra.gmra.mrb[0].mxu0 %vm302_vm9, %v561_v55 }
  0xa6   : > { %v295_v56 = vpop.permute.xlu1 %294  ;;  %v290_v57 = vpop.permute.xlu0 %289 }
  0xaa   : > { %v352_v58 = vpop.permute.xlu1 %351  ;;  %v354_v59 = vpop.permute.xlu0 %353 }
  0xab   : > { %v359_v2 = vsel %vm247_vm6, %v352_v58, %v354_v59 }
  0xae   : > { %v356_v60 = vpop.permute.xlu1 %355  ;;  %v358_v61 = vpop.permute.xlu0 %357 }
  0xaf   : > { %v360_v3 = vsel %vm247_vm6, %v356_v60, %v358_v61 }
 0x175   : > { %v340_v62 = vpop.f32.mrb[0].mxu0 }
 0x176   : > { %v341_v63 = vadd.f32 %v340_v62, %v290_v57  ;;  %v486_v1 = vpop.f32.mrb[1].mxu0 }
 0x177   : > { %v343_v0 = vpop.f32.mrb[2].mxu0 }
 0x178   : > { %v363_v4 = vadd.f32 %v359_v2, %v341_v63  ;;  %v344_v5 = vadd.f32 %v343_v0, %v295_v56  ;;  %v487_v6 = vpop.f32.mrb[3].mxu0 }
 0x17a   : > { %365 = vst [vmem:[%s204_s6] sm:$0xff] %v363_v4  ;;  %v364_v7 = vadd.f32 %v360_v3, %v344_v5 }
 0x17c   : > { %366 = vst [vmem:[%s204_s6 + $0x8] sm:$0xff] %v364_v7 }
 0x17d PF: > { %s13_s14 = sadd.s32 1, %s584_s14   ;;  %s673_s12 = smov %s580_s13 }
 0x17e   : > { %p10_p5 = scmp.ge.s32.totalorder %s13_s14, 4   ;;  %s674_s13 = smov %s676_s15 }
 0x180   :  { %12 = sbr.rel (!%p10_p5) target bundleno = 2 (0x2), region = 62 }

// kernel: hifi_forward.17
= control target key start
LH: loop header
LB: loop body
LE: loop exit
PB: predicated region body
PF: predicated region fallthrough
CT: control target
= control target key end

     0   :  { %s703_s15 = smov 0   ;;  %s705_s16 = smov 0   ;;  %s762_s0 = inlined_call_operand.vmem [shape: f32[2,1,16,140], index: 0, kind: input, shape index: {}]   ;;  %s763_s1 = inlined_call_operand.vmem [shape: bf16[16,80], index: 1, kind: input, shape index: {}]   ;;  %s764_s2 = inlined_call_operand.vmem [shape: f32[16,1], index: 2, kind: input, shape index: {}]   ;;  %s765_s3 = inlined_call_operand.vmem [shape: f32[2,16,128], index: 3, kind: input, shape index: {}]   ;;  %s766_s4 = inlined_call_operand.vmem [shape: f32[2,16,128], index: 4, kind: output, shape index: {}]  }
   0x1   :  { %s707_s17 = smov 0  }
   0x2 LB: > { %s26_s18 = sadd.s32 1, %s665_s16  ;;  %p539_p0 = scmp.ge.s32.totalorder %s669_s17, 1  ;;  %s669_s17 = sphi %s707_s17, %s14_s17   ;;  %s665_s16 = sphi %s705_s16, %s768_s16   ;;  %s661_s15 = sphi %s703_s15, %s767_s15  }
   0x3   : > { %p28_p1 = scmp.ge.s32.totalorder %s26_s18, 2  ;;  %p197_p2 = scmp.lt.s32.totalorder %s669_s17, 3 }
   0x5   : > { %s770_s18 = smov (%p28_p1, %s26_s18), 0  ;;  %p198_p3 = pnand %p539_p0, %p197_p2 }
   0x6   : > { %p238_p4 = scmp.lt.s32.totalorder (!%p198_p3), %s661_s15, 1  ;;  %v671_v0 = vmov (!%p198_p3), 0.0   ;;  %s672_s23 = smov (!%p198_p3), 122   ;;  %vm675_vm4 = vmmov (!%p198_p3), 0   ;;  %v677_v16 = vmov (!%p198_p3), 0   ;;  %v344_v17 = vld [vmem:[%s764_s2 + $0x8] sm:$0xff] (!%p198_p3) }
   0x7   : > { %201 = sbr.rel (%p198_p3) target bundleno = 385 (0x181), region = 36  ;;  %559 = vmatprep.subr.bf16.mxu0 (!%p198_p3), %v671_v0  ;;  %s673_s24 = smov (!%p198_p3), 125   ;;  %569 = vmatprep.mubr.msk.bf16.mxu0 (!%p198_p3), %vm675_vm4, %v671_v0  ;;  %v343_v18 = vld [vmem:[%s764_s2] sm:$0xff] (!%p198_p3)  ;;  %vm292_vm5 = vcmask (!%p198_p3), 1022976   ;;  %vm305_vm6 = vcmask (!%p198_p3), 998400   ;;  %vm318_vm7 = vcmask (!%p198_p3), 973824  }
   0x8   : > { %s674_s25 = smov (!%p198_p3), 119   ;;  %s676_s26 = smov (!%p198_p3), 116   ;;  %645 = vset.pattern.permute.xlu1 (!%p198_p3), %v677_v16  ;;  %644 = vset.pattern.permute.xlu0 (!%p198_p3), %v677_v16  ;;  %vm331_vm8 = vcmask (!%p198_p3), 949248   ;;  %v646_v55 = vld [vmem:[%s763_s1] sm:$0xff] (!%p198_p3)   ;;  %vm360_vm9 = vcmask (!%p198_p3), 654336  }
   0xe   : > { %s772_s15 = smov (!%p238_p4, %s661_s15), 1 }
   0xf   : > { %s550_s19 = sshll.u32 %s772_s15, 5  ;;  %s551_s7 = sshll.u32 %s772_s15, 4 }
  0x10   : > { %s246_s22 = scalar_lea.vmem %s762_s0, %s550_s19  ;;  %s254_s10 = scalar_lea.vmem %s765_s3, %s551_s7 }
  0x11   : > { %v264_v1 = vld [vmem:[%s246_s22] sm:$0xff]  ;;  %v265_v2 = vld [vmem:[%s246_s22 + $0x8] sm:$0xff]  ;;  %v266_v3 = vld [vmem:[%s246_s22 + $0x10] sm:$0xff]  ;;  %s262_s13 = scalar_lea.vmem %s766_s4, %s551_s7 }
  0x12   : > { %vm268_vm0 = vcmp.ge.f32.partialorder %v264_v1, 0.0  ;;  %vm269_vm1 = vcmp.ge.f32.partialorder %v265_v2, 0.0  ;;  %v272_v4 = vmul.f32 0.01, %v264_v1  ;;  %v273_v5 = vmul.f32 0.01, %v265_v2 }
  0x13   : > { %v267_v6 = vld [vmem:[%s246_s22 + $0x18] sm:$0xff]  ;;  %vm270_vm2 = vcmp.ge.f32.partialorder %v266_v3, 0.0  ;;  %v274_v7 = vmul.f32 0.01, %v266_v3 }
  0x14   : > { %v276_v8 = vsel %vm268_vm0, %v264_v1, %v272_v4  ;;  %v277_v9 = vsel %vm269_vm1, %v265_v2, %v273_v5  ;;  %vm271_vm3 = vcmp.ge.f32.partialorder %v267_v6, 0.0  ;;  %v275_v10 = vmul.f32 0.01, %v267_v6 }
  0x15   : > { %v614_v11 = vpack.i.bf16 %v277_v9, %v276_v8  ;;  %v278_v12 = vsel %vm270_vm2, %v266_v3, %v274_v7 }
  0x16   : > { %v279_v13 = vsel %vm271_vm3, %v267_v6, %v275_v10  ;;  %v338_v14 = vpack.c.bf16 %v278_v12, %v276_v8  ;;  %v424_v8 = vld [vmem:[%s254_s10 + $0x8] sm:$0xff] }
  0x17   : > { %615 = vrot.lane.b32.xlu1 %v614_v11, %s672_s23  ;;  %605 = vrot.lane.b32.xlu0 %v614_v11, %s673_s24  ;;  %v619_v15 = vpack.i.bf16 %v279_v13, %v278_v12 }
  0x18   : > { %560 = vmatpush3.bf16.msra.mxu0 %v338_v14 }
  0x19   : > { %561 = vmatprep.subr.bf16.mxu0 %v671_v0 }
  0x1b   : > { %620 = vrot.lane.b32.xlu1 %v619_v15, %s672_s23  ;;  %610 = vrot.lane.b32.xlu0 %v619_v15, %s673_s24 }
  0x1f   : > { %630 = vrot.lane.b32.xlu1 %v619_v15, %s674_s25  ;;  %625 = vrot.lane.b32.xlu0 %v614_v11, %s674_s25 }
  0x23   : > { %640 = vrot.lane.b32.xlu1 %v619_v15, %s676_s26  ;;  %635 = vrot.lane.b32.xlu0 %v614_v11, %s676_s26 }
  0x27   : > { %352 = vperm.xlu1 %645, %v344_v17   ;;  %347 = vperm.xlu0 %644, %v343_v18  }
  0x2b   : > { %409 = vrot.lane.b32.xlu1 %v264_v1, %s672_s23  ;;  %411 = vrot.lane.b32.xlu0 %v265_v2, %s672_s23  ;;  %v423_v2 = vld [vmem:[%s254_s10] sm:$0xff] }
  0x2f   : > { %413 = vrot.lane.b32.xlu1 %v266_v3, %s672_s23  ;;  %415 = vrot.lane.b32.xlu0 %v267_v6, %s672_s23 }
  0x89   : > { %v616_v19 = vpop.permute.xlu1 %615  ;;  %v606_v20 = vpop.permute.xlu0 %605 }
  0x8a   : > { %v608_v21 = vunpack.i.h.bf16 %v606_v20  ;;  %v607_v22 = vunpack.i.l.bf16 %v606_v20  ;;  %v618_v23 = vunpack.i.h.bf16 %v616_v19  ;;  %v617_v24 = vunpack.i.l.bf16 %v616_v19 }
  0x8c   : > { %v293_v31 = vsel %vm292_vm5, %v607_v22, %v608_v21  ;;  %v306_v36 = vsel %vm305_vm6, %v617_v24, %v618_v23 }
  0x8d   : > { %v621_v25 = vpop.permute.xlu1 %620  ;;  %v611_v26 = vpop.permute.xlu0 %610 }
  0x8e   : > { %v623_v27 = vunpack.i.h.bf16 %v621_v25  ;;  %v622_v28 = vunpack.i.l.bf16 %v621_v25  ;;  %v613_v29 = vunpack.i.h.bf16 %v611_v26  ;;  %v612_v30 = vunpack.i.l.bf16 %v611_v26 }
  0x90   : > { %v294_v32 = vsel %vm292_vm5, %v612_v30, %v613_v29  ;;  %v307_v37 = vsel %vm305_vm6, %v622_v28, %v623_v27 }
  0x91   : > { %v339_v33 = vpack.c.bf16 %v294_v32, %v293_v31  ;;  %v631_v34 = vpop.permute.xlu1 %630  ;;  %v626_v35 = vpop.permute.xlu0 %625  ;;  %v340_v44 = vpack.c.bf16 %v307_v37, %v306_v36 }
  0x92   : > { %v633_v38 = vunpack.i.h.bf16 %v631_v34  ;;  %v632_v39 = vunpack.i.l.bf16 %v631_v34  ;;  %v628_v40 = vunpack.i.h.bf16 %v626_v35  ;;  %v627_v41 = vunpack.i.l.bf16 %v626_v35 }
  0x93   : > { %562 = vmatpush3.bf16.msra.mxu0 %v339_v33 }
  0x94   : > { %563 = vmatprep.subr.bf16.mxu0 %v671_v0  ;;  %v319_v42 = vsel %vm318_vm7, %v627_v41, %v628_v40  ;;  %v320_v43 = vsel %vm318_vm7, %v632_v39, %v633_v38 }
  0x95   : > { %v641_v45 = vpop.permute.xlu1 %640  ;;  %v636_v46 = vpop.permute.xlu0 %635  ;;  %v341_v51 = vpack.c.bf16 %v320_v43, %v319_v42 }
  0x96   : > { %v643_v47 = vunpack.i.h.bf16 %v641_v45  ;;  %v642_v48 = vunpack.i.l.bf16 %v641_v45  ;;  %v638_v49 = vunpack.i.h.bf16 %v636_v46  ;;  %v637_v50 = vunpack.i.l.bf16 %v636_v46 }
  0x97   : > { %564 = vmatpush3.bf16.msra.mxu0 %v340_v44 }
  0x98   : > { %565 = vmatprep.subr.bf16.mxu0 %v671_v0  ;;  %v332_v52 = vsel %vm331_vm8, %v637_v50, %v638_v49  ;;  %v333_v53 = vsel %vm331_vm8, %v642_v48, %v643_v47 }
  0x99   : > { %v342_v54 = vpack.c.bf16 %v333_v53, %v332_v52 }
  0x9b   : > { %566 = vmatpush3.bf16.msra.mxu0 %v341_v51 }
  0x9c   : > { %567 = vmatprep.subr.bf16.mxu0 %v671_v0 }
  0x9f   : > { %568 = vmatpush3.bf16.msra.mxu0 %v342_v54 }
  0xa2   : > { %570 = vmatmul.mubr.msk.bf16.vlgmr.msra.gmra.mrb[0].mxu0 %vm360_vm9, %v646_v55 }
  0xa6   : > { %v353_v56 = vpop.permute.xlu1 %352  ;;  %v348_v57 = vpop.permute.xlu0 %347 }
  0xaa   : > { %v410_v58 = vpop.permute.xlu1 %409  ;;  %v412_v59 = vpop.permute.xlu0 %411 }
  0xab   : > { %v417_v1 = vsel %vm305_vm6, %v410_v58, %v412_v59 }
  0xae   : > { %v414_v60 = vpop.permute.xlu1 %413  ;;  %v416_v61 = vpop.permute.xlu0 %415 }
  0xaf   : > { %v418_v4 = vsel %vm305_vm6, %v414_v60, %v416_v61 }
 0x175   : > { %v398_v62 = vpop.f32.mrb[0].mxu0 }
 0x176   : > { %v399_v63 = vadd.f32 %v398_v62, %v348_v57  ;;  %v571_v0 = vpop.f32.mrb[1].mxu0 }
 0x177   : > { %v401_v3 = vpop.f32.mrb[2].mxu0 }
 0x178   : > { %v421_v5 = vadd.f32 %v417_v1, %v399_v63  ;;  %v402_v6 = vadd.f32 %v401_v3, %v353_v56  ;;  %v572_v7 = vpop.f32.mrb[3].mxu0 }
 0x17a   : > { %v425_v9 = vadd.f32 %v423_v2, %v421_v5  ;;  %v422_v10 = vadd.f32 %v418_v4, %v402_v6 }
 0x17c   : > { %v427_v11 = vmul.f32 0.5, %v425_v9  ;;  %v426_v12 = vadd.f32 %v424_v8, %v422_v10 }
 0x17e   : > { %429 = vst [vmem:[%s262_s13] sm:$0xff] %v427_v11  ;;  %v428_v13 = vmul.f32 0.5, %v426_v12 }
 0x180   : > { %430 = vst [vmem:[%s262_s13 + $0x8] sm:$0xff] %v428_v13 }
 0x181 PF: > { %s14_s17 = sadd.s32 1, %s669_s17   ;;  %s767_s15 = smov %s665_s16 }
 0x182   : > { %p11_p5 = scmp.ge.s32.totalorder %s14_s17, 4   ;;  %s768_s16 = smov %s770_s18 }
 0x184   :  { %13 = sbr.rel (!%p11_p5) target bundleno = 2 (0x2), region = 69 }

// kernel: hifi_forward.18
= control target key start
LH: loop header
LB: loop body
LE: loop exit
PB: predicated region body
PF: predicated region fallthrough
CT: control target
= control target key end

     0   :  { %s656_s12 = smov 0   ;;  %s658_s13 = smov 0   ;;  %s716_s0 = inlined_call_operand.vmem [shape: f32[2,1,16,130], index: 0, kind: input, shape index: {}]   ;;  %s717_s1 = inlined_call_operand.vmem [shape: bf16[4,8,16], index: 1, kind: input, shape index: {}]   ;;  %s718_s2 = inlined_call_operand.vmem [shape: f32[8,1], index: 2, kind: input, shape index: {}]   ;;  %s719_s3 = inlined_call_operand.vmem [shape: f32[2,2,8,128], index: 3, kind: output, shape index: {}]  }
   0x1   :  { %s660_s14 = smov 0  }
   0x2 LB: > { %s25_s15 = sadd.s32 1, %s625_s13  ;;  %p527_p0 = scmp.ge.s32.totalorder %s629_s14, 1  ;;  %s629_s14 = sphi %s660_s14, %s13_s14   ;;  %s625_s13 = sphi %s658_s13, %s721_s13   ;;  %s621_s12 = sphi %s656_s12, %s720_s12  }
   0x3   : > { %p27_p1 = scmp.ge.s32.totalorder %s25_s15, 2  ;;  %p157_p2 = scmp.lt.s32.totalorder %s629_s14, 3 }
   0x5   : > { %s723_s15 = smov (%p27_p1, %s25_s15), 0  ;;  %p158_p3 = pnand %p527_p0, %p157_p2 }
   0x6   : > { %p188_p4 = scmp.lt.s32.totalorder (!%p158_p3), %s621_s12, 1  ;;  %v631_v0 = vmov (!%p158_p3), 0.0   ;;  %vm632_vm0 = vmmov (!%p158_p3), 0   ;;  %s633_s20 = smov (!%p158_p3), 126   ;;  %v533_v15 = vld [vmem:[%s717_s1 + $0xc] sm:$0xf] (!%p158_p3) }
   0x7   : > { %161 = sbr.rel (%p158_p3) target bundleno = 371 (0x173), region = 32  ;;  %552 = vmatprep.subr.bf16.mxu0 (!%p158_p3), %v631_v0  ;;  %558 = vmatprep.subr.bf16.mxu1 (!%p158_p3), %v631_v0  ;;  %s634_s21 = smov (!%p158_p3), 127   ;;  %vm228_vm5 = vcmask (!%p158_p3), 130048   ;;  %v635_v16 = vmov (!%p158_p3), 0   ;;  %v324_v17 = vld [vmem:[%s718_s2] sm:$0xff] (!%p158_p3)  ;;  %vm278_vm6 = vcmask (!%p158_p3), 1039360  }
   0x8   : > { %554 = vmatprep.mubr.msk.bf16.mxu0 (!%p158_p3), %vm632_vm0, %v631_v0  ;;  %560 = vmatprep.mubr.msk.bf16.mxu1 (!%p158_p3), %vm632_vm0, %v631_v0  ;;  %vm382_vm7 = vcmask (!%p158_p3), 1031168   ;;  %v532_v23 = vld [vmem:[%s717_s1 + $0x4] sm:$0xf] (!%p158_p3)  ;;  %v536_v24 = vld [vmem:[%s717_s1 + $0x8] sm:$0xf] (!%p158_p3) }
   0x9   : > { %605 = vset.pattern.permute.xlu0 (!%p158_p3), %v635_v16  ;;  %606 = vset.pattern.permute.xlu1 (!%p158_p3), %v635_v16  ;;  %v332_v26 = vld [vmem:[%s717_s1] sm:$0xf] (!%p158_p3) }
   0xe   : > { %s725_s12 = smov (!%p188_p4, %s621_s12), 1 }
   0xf   : > { %s542_s16 = sshll.u32 %s725_s12, 5  ;;  %s543_s5 = sshll.u32 %s725_s12, 4 }
  0x10   : > { %s196_s19 = scalar_lea.vmem %s716_s0, %s542_s16  ;;  %s204_s8 = scalar_lea.vmem %s719_s3, %s543_s5 }
  0x11   : > { %v206_v1 = vld [vmem:[%s196_s19] sm:$0xff]  ;;  %v208_v2 = vld [vmem:[%s196_s19 + $0x10] sm:$0xff]  ;;  %v207_v3 = vld [vmem:[%s196_s19 + $0x8] sm:$0xff] }
  0x12   : > { %vm210_vm1 = vcmp.ge.f32.partialorder %v206_v1, 0.0  ;;  %vm212_vm2 = vcmp.ge.f32.partialorder %v208_v2, 0.0  ;;  %v214_v4 = vmul.f32 0.01, %v206_v1  ;;  %v216_v5 = vmul.f32 0.01, %v208_v2 }
  0x13   : > { %v209_v6 = vld [vmem:[%s196_s19 + $0x18] sm:$0xff]  ;;  %vm211_vm3 = vcmp.ge.f32.partialorder %v207_v3, 0.0  ;;  %v215_v7 = vmul.f32 0.01, %v207_v3 }
  0x14   : > { %v218_v8 = vsel %vm210_vm1, %v206_v1, %v214_v4  ;;  %v220_v9 = vsel %vm212_vm2, %v208_v2, %v216_v5  ;;  %vm213_vm4 = vcmp.ge.f32.partialorder %v209_v6, 0.0  ;;  %v217_v10 = vmul.f32 0.01, %v209_v6 }
  0x15   : > { %v222_v11 = vpack.c.bf16 %v220_v9, %v218_v8  ;;  %v219_v12 = vsel %vm211_vm3, %v207_v3, %v215_v7 }
  0x16   : > { %v221_v13 = vsel %vm213_vm4, %v209_v6, %v217_v10 }
  0x17   : > { %378 = vrot.lane.b32.xlu1 %v222_v11, %s633_s20  ;;  %274 = vrot.lane.b32.xlu0 %v222_v11, %s634_s21  ;;  %v223_v14 = vpack.c.bf16 %v221_v13, %v219_v12 }
  0x18   : > { %553 = vmatpush3.bf16.msra.mxu0 %v222_v11 }
  0x19   : > { %564 = vmatprep.subr.bf16.mxu0 %v631_v0 }
  0x1b   : > { %380 = vrot.lane.b32.xlu1 %v223_v14, %s633_s20  ;;  %276 = vrot.lane.b32.xlu0 %v223_v14, %s634_s21 }
  0x1c   : > { %555 = vmatmul.mubr.msk.bf16.vlgmr.msra.gmra.mrb[0].mxu0 %vm228_vm5, %v533_v15 }
  0x1d   : > { %566 = vmatprep.mubr.msk.bf16.mxu0 %vm632_vm0, %v631_v0 }
  0x1f   : > { %327 = vperm.xlu0 %605, %v324_v17   ;;  %431 = vperm.xlu1 %606, %v324_v17  }
  0x89   : > { %v379_v18 = vpop.permute.xlu1 %378  ;;  %v275_v19 = vpop.permute.xlu0 %274 }
  0x8d   : > { %v381_v20 = vpop.permute.xlu1 %380  ;;  %v277_v21 = vpop.permute.xlu0 %276 }
  0x8e   : > { %v279_v22 = vsel %vm278_vm6, %v275_v19, %v277_v21  ;;  %v383_v25 = vsel %vm382_vm7, %v379_v18, %v381_v20 }
  0x8f   : > { %559 = vmatpush3.bf16.msra.mxu1 %v279_v22  ;;  %565 = vmatpush3.bf16.msra.mxu0 %v279_v22 }
  0x90   : > { %570 = vmatprep.subr.bf16.mxu1 %v631_v0 }
  0x92   : > { %561 = vmatmul.mubr.msk.bf16.vlgmr.msra.gmra.mrb[0].mxu1 %vm228_vm5, %v532_v23  ;;  %567 = vmatmul.mubr.msk.bf16.vlgmr.msra.gmra.mrb[4].mxu0 %vm228_vm5, %v536_v24 }
  0x93   : > { %571 = vmatpush3.bf16.msra.mxu1 %v383_v25  ;;  %572 = vmatprep.mubr.msk.bf16.mxu1 %vm632_vm0, %v631_v0 }
  0x9a   : > { %573 = vmatmul.mubr.msk.bf16.vlgmr.msra.gmra.mrb[4].mxu1 %vm228_vm5, %v332_v26 }
  0x9e   : > { %v328_v31 = vpop.permute.xlu0 %327  ;;  %v432_v43 = vpop.permute.xlu1 %431 }
  0xef   : > { %v266_v27 = vpop.f32.mrb[0].mxu0 }
  0xf0   : > { %v556_v28 = vpop.f32.mrb[1].mxu0 }
  0xf1   : > { %v269_v29 = vpop.f32.mrb[2].mxu0 }
  0xf2   : > { %v557_v30 = vpop.f32.mrb[3].mxu0 }
 0x165   : > { %v318_v32 = vpop.f32.mrb[0].mxu1  ;;  %v372_v33 = vpop.f32.mrb[4].mxu0 }
 0x166   : > { %v319_v34 = vadd.f32 %v318_v32, %v266_v27  ;;  %v562_v35 = vpop.f32.mrb[1].mxu1  ;;  %v568_v36 = vpop.f32.mrb[5].mxu0 }
 0x167   : > { %v321_v37 = vpop.f32.mrb[2].mxu1  ;;  %v375_v38 = vpop.f32.mrb[6].mxu0 }
 0x168   : > { %v563_v39 = vpop.f32.mrb[3].mxu1  ;;  %v330_v40 = vadd.f32 %v328_v31, %v319_v34  ;;  %v569_v41 = vpop.f32.mrb[7].mxu0 }
 0x16a   : > { %331 = vst [vmem:[%s204_s8] sm:$0xff] %v330_v40 }
 0x16d   : > { %v422_v42 = vpop.f32.mrb[4].mxu1 }
 0x16e   : > { %v423_v44 = vadd.f32 %v422_v42, %v372_v33  ;;  %v574_v45 = vpop.f32.mrb[5].mxu1 }
 0x16f   : > { %v425_v46 = vpop.f32.mrb[6].mxu1 }
 0x170   : > { %v434_v47 = vadd.f32 %v432_v43, %v423_v44  ;;  %v575_v48 = vpop.f32.mrb[7].mxu1 }
 0x172   : > { %539 = vst [vmem:[%s204_s8 + $0x8] sm:$0xff] %v434_v47 }
 0x173 PF: > { %s13_s14 = sadd.s32 1, %s629_s14   ;;  %s720_s12 = smov %s625_s13 }
 0x174   : > { %p10_p5 = scmp.ge.s32.totalorder %s13_s14, 4   ;;  %s721_s13 = smov %s723_s15 }
 0x176   :  { %12 = sbr.rel (!%p10_p5) target bundleno = 2 (0x2), region = 66 }

// kernel: hifi_forward.19
= control target key start
LH: loop header
LB: loop body
LE: loop exit
PB: predicated region body
PF: predicated region fallthrough
CT: control target
= control target key end

     0   :  { %s488_s12 = smov 0   ;;  %s490_s13 = smov 0   ;;  %s533_s0 = inlined_call_operand.vmem [shape: f32[2,1,8,130], index: 0, kind: input, shape index: {}]   ;;  %s534_s1 = inlined_call_operand.vmem [shape: bf16[8,24], index: 1, kind: input, shape index: {}]   ;;  %s535_s2 = inlined_call_operand.vmem [shape: f32[8,1], index: 2, kind: input, shape index: {}]   ;;  %s536_s3 = inlined_call_operand.vmem [shape: f32[2,8,128], index: 3, kind: output, shape index: {}]  }
   0x1   :  { %s492_s14 = smov 0  }
   0x2 LB: > { %s25_s15 = sadd.s32 1, %s457_s13  ;;  %p379_p0 = scmp.ge.s32.totalorder %s461_s14, 1  ;;  %s461_s14 = sphi %s492_s14, %s13_s14   ;;  %s457_s13 = sphi %s490_s13, %s538_s13   ;;  %s453_s12 = sphi %s488_s12, %s537_s12  }
   0x3   : > { %p27_p1 = scmp.ge.s32.totalorder %s25_s15, 2  ;;  %p157_p2 = scmp.lt.s32.totalorder %s461_s14, 3 }
   0x5   : > { %s540_s15 = smov (%p27_p1, %s25_s15), 0  ;;  %p158_p3 = pnand %p379_p0, %p157_p2 }
   0x6   : > { %p187_p4 = scmp.lt.s32.totalorder (!%p158_p3), %s453_s12, 1  ;;  %v463_v0 = vmov (!%p158_p3), 0.0   ;;  %vm464_vm2 = vmmov (!%p158_p3), 0   ;;  %s465_s20 = smov (!%p158_p3), 127   ;;  %v231_v8 = vld [vmem:[%s535_s2] sm:$0xff] (!%p158_p3)  ;;  %v466_v9 = vmov (!%p158_p3), 0  }
   0x7   : > { %161 = sbr.rel (%p158_p3) target bundleno = 368 (0x170), region = 32  ;;  %390 = vmatprep.subr.bf16.mxu0 (!%p158_p3), %v463_v0  ;;  %394 = vmatprep.mubr.msk.bf16.mxu0 (!%p158_p3), %vm464_vm2, %v463_v0  ;;  %s467_s23 = smov (!%p158_p3), 126   ;;  %vm218_vm3 = vcmask (!%p158_p3), 1039360   ;;  %vm225_vm4 = vcmask (!%p158_p3), 1031168   ;;  %vm241_vm5 = vcmask (!%p158_p3), 1043456   ;;  %vm237_vm6 = vcmask (!%p158_p3), 195584  }
   0x8   : > { %437 = vset.pattern.permute.xlu1 (!%p158_p3), %v466_v9  ;;  %438 = vset.pattern.permute.xlu0 (!%p158_p3), %v466_v9  ;;  %v228_v21 = vld [vmem:[%s534_s1] sm:$0xf] (!%p158_p3) }
   0x9   : > { %234 = vperm.xlu1 (!%p158_p3), %437, %v231_v8  }
   0xe   : > { %s542_s12 = smov (!%p187_p4, %s453_s12), 1 }
   0xf   : > { %s386_s16 = sshll.u32 %s542_s12, 4  ;;  %s382_s26 = sshll.u32 %s542_s12, 3 }
  0x10   : > { %s195_s19 = scalar_lea.vmem %s533_s0, %s386_s16  ;;  %s202_s29 = scalar_lea.vmem %s536_s3, %s382_s26 }
  0x11   : > { %v204_v1 = vld [vmem:[%s195_s19] sm:$0xff]  ;;  %v205_v2 = vld [vmem:[%s195_s19 + $0x8] sm:$0xff] }
  0x12   : > { %vm206_vm0 = vcmp.ge.f32.partialorder %v204_v1, 0.0  ;;  %vm207_vm1 = vcmp.ge.f32.partialorder %v205_v2, 0.0  ;;  %v208_v3 = vmul.f32 0.01, %v204_v1  ;;  %v209_v4 = vmul.f32 0.01, %v205_v2  ;;  %287 = vrot.lane.b32.xlu1 %v204_v1, %s465_s20 }
  0x14   : > { %v210_v5 = vsel %vm206_vm0, %v204_v1, %v208_v3  ;;  %v211_v6 = vsel %vm207_vm1, %v205_v2, %v209_v4 }
  0x15   : > { %v427_v7 = vpack.i.bf16 %v211_v6, %v210_v5 }
  0x17   : > { %428 = vrot.lane.b32.xlu0 %v427_v7, %s465_s20 }
  0x1b   : > { %433 = vrot.lane.b32.xlu0 %v427_v7, %s467_s23 }
  0x1f   : > { %289 = vrot.lane.b32.xlu0 %v205_v2, %s465_s20 }
  0x88   : > { %v235_v22 = vpop.permute.xlu1 %234 }
  0x89   : > { %v429_v10 = vpop.permute.xlu0 %428 }
  0x8a   : > { %v431_v11 = vunpack.i.h.bf16 %v429_v10  ;;  %v430_v12 = vunpack.i.l.bf16 %v429_v10 }
  0x8c   : > { %v219_v13 = vsel %vm218_vm3, %v430_v12, %v431_v11  ;;  %v288_v23 = vpop.permute.xlu1 %287 }
  0x8d   : > { %v434_v14 = vpop.permute.xlu0 %433  ;;  %v229_v15 = vpack.c.bf16 %v219_v13, %v210_v5 }
  0x8e   : > { %v436_v16 = vunpack.i.h.bf16 %v434_v14  ;;  %v435_v17 = vunpack.i.l.bf16 %v434_v14 }
  0x8f   : > { %391 = vmatpush3.bf16.msra.mxu0 %v229_v15 }
  0x90   : > { %392 = vmatprep.subr.bf16.mxu0 %v463_v0  ;;  %v226_v18 = vsel %vm225_vm4, %v435_v17, %v436_v16 }
  0x91   : > { %v230_v19 = vpack.c.bf16 %v226_v18, %v226_v18  ;;  %v290_v24 = vpop.permute.xlu0 %289 }
  0x92   : > { %v291_v26 = vsel %vm218_vm3, %v288_v23, %v290_v24 }
  0x93   : > { %v243_v20 = vsel %vm241_vm5, %v230_v19, 0 }
  0x94   : > { %393 = vmatpush3.bf16.msra.mxu0 %v243_v20 }
  0x97   : > { %395 = vmatmul.mubr.msk.bf16.vlgmr.msra.gmra.mrb[0].mxu0 %vm237_vm6, %v228_v21 }
 0x16a   : > { %v279_v25 = vpop.f32.mrb[0].mxu0 }
 0x16b   : > { %v280_v27 = vadd.f32 %v279_v25, %v235_v22  ;;  %v396_v28 = vpop.f32.mrb[1].mxu0 }
 0x16c   : > { %v282_v29 = vpop.f32.mrb[2].mxu0 }
 0x16d   : > { %v293_v30 = vadd.f32 %v291_v26, %v280_v27  ;;  %v397_v31 = vpop.f32.mrb[3].mxu0 }
 0x16f   : > { %294 = vst [vmem:[%s202_s29] sm:$0xff] %v293_v30 }
 0x170 PF: > { %s13_s14 = sadd.s32 1, %s461_s14   ;;  %s537_s12 = smov %s457_s13 }
 0x171   : > { %p10_p5 = scmp.ge.s32.totalorder %s13_s14, 4   ;;  %s538_s13 = smov %s540_s15 }
 0x173   :  { %12 = sbr.rel (!%p10_p5) target bundleno = 2 (0x2), region = 62 }

// kernel: hifi_forward.20
= control target key start
LH: loop header
LB: loop body
LE: loop exit
PB: predicated region body
PF: predicated region fallthrough
CT: control target
= control target key end

     0   :  { %s488_s12 = smov 0   ;;  %s490_s13 = smov 0   ;;  %s533_s0 = inlined_call_operand.vmem [shape: f32[2,1,8,134], index: 0, kind: input, shape index: {}]   ;;  %s534_s1 = inlined_call_operand.vmem [shape: bf16[8,24], index: 1, kind: input, shape index: {}]   ;;  %s535_s2 = inlined_call_operand.vmem [shape: f32[8,1], index: 2, kind: input, shape index: {}]   ;;  %s536_s3 = inlined_call_operand.vmem [shape: f32[2,8,128], index: 3, kind: output, shape index: {}]  }
   0x1   :  { %s492_s14 = smov 0  }
   0x2 LB: > { %s25_s15 = sadd.s32 1, %s457_s13  ;;  %p379_p0 = scmp.ge.s32.totalorder %s461_s14, 1  ;;  %s461_s14 = sphi %s492_s14, %s13_s14   ;;  %s457_s13 = sphi %s490_s13, %s538_s13   ;;  %s453_s12 = sphi %s488_s12, %s537_s12  }
   0x3   : > { %p27_p1 = scmp.ge.s32.totalorder %s25_s15, 2  ;;  %p157_p2 = scmp.lt.s32.totalorder %s461_s14, 3 }
   0x5   : > { %s540_s15 = smov (%p27_p1, %s25_s15), 0  ;;  %p158_p3 = pnand %p379_p0, %p157_p2 }
   0x6   : > { %p187_p4 = scmp.lt.s32.totalorder (!%p158_p3), %s453_s12, 1  ;;  %v463_v0 = vmov (!%p158_p3), 0.0   ;;  %vm464_vm2 = vmmov (!%p158_p3), 0   ;;  %s465_s20 = smov (!%p158_p3), 125   ;;  %v231_v8 = vld [vmem:[%s535_s2] sm:$0xff] (!%p158_p3)  ;;  %v466_v9 = vmov (!%p158_p3), 0  }
   0x7   : > { %161 = sbr.rel (%p158_p3) target bundleno = 368 (0x170), region = 32  ;;  %390 = vmatprep.subr.bf16.mxu0 (!%p158_p3), %v463_v0  ;;  %394 = vmatprep.mubr.msk.bf16.mxu0 (!%p158_p3), %vm464_vm2, %v463_v0  ;;  %s467_s23 = smov (!%p158_p3), 122   ;;  %vm218_vm3 = vcmask (!%p158_p3), 1022976   ;;  %vm225_vm4 = vcmask (!%p158_p3), 998400   ;;  %vm241_vm5 = vcmask (!%p158_p3), 1043456   ;;  %vm237_vm6 = vcmask (!%p158_p3), 195584  }
   0x8   : > { %437 = vset.pattern.permute.xlu1 (!%p158_p3), %v466_v9  ;;  %438 = vset.pattern.permute.xlu0 (!%p158_p3), %v466_v9  ;;  %v228_v21 = vld [vmem:[%s534_s1] sm:$0xf] (!%p158_p3) }
   0x9   : > { %234 = vperm.xlu1 (!%p158_p3), %437, %v231_v8  }
   0xe   : > { %s542_s12 = smov (!%p187_p4, %s453_s12), 1 }
   0xf   : > { %s386_s16 = sshll.u32 %s542_s12, 4  ;;  %s382_s26 = sshll.u32 %s542_s12, 3 }
  0x10   : > { %s195_s19 = scalar_lea.vmem %s533_s0, %s386_s16  ;;  %s202_s29 = scalar_lea.vmem %s536_s3, %s382_s26 }
  0x11   : > { %v204_v1 = vld [vmem:[%s195_s19] sm:$0xff]  ;;  %v205_v2 = vld [vmem:[%s195_s19 + $0x8] sm:$0xff] }
  0x12   : > { %vm206_vm0 = vcmp.ge.f32.partialorder %v204_v1, 0.0  ;;  %vm207_vm1 = vcmp.ge.f32.partialorder %v205_v2, 0.0  ;;  %v208_v3 = vmul.f32 0.01, %v204_v1  ;;  %v209_v4 = vmul.f32 0.01, %v205_v2  ;;  %287 = vrot.lane.b32.xlu1 %v204_v1, %s465_s20 }
  0x14   : > { %v210_v5 = vsel %vm206_vm0, %v204_v1, %v208_v3  ;;  %v211_v6 = vsel %vm207_vm1, %v205_v2, %v209_v4 }
  0x15   : > { %v427_v7 = vpack.i.bf16 %v211_v6, %v210_v5 }
  0x17   : > { %428 = vrot.lane.b32.xlu0 %v427_v7, %s465_s20 }
  0x1b   : > { %433 = vrot.lane.b32.xlu0 %v427_v7, %s467_s23 }
  0x1f   : > { %289 = vrot.lane.b32.xlu0 %v205_v2, %s465_s20 }
  0x88   : > { %v235_v22 = vpop.permute.xlu1 %234 }
  0x89   : > { %v429_v10 = vpop.permute.xlu0 %428 }
  0x8a   : > { %v431_v11 = vunpack.i.h.bf16 %v429_v10  ;;  %v430_v12 = vunpack.i.l.bf16 %v429_v10 }
  0x8c   : > { %v219_v13 = vsel %vm218_vm3, %v430_v12, %v431_v11  ;;  %v288_v23 = vpop.permute.xlu1 %287 }
  0x8d   : > { %v434_v14 = vpop.permute.xlu0 %433  ;;  %v229_v15 = vpack.c.bf16 %v219_v13, %v210_v5 }
  0x8e   : > { %v436_v16 = vunpack.i.h.bf16 %v434_v14  ;;  %v435_v17 = vunpack.i.l.bf16 %v434_v14 }
  0x8f   : > { %391 = vmatpush3.bf16.msra.mxu0 %v229_v15 }
  0x90   : > { %392 = vmatprep.subr.bf16.mxu0 %v463_v0  ;;  %v226_v18 = vsel %vm225_vm4, %v435_v17, %v436_v16 }
  0x91   : > { %v230_v19 = vpack.c.bf16 %v226_v18, %v226_v18  ;;  %v290_v24 = vpop.permute.xlu0 %289 }
  0x92   : > { %v291_v26 = vsel %vm218_vm3, %v288_v23, %v290_v24 }
  0x93   : > { %v243_v20 = vsel %vm241_vm5, %v230_v19, 0 }
  0x94   : > { %393 = vmatpush3.bf16.msra.mxu0 %v243_v20 }
  0x97   : > { %395 = vmatmul.mubr.msk.bf16.vlgmr.msra.gmra.mrb[0].mxu0 %vm237_vm6, %v228_v21 }
 0x16a   : > { %v279_v25 = vpop.f32.mrb[0].mxu0 }
 0x16b   : > { %v280_v27 = vadd.f32 %v279_v25, %v235_v22  ;;  %v396_v28 = vpop.f32.mrb[1].mxu0 }
 0x16c   : > { %v282_v29 = vpop.f32.mrb[2].mxu0 }
 0x16d   : > { %v293_v30 = vadd.f32 %v291_v26, %v280_v27  ;;  %v397_v31 = vpop.f32.mrb[3].mxu0 }
 0x16f   : > { %294 = vst [vmem:[%s202_s29] sm:$0xff] %v293_v30 }
 0x170 PF: > { %s13_s14 = sadd.s32 1, %s461_s14   ;;  %s537_s12 = smov %s457_s13 }
 0x171   : > { %p10_p5 = scmp.ge.s32.totalorder %s13_s14, 4   ;;  %s538_s13 = smov %s540_s15 }
 0x173   :  { %12 = sbr.rel (!%p10_p5) target bundleno = 2 (0x2), region = 62 }

// kernel: hifi_forward.21
= control target key start
LH: loop header
LB: loop body
LE: loop exit
PB: predicated region body
PF: predicated region fallthrough
CT: control target
= control target key end

     0   :  { %s519_s12 = smov 0   ;;  %s521_s13 = smov 0   ;;  %s564_s0 = inlined_call_operand.vmem [shape: f32[2,1,8,132], index: 0, kind: input, shape index: {}]   ;;  %s565_s1 = inlined_call_operand.vmem [shape: bf16[8,40], index: 1, kind: input, shape index: {}]   ;;  %s566_s2 = inlined_call_operand.vmem [shape: f32[8,1], index: 2, kind: input, shape index: {}]   ;;  %s567_s3 = inlined_call_operand.vmem [shape: f32[2,8,128], index: 3, kind: output, shape index: {}]  }
   0x1   :  { %s523_s14 = smov 0  }
   0x2 LB: > { %s25_s15 = sadd.s32 1, %s486_s13  ;;  %p394_p0 = scmp.ge.s32.totalorder %s490_s14, 1  ;;  %s490_s14 = sphi %s523_s14, %s13_s14   ;;  %s486_s13 = sphi %s521_s13, %s569_s13   ;;  %s482_s12 = sphi %s519_s12, %s568_s12  }
   0x3   : > { %p27_p1 = scmp.ge.s32.totalorder %s25_s15, 2  ;;  %p157_p2 = scmp.lt.s32.totalorder %s490_s14, 3 }
   0x5   : > { %s571_s15 = smov (%p27_p1, %s25_s15), 0  ;;  %p158_p3 = pnand %p394_p0, %p157_p2 }
   0x6   : > { %p187_p4 = scmp.lt.s32.totalorder (!%p158_p3), %s482_s12, 1  ;;  %v492_v0 = vmov (!%p158_p3), 0.0   ;;  %s493_s20 = smov (!%p158_p3), 127   ;;  %vm495_vm2 = vmmov (!%p158_p3), 0   ;;  %v498_v8 = vmov (!%p158_p3), 0   ;;  %v246_v9 = vld [vmem:[%s566_s2] sm:$0xff] (!%p158_p3) }
   0x7   : > { %161 = sbr.rel (%p158_p3) target bundleno = 371 (0x173), region = 32  ;;  %406 = vmatprep.subr.bf16.mxu0 (!%p158_p3), %v492_v0  ;;  %s494_s21 = smov (!%p158_p3), 125   ;;  %412 = vmatprep.mubr.msk.bf16.mxu0 (!%p158_p3), %vm495_vm2, %v492_v0  ;;  %vm218_vm3 = vcmask (!%p158_p3), 1039360   ;;  %vm232_vm4 = vcmask (!%p158_p3), 1022976   ;;  %vm225_vm5 = vcmask (!%p158_p3), 1031168   ;;  %vm239_vm6 = vcmask (!%p158_p3), 1014784  }
   0x8   : > { %s496_s22 = smov (!%p158_p3), 126   ;;  %s497_s23 = smov (!%p158_p3), 124   ;;  %467 = vset.pattern.permute.xlu0 (!%p158_p3), %v498_v8  ;;  %vm256_vm7 = vcmask (!%p158_p3), 1043456   ;;  %v242_v30 = vld [vmem:[%s565_s1] sm:$0xf] (!%p158_p3)  ;;  %vm252_vm8 = vcmask (!%p158_p3), 326656  }
   0xe   : > { %s573_s12 = smov (!%p187_p4, %s482_s12), 1 }
   0xf   : > { %s401_s16 = sshll.u32 %s573_s12, 4  ;;  %s397_s28 = sshll.u32 %s573_s12, 3 }
  0x10   : > { %s195_s19 = scalar_lea.vmem %s564_s0, %s401_s16  ;;  %s202_s4 = scalar_lea.vmem %s567_s3, %s397_s28 }
  0x11   : > { %v204_v1 = vld [vmem:[%s195_s19] sm:$0xff]  ;;  %v205_v2 = vld [vmem:[%s195_s19 + $0x8] sm:$0xff] }
  0x12   : > { %vm206_vm0 = vcmp.ge.f32.partialorder %v204_v1, 0.0  ;;  %vm207_vm1 = vcmp.ge.f32.partialorder %v205_v2, 0.0  ;;  %v208_v3 = vmul.f32 0.01, %v204_v1  ;;  %v209_v4 = vmul.f32 0.01, %v205_v2 }
  0x14   : > { %v210_v5 = vsel %vm206_vm0, %v204_v1, %v208_v3  ;;  %v211_v6 = vsel %vm207_vm1, %v205_v2, %v209_v4 }
  0x15   : > { %v447_v7 = vpack.i.bf16 %v211_v6, %v210_v5 }
  0x17   : > { %448 = vrot.lane.b32.xlu0 %v447_v7, %s493_s20  ;;  %458 = vrot.lane.b32.xlu1 %v447_v7, %s494_s21 }
  0x1b   : > { %453 = vrot.lane.b32.xlu0 %v447_v7, %s496_s22  ;;  %463 = vrot.lane.b32.xlu1 %v447_v7, %s497_s23 }
  0x1f   : > { %249 = vperm.xlu0 %467, %v246_v9   ;;  %302 = vrot.lane.b32.xlu1 %v204_v1, %s496_s22 }
  0x23   : > { %304 = vrot.lane.b32.xlu1 %v205_v2, %s496_s22 }
  0x89   : > { %v449_v10 = vpop.permute.xlu0 %448  ;;  %v459_v11 = vpop.permute.xlu1 %458 }
  0x8a   : > { %v451_v12 = vunpack.i.h.bf16 %v449_v10  ;;  %v450_v13 = vunpack.i.l.bf16 %v449_v10  ;;  %v461_v14 = vunpack.i.h.bf16 %v459_v11  ;;  %v460_v15 = vunpack.i.l.bf16 %v459_v11 }
  0x8c   : > { %v219_v16 = vsel %vm218_vm3, %v450_v13, %v451_v12  ;;  %v233_v20 = vsel %vm232_vm4, %v460_v15, %v461_v14 }
  0x8d   : > { %v454_v17 = vpop.permute.xlu0 %453  ;;  %v243_v18 = vpack.c.bf16 %v219_v16, %v210_v5  ;;  %v464_v19 = vpop.permute.xlu1 %463 }
  0x8e   : > { %v456_v21 = vunpack.i.h.bf16 %v454_v17  ;;  %v455_v22 = vunpack.i.l.bf16 %v454_v17  ;;  %v466_v23 = vunpack.i.h.bf16 %v464_v19  ;;  %v465_v24 = vunpack.i.l.bf16 %v464_v19 }
  0x8f   : > { %407 = vmatpush3.bf16.msra.mxu0 %v243_v18 }
  0x90   : > { %408 = vmatprep.subr.bf16.mxu0 %v492_v0  ;;  %v226_v25 = vsel %vm225_vm5, %v455_v22, %v456_v21  ;;  %v240_v26 = vsel %vm239_vm6, %v465_v24, %v466_v23 }
  0x91   : > { %v244_v27 = vpack.c.bf16 %v233_v20, %v226_v25  ;;  %v245_v28 = vpack.c.bf16 %v240_v26, %v240_v26  ;;  %v303_v31 = vpop.permute.xlu1 %302 }
  0x93   : > { %409 = vmatpush3.bf16.msra.mxu0 %v244_v27  ;;  %v258_v29 = vsel %vm256_vm7, %v245_v28, 0 }
  0x94   : > { %410 = vmatprep.subr.bf16.mxu0 %v492_v0 }
  0x95   : > { %v305_v33 = vpop.permute.xlu1 %304 }
  0x96   : > { %v306_v37 = vsel %vm225_vm5, %v303_v31, %v305_v33 }
  0x97   : > { %411 = vmatpush3.bf16.msra.mxu0 %v258_v29 }
  0x9a   : > { %413 = vmatmul.mubr.msk.bf16.vlgmr.msra.gmra.mrb[0].mxu0 %vm252_vm8, %v242_v30 }
  0x9e   : > { %v250_v32 = vpop.permute.xlu0 %249 }
 0x16d   : > { %v294_v34 = vpop.f32.mrb[0].mxu0 }
 0x16e   : > { %v295_v35 = vadd.f32 %v294_v34, %v250_v32  ;;  %v414_v36 = vpop.f32.mrb[1].mxu0 }
 0x16f   : > { %v297_v38 = vpop.f32.mrb[2].mxu0 }
 0x170   : > { %v308_v39 = vadd.f32 %v306_v37, %v295_v35  ;;  %v415_v40 = vpop.f32.mrb[3].mxu0 }
 0x172   : > { %309 = vst [vmem:[%s202_s4] sm:$0xff] %v308_v39 }
 0x173 PF: > { %s13_s14 = sadd.s32 1, %s490_s14   ;;  %s568_s12 = smov %s486_s13 }
 0x174   : > { %p10_p5 = scmp.ge.s32.totalorder %s13_s14, 4   ;;  %s569_s13 = smov %s571_s15 }
 0x176   :  { %12 = sbr.rel (!%p10_p5) target bundleno = 2 (0x2), region = 62 }

// kernel: hifi_forward.22
= control target key start
LH: loop header
LB: loop body
LE: loop exit
PB: predicated region body
PF: predicated region fallthrough
CT: control target
= control target key end

     0   :  { %s598_s15 = smov 0   ;;  %s600_s16 = smov 0   ;;  %s646_s0 = inlined_call_operand.vmem [shape: f32[2,1,8,140], index: 0, kind: input, shape index: {}]   ;;  %s647_s1 = inlined_call_operand.vmem [shape: bf16[8,40], index: 1, kind: input, shape index: {}]   ;;  %s648_s2 = inlined_call_operand.vmem [shape: f32[8,1], index: 2, kind: input, shape index: {}]   ;;  %s649_s3 = inlined_call_operand.vmem [shape: f32[2,8,128], index: 3, kind: input, shape index: {}]   ;;  %s650_s4 = inlined_call_operand.vmem [shape: f32[2,8,128], index: 4, kind: output, shape index: {}]  }
   0x1   :  { %s602_s17 = smov 0  }
   0x2 LB: > { %s26_s18 = sadd.s32 1, %s560_s16  ;;  %p467_p0 = scmp.ge.s32.totalorder %s564_s17, 1  ;;  %s564_s17 = sphi %s602_s17, %s14_s17   ;;  %s560_s16 = sphi %s600_s16, %s652_s16   ;;  %s556_s15 = sphi %s598_s15, %s651_s15  }
   0x3   : > { %p28_p1 = scmp.ge.s32.totalorder %s26_s18, 2  ;;  %p196_p2 = scmp.lt.s32.totalorder %s564_s17, 3 }
   0x5   : > { %s654_s18 = smov (%p28_p1, %s26_s18), 0  ;;  %p197_p3 = pnand %p467_p0, %p196_p2 }
   0x6   : > { %p235_p4 = scmp.lt.s32.totalorder (!%p197_p3), %s556_s15, 1  ;;  %v566_v0 = vmov (!%p197_p3), 0.0   ;;  %s567_s23 = smov (!%p197_p3), 125   ;;  %vm569_vm2 = vmmov (!%p197_p3), 0   ;;  %v572_v8 = vmov (!%p197_p3), 0   ;;  %v301_v9 = vld [vmem:[%s648_s2] sm:$0xff] (!%p197_p3) }
   0x7   : > { %200 = sbr.rel (%p197_p3) target bundleno = 375 (0x177), region = 36  ;;  %480 = vmatprep.subr.bf16.mxu0 (!%p197_p3), %v566_v0  ;;  %s568_s24 = smov (!%p197_p3), 119   ;;  %486 = vmatprep.mubr.msk.bf16.mxu0 (!%p197_p3), %vm569_vm2, %v566_v0  ;;  %vm273_vm3 = vcmask (!%p197_p3), 1022976   ;;  %vm287_vm4 = vcmask (!%p197_p3), 973824   ;;  %vm280_vm5 = vcmask (!%p197_p3), 998400   ;;  %vm294_vm6 = vcmask (!%p197_p3), 949248  }
   0x8   : > { %s570_s25 = smov (!%p197_p3), 122   ;;  %s571_s26 = smov (!%p197_p3), 116   ;;  %541 = vset.pattern.permute.xlu0 (!%p197_p3), %v572_v8  ;;  %vm311_vm7 = vcmask (!%p197_p3), 1043456   ;;  %v297_v30 = vld [vmem:[%s647_s1] sm:$0xf] (!%p197_p3)  ;;  %vm307_vm8 = vcmask (!%p197_p3), 326656  }
   0xe   : > { %s656_s15 = smov (!%p235_p4, %s556_s15), 1 }
   0xf   : > { %s475_s19 = sshll.u32 %s656_s15, 4  ;;  %s470_s5 = sshll.u32 %s656_s15, 3 }
  0x10   : > { %s243_s22 = scalar_lea.vmem %s646_s0, %s475_s19  ;;  %s250_s8 = scalar_lea.vmem %s649_s3, %s470_s5 }
  0x11   : > { %v259_v1 = vld [vmem:[%s243_s22] sm:$0xff]  ;;  %v260_v2 = vld [vmem:[%s243_s22 + $0x8] sm:$0xff]  ;;  %s257_s11 = scalar_lea.vmem %s650_s4, %s470_s5 }
  0x12   : > { %vm261_vm0 = vcmp.ge.f32.partialorder %v259_v1, 0.0  ;;  %vm262_vm1 = vcmp.ge.f32.partialorder %v260_v2, 0.0  ;;  %v263_v3 = vmul.f32 0.01, %v259_v1  ;;  %v264_v4 = vmul.f32 0.01, %v260_v2 }
  0x13   : > { %v364_v38 = vld [vmem:[%s250_s8] sm:$0xff] }
  0x14   : > { %v265_v5 = vsel %vm261_vm0, %v259_v1, %v263_v3  ;;  %v266_v6 = vsel %vm262_vm1, %v260_v2, %v264_v4 }
  0x15   : > { %v521_v7 = vpack.i.bf16 %v266_v6, %v265_v5 }
  0x17   : > { %522 = vrot.lane.b32.xlu0 %v521_v7, %s567_s23  ;;  %532 = vrot.lane.b32.xlu1 %v521_v7, %s568_s24 }
  0x1b   : > { %527 = vrot.lane.b32.xlu0 %v521_v7, %s570_s25  ;;  %537 = vrot.lane.b32.xlu1 %v521_v7, %s571_s26 }
  0x1f   : > { %304 = vperm.xlu0 %541, %v301_v9   ;;  %357 = vrot.lane.b32.xlu1 %v259_v1, %s570_s25 }
  0x23   : > { %359 = vrot.lane.b32.xlu1 %v260_v2, %s570_s25 }
  0x89   : > { %v523_v10 = vpop.permute.xlu0 %522  ;;  %v533_v11 = vpop.permute.xlu1 %532 }
  0x8a   : > { %v525_v12 = vunpack.i.h.bf16 %v523_v10  ;;  %v524_v13 = vunpack.i.l.bf16 %v523_v10  ;;  %v535_v14 = vunpack.i.h.bf16 %v533_v11  ;;  %v534_v15 = vunpack.i.l.bf16 %v533_v11 }
  0x8c   : > { %v274_v16 = vsel %vm273_vm3, %v524_v13, %v525_v12  ;;  %v288_v20 = vsel %vm287_vm4, %v534_v15, %v535_v14 }
  0x8d   : > { %v528_v17 = vpop.permute.xlu0 %527  ;;  %v298_v18 = vpack.c.bf16 %v274_v16, %v265_v5  ;;  %v538_v19 = vpop.permute.xlu1 %537 }
  0x8e   : > { %v530_v21 = vunpack.i.h.bf16 %v528_v17  ;;  %v529_v22 = vunpack.i.l.bf16 %v528_v17  ;;  %v540_v23 = vunpack.i.h.bf16 %v538_v19  ;;  %v539_v24 = vunpack.i.l.bf16 %v538_v19 }
  0x8f   : > { %481 = vmatpush3.bf16.msra.mxu0 %v298_v18 }
  0x90   : > { %482 = vmatprep.subr.bf16.mxu0 %v566_v0  ;;  %v281_v25 = vsel %vm280_vm5, %v529_v22, %v530_v21  ;;  %v295_v26 = vsel %vm294_vm6, %v539_v24, %v540_v23 }
  0x91   : > { %v299_v27 = vpack.c.bf16 %v288_v20, %v281_v25  ;;  %v300_v28 = vpack.c.bf16 %v295_v26, %v295_v26  ;;  %v358_v31 = vpop.permute.xlu1 %357 }
  0x93   : > { %483 = vmatpush3.bf16.msra.mxu0 %v299_v27  ;;  %v313_v29 = vsel %vm311_vm7, %v300_v28, 0 }
  0x94   : > { %484 = vmatprep.subr.bf16.mxu0 %v566_v0 }
  0x95   : > { %v360_v33 = vpop.permute.xlu1 %359 }
  0x96   : > { %v361_v37 = vsel %vm280_vm5, %v358_v31, %v360_v33 }
  0x97   : > { %485 = vmatpush3.bf16.msra.mxu0 %v313_v29 }
  0x9a   : > { %487 = vmatmul.mubr.msk.bf16.vlgmr.msra.gmra.mrb[0].mxu0 %vm307_vm8, %v297_v30 }
  0x9e   : > { %v305_v32 = vpop.permute.xlu0 %304 }
 0x16d   : > { %v349_v34 = vpop.f32.mrb[0].mxu0 }
 0x16e   : > { %v350_v35 = vadd.f32 %v349_v34, %v305_v32  ;;  %v488_v36 = vpop.f32.mrb[1].mxu0 }
 0x16f   : > { %v352_v39 = vpop.f32.mrb[2].mxu0 }
 0x170   : > { %v363_v40 = vadd.f32 %v361_v37, %v350_v35  ;;  %v489_v41 = vpop.f32.mrb[3].mxu0 }
 0x172   : > { %v365_v42 = vadd.f32 %v364_v38, %v363_v40 }
 0x174   : > { %v366_v43 = vmul.f32 0.5, %v365_v42 }
 0x176   : > { %367 = vst [vmem:[%s257_s11] sm:$0xff] %v366_v43 }
 0x177 PF: > { %s14_s17 = sadd.s32 1, %s564_s17   ;;  %s651_s15 = smov %s560_s16 }
 0x178   : > { %p11_p5 = scmp.ge.s32.totalorder %s14_s17, 4   ;;  %s652_s16 = smov %s654_s18 }
 0x17a   :  { %13 = sbr.rel (!%p11_p5) target bundleno = 2 (0x2), region = 69 }

// kernel: hifi_forward.23
= control target key start
LH: loop header
LB: loop body
LE: loop exit
PB: predicated region body
PF: predicated region fallthrough
CT: control target
= control target key end

     0   :  { %s762_s0 = inlined_call_operand.vmem [shape: f32[2,1,8,134], index: 0, kind: input, shape index: {}]   ;;  %s763_s1 = inlined_call_operand.vmem [shape: bf16[1,56], index: 1, kind: input, shape index: {}]   ;;  %s764_s2 = inlined_call_operand.<no memory space> [shape: f32[1,1], index: 2, kind: input, shape index: {}]   ;;  %s765_s3 = inlined_call_operand.hbm [shape: f32[2,1,128], index: 3, kind: output, shape index: {}]  }
   0x1   :  { %v8_v0 = vstv %s764_s2 }
   0x2   :  { %9 = vst [vmem:[#allocation2] sm:$0x1] %v8_v0 }
   0x3   :  { %10 = vsyncpa [#allocation4], 0 }
   0x4   :  { %12 = vsyncpa [#allocation4 + $0x1], 0  ;;  %s642_s14 = smov 0   ;;  %s644_s15 = smov 0  }
   0x5   :  { %s646_s16 = smov 0   ;;  %s648_s17 = smov 0  }
   0x6   :  { %s650_s18 = smov 0   ;;  %s652_s19 = smov 0  }
   0x7 LB: > { %s403_s2 = sadd.s32 4294967295, %s607_s19   ;;  %s404_s20 = sadd.s32 4294967294, %s607_s19   ;;  %s607_s19 = sphi %s652_s19, %s18_s19   ;;  %s603_s18 = sphi %s650_s18, %s772_s18   ;;  %s599_s17 = sphi %s648_s17, %s771_s17   ;;  %s595_s16 = sphi %s646_s16, %s770_s16   ;;  %s591_s15 = sphi %s644_s15, %s769_s15   ;;  %s587_s14 = sphi %s642_s14, %s768_s14  }
   0x8   : > { %s30_s21 = sadd.s32 1, %s603_s18  ;;  %s109_s22 = sadd.s32 1, %s595_s16 }
   0x9   : > { %p32_p0 = scmp.ge.s32.totalorder %s30_s21, 2  ;;  %p119_p1 = scmp.ne.s32.totalorder %s595_s16, %s591_s15 }
   0xa   : > { %p120_p2 = scmp.eq.s32.totalorder %s403_s2, 1  ;;  %p125_p3 = scmp.ne.s32.totalorder %s591_s15, %s587_s14 }
   0xb   : > { %s774_s21 = smov (%p32_p0, %s30_s21), 0  ;;  %p126_p5 = scmp.eq.s32.totalorder %s404_s20, 1 }
   0xc   : > { %p682_p4 = por %p120_p2, %p119_p1  ;;  %s104_s24 = ssub.s32 %s603_s18, %s774_s21 }
   0xd   : > { %p407_p6 = scmp.ge.s32.totalorder %s607_s19, 1  ;;  %p107_p7 = scmp.eq.s32.totalorder %s104_s24, 0 }
   0xe   : > { %p689_p8 = por %p126_p5, %p125_p3  ;;  %p162_p9 = scmp.lt.s32.totalorder %s607_s19, 3 }
   0xf   : > { %s695_s26 = scalar_select %p107_p7, %s595_s16, %s109_s22  }
  0x10   : > { %p163_p10 = pnand %p407_p6, %p162_p9 }
  0x11   : > { %p189_p11 = scmp.lt.s32.totalorder (!%p163_p10), %s599_s17, 1  ;;  %v609_v1 = vmov (!%p163_p10), 0.0   ;;  %s610_s5 = smov (!%p163_p10), 127   ;;  %vm614_vm2 = vmmov (!%p163_p10), 0   ;;  %v617_v9 = vmov (!%p163_p10), 0   ;;  %vm213_vm3 = vcmask (!%p163_p10), 1039360  }
  0x12   : > { %166 = sbr.rel (%p163_p10) target bundleno = 409 (0x199), region = 32  ;;  %420 = vmatprep.subr.bf16.mxu0 (!%p163_p10), %v609_v1  ;;  %s611_s6 = smov (!%p163_p10), 125   ;;  %428 = vmatprep.mubr.msk.bf16.mxu0 (!%p163_p10), %vm614_vm2, %v609_v1  ;;  %v256_v10 = vld [vmem:[#allocation2] sm:$0x1] (!%p163_p10)  ;;  %vm227_vm4 = vcmask (!%p163_p10), 1022976   ;;  %vm220_vm5 = vcmask (!%p163_p10), 1031168   ;;  %v262_v41 = vlaneseq (!%p163_p10) }
  0x13   : > { %s612_s7 = smov (!%p163_p10), 126   ;;  %s613_s8 = smov (!%p163_p10), 124   ;;  %526 = vset.pattern.permute.xlu0 (!%p163_p10), %v617_v9  ;;  %vm234_vm6 = vcmask (!%p163_p10), 1014784   ;;  %vm241_vm7 = vcmask (!%p163_p10), 1006592   ;;  %vm248_vm8 = vcmask (!%p163_p10), 998400   ;;  %vm270_vm9 = vcmask (!%p163_p10), 1043456  }
  0x14   : > { %s615_s9 = smov (!%p163_p10), 123   ;;  %s616_s10 = smov (!%p163_p10), 122   ;;  %v251_v40 = vld [vmem:[%s763_s1] sm:$0x1] (!%p163_p10)  ;;  %vm266_vm10 = vcmask (!%p163_p10), 457728   ;;  %v263_v42 = vshrl.u32 (!%p163_p10), %v262_v41, 7 }
  0x15   : > { %s187_s13 = sand.u32 (!%p163_p10), 1, %s591_s15   ;;  %s411_s2 = sshll.u32 (!%p163_p10), %s599_s17, 4 }
  0x16   : > { %v264_v43 = vsub.s32 (!%p163_p10), 0, %v263_v42  ;;  %s188_s20 = scalar_lea.vmem (!%p163_p10), [#allocation3], %s187_s13  ;;  %s317_s29 = scalar_lea.sflag (!%p163_p10), [#allocation4], %s187_s13 }
  0x17   : > { %s330_s22 = sshll.u32 (!%p163_p10), %s188_s20, 4  ;;  %s717_s22 = int_to_ptr.vmem [resolvable:$true] %s330_s22 }
  0x18   : > { %s529_s30 = scalar_lea.vmem (!%p163_p10), %s717_s22, 16 }
  0x19   : > { %s190_s27 = scalar_select %p189_p11, %s599_s17, 1 }
  0x1a   : > { %p530_p12 = scmp.ne.s32.totalorder %s717_s22, %s529_s30  ;;  %s618_s17 = smov [#allocation3]  }
  0x1b   : > { %s414_s28 = sshll.u32 %s190_s27, 4 }
  0x1c   : > { %s197_s4 = scalar_lea.vmem %s762_s0, %s414_s28  ;;  %s715_s28 = scalar_lea.hbm %s765_s3, %s411_s2 }
  0x1d   : > { %v199_v2 = vld [vmem:[%s197_s4] sm:$0xff]  ;;  %v200_v3 = vld [vmem:[%s197_s4 + $0x8] sm:$0xff]  ;;  %p531_p13 = pnand %p530_p12, %p682_p4  ;;  %s533_s4 = sshll.u32 %s618_s17, 4  ;;  %s534_s4 = int_to_ptr.vmem [resolvable:$false] %s533_s4 }
  0x1e   : > { %vm201_vm0 = vcmp.ge.f32.partialorder %v199_v2, 0.0  ;;  %vm202_vm1 = vcmp.ge.f32.partialorder %v200_v3, 0.0  ;;  %v203_v4 = vmul.f32 0.01, %v199_v2  ;;  %v204_v5 = vmul.f32 0.01, %v200_v3  ;;  %p536_p1 = scmp.lt.s32.totalorder %s717_s22, %s534_s4 }
  0x1f   : > { %p532_p0 = pneg %p531_p13 }
  0x20   : > { %v205_v6 = vsel %vm201_vm0, %v199_v2, %v203_v4  ;;  %v206_v7 = vsel %vm202_vm1, %v200_v3, %v204_v5 }
  0x21   : > { %v496_v8 = vpack.i.bf16 %v206_v7, %v205_v6 }
  0x23   : > { %497 = vrot.lane.b32.xlu0 %v496_v8, %s610_s5  ;;  %507 = vrot.lane.b32.xlu1 %v496_v8, %s611_s6  ;;  %s535_s5 = scalar_lea.vmem %s534_s4, 32 }
  0x24   : > { %p537_p2 = scmp.lt.s32.totalorder %s535_s5, %s529_s30 }
  0x26   : > { %p538_p3 = por %p537_p2, %p536_p1 }
  0x27   : > { %502 = vrot.lane.b32.xlu0 %v496_v8, %s612_s7  ;;  %512 = vrot.lane.b32.xlu1 %v496_v8, %s613_s8 }
  0x28   : > { %p539_p5 = pnand %p538_p3, %p532_p0 }
  0x2b   : > { %517 = vrot.lane.b32.xlu0 %v496_v8, %s615_s9  ;;  %522 = vrot.lane.b32.xlu1 %v496_v8, %s616_s10 }
  0x2f   : > { %259 = vperm.xlu0 %526, %v256_v10  }
  0x95   : > { %v498_v11 = vpop.permute.xlu0 %497  ;;  %v508_v12 = vpop.permute.xlu1 %507 }
  0x96   : > { %v500_v13 = vunpack.i.h.bf16 %v498_v11  ;;  %v499_v14 = vunpack.i.l.bf16 %v498_v11  ;;  %v510_v15 = vunpack.i.h.bf16 %v508_v12  ;;  %v509_v16 = vunpack.i.l.bf16 %v508_v12 }
  0x98   : > { %v214_v17 = vsel %vm213_vm3, %v499_v14, %v500_v13  ;;  %v228_v21 = vsel %vm227_vm4, %v509_v16, %v510_v15 }
  0x99   : > { %v503_v18 = vpop.permute.xlu0 %502  ;;  %v252_v19 = vpack.c.bf16 %v214_v17, %v205_v6  ;;  %v513_v20 = vpop.permute.xlu1 %512 }
  0x9a   : > { %v505_v22 = vunpack.i.h.bf16 %v503_v18  ;;  %v504_v23 = vunpack.i.l.bf16 %v503_v18  ;;  %v515_v24 = vunpack.i.h.bf16 %v513_v20  ;;  %v514_v25 = vunpack.i.l.bf16 %v513_v20 }
  0x9b   : > { %421 = vmatpush3.bf16.msra.mxu0 %v252_v19 }
  0x9c   : > { %422 = vmatprep.subr.bf16.mxu0 %v609_v1  ;;  %v221_v26 = vsel %vm220_vm5, %v504_v23, %v505_v22  ;;  %v235_v30 = vsel %vm234_vm6, %v514_v25, %v515_v24 }
  0x9d   : > { %v518_v27 = vpop.permute.xlu0 %517  ;;  %v253_v28 = vpack.c.bf16 %v228_v21, %v221_v26  ;;  %v523_v29 = vpop.permute.xlu1 %522 }
  0x9e   : > { %v520_v31 = vunpack.i.h.bf16 %v518_v27  ;;  %v519_v32 = vunpack.i.l.bf16 %v518_v27  ;;  %v525_v33 = vunpack.i.h.bf16 %v523_v29  ;;  %v524_v34 = vunpack.i.l.bf16 %v523_v29 }
  0x9f   : > { %423 = vmatpush3.bf16.msra.mxu0 %v253_v28 }
  0xa0   : > { %424 = vmatprep.subr.bf16.mxu0 %v609_v1  ;;  %v242_v35 = vsel %vm241_vm7, %v519_v32, %v520_v31  ;;  %v249_v36 = vsel %vm248_vm8, %v524_v34, %v525_v33 }
  0xa1   : > { %v254_v37 = vpack.c.bf16 %v242_v35, %v235_v30  ;;  %v255_v38 = vpack.c.bf16 %v249_v36, %v249_v36 }
  0xa3   : > { %425 = vmatpush3.bf16.msra.mxu0 %v254_v37  ;;  %v272_v39 = vsel %vm270_vm9, %v255_v38, 0 }
  0xa4   : > { %426 = vmatprep.subr.bf16.mxu0 %v609_v1 }
  0xa7   : > { %427 = vmatpush3.bf16.msra.mxu0 %v272_v39 }
  0xaa   : > { %429 = vmatmul.mubr.msk.bf16.vlgmr.msra.gmra.mrb[0].mxu0 %vm266_vm10, %v251_v40 }
  0xae   : > { %v260_v44 = vpop.permute.xlu0 %259 }
  0xaf   : > { %v265_v45 = vrot.slane %v260_v44, %v264_v43 }
 0x17d   : > { %v308_v46 = vpop.f32.mrb[0].mxu0 }
 0x17e   : > { %v309_v47 = vadd.f32 %v308_v46, %v265_v45  ;;  %v430_v48 = vpop.f32.mrb[1].mxu0 }
 0x17f   : > { %v311_v49 = vpop.f32.mrb[2].mxu0 }
 0x180   : > { %527 = vtanh.f32 %v309_v47  ;;  %v431_v50 = vpop.f32.mrb[3].mxu0 }
 0x18a   : > { %v528_v51 = vpop.eup %527 }
 0x18b   : > { %315 = vst [vmem:[%s188_s20] sm:$0x1] %v528_v51 }
 0x18c   : > { %542 = shalt.err (!%p539_p5)
}
 0x18d   : > { %s543_s6 = scalar_lea.hbm %s715_s28, 16  ;;  %s547_s9 = scalar_lea.hbm %s765_s3, 32 }
 0x18e   : > { %p544_p6 = scmp.ne.s32.totalorder %s715_s28, %s543_s6  ;;  %p548_p10 = scmp.lt.u32.totalorder %s715_s28, %s765_s3 }
 0x18f   : > { %p549_p11 = scmp.lt.u32.totalorder %s547_s9, %s543_s6  ;;  %p551_p13 = scmp.lt.u32.totalorder %s543_s6, %s715_s28 }
 0x190   : > { %p545_p7 = pnand %p544_p6, %p682_p4 }
 0x191   : > { %p550_p12 = por %p549_p11, %p548_p10 }
 0x192   : > { %p546_p9 = pneg %p545_p7 }
 0x193   : > { %p552_p0 = por %p551_p13, %p550_p12 }
 0x195   : > { %p553_p1 = pnand %p552_p0, %p546_p9 }
 0x197   : > { %556 = shalt.err (!%p553_p1)
}
 0x198   : > { %432 = dma.vmem_to_hbm [thread:$0]  (%p682_p4), %s717_s22, 16, %s715_s28, %s317_s29  }
 0x199 PF: > { %p438_p2 = scmp.ge.s32.totalorder %s607_s19, 2  ;;  %s342_s12 = sand.u32 1, %s587_s14  }
 0x19a   : > { %s343_s13 = scalar_lea.sflag [#allocation4], %s342_s12 }
 0x19b   : > { %p435_p3 = pnand %p438_p2, %p689_p8 }
 0x19d   : > { %582 = dma.done.wait (!%p435_p3), %s343_s13, 16  }
 0x19e   : > { %584 = vsyncadd (!%p435_p3), %s343_s13, 4294967280  ;;  %s18_s19 = sadd.s32 1, %s607_s19   ;;  %s768_s14 = smov %s591_s15 }
 0x19f   : > { %p15_p5 = scmp.ge.s32.totalorder %s18_s19, 4   ;;  %s769_s15 = smov %s595_s16 }
 0x1a0   : > { %s770_s16 = smov %s695_s26  ;;  %s771_s17 = smov %s603_s18 }
 0x1a1   : > { %s772_s18 = smov %s774_s21  ;;  %17 = sbr.rel (!%p15_p5) target bundleno = 7 (0x7), region = 67 }
 0x1a8   :  { %347 = vsyncpa [#allocation4], 1 }
 0x1a9   :  { %349 = vsyncpa [#allocation4 + $0x1], 1 }

</bundles_post_ra>
